<compile_context>
chip_gen: v5e
topology: v5e:2x2
jax: 0.10.0
libtpu: 0.0.40
codegen_flags: <defaults>
</compile_context>

<pallas_src>
import functools
import math

import jax
import jax.numpy as jnp
from jax.experimental import pallas as pl
from jax.experimental.pallas import tpu as pltpu


def _round_up(x, m):
    return ((x + m - 1) // m) * m


# ----------------------------------------------------------------------------
# Fused forward kernel (one batch block per grid step)
# ----------------------------------------------------------------------------
def make_fused_kernel(*, n_layers, n_enc, T, Bblk, H, Gp, Fp,
                      B_real, F_real, rho, sparsity_weight, training):
    log_rho = math.log(rho)
    log_1mrho = math.log(1.0 - rho)
    eps = 1e-6   # guard: PyTorch would emit inf/NaN for dead/saturated units

    def kernel(*refs):
        x_ref, lens_ref = refs[0], refs[1]
        layer_refs = refs[2:2 + 3 * n_layers]
        wout_ref = refs[2 + 3 * n_layers]
        bout_ref = refs[3 + 3 * n_layers]
        rec_ref = refs[4 + 3 * n_layers]
        loss_ref = refs[5 + 3 * n_layers]
        xproj_scr = refs[6 + 3 * n_layers]      # (T*Bblk, Gp) f32
        seq_scr = refs[7 + 3 * n_layers]        # (T*Bblk, H)  f32

        # ---- one-time setup: every broadcast hoisted out of the recurrence --
        lens_col = lens_ref[...]                                # (Bblk, 1) f32
        inv_len = 1.0 / jnp.maximum(lens_col, 1.0)              # exact, cold path
        lens_bh = jnp.broadcast_to(lens_col, (Bblk, H))         # one broadcast
        step_masks = [lens_bh > float(t) for t in range(T)]     # T x (Bblk,H) bool
        lane = jax.lax.broadcasted_iota(jnp.int32, (Bblk, Gp), 1)
        is_g_lane = (lane >= 2 * H) & (lane < 3 * H)            # tanh lanes (gate g)

        def run_layer(lidx, x2d):
            """x2d: (T*Bblk, Din) f32.  Writes masked per-step outputs into
            seq_scr; returns the final (frozen at each sequence end) hidden
            state (Bblk, H) — this is PyTorch's hidden[-1] for the layer."""
            wih = layer_refs[3 * lidx][...]            # (Din, Gp) bf16
            whh = layer_refs[3 * lidx + 1][...]        # (H,   Gp) bf16
            bias = layer_refs[3 * lidx + 2][...]       # (1,   Gp) f32
            # Hoisted input projection over ALL timesteps: one M = T*Bblk MXU
            # matmul, bias folded in (removed from the serial per-step path).
            xproj_scr[...] = jax.lax.dot_general(
                x2d.astype(jnp.bfloat16), wih,
                dimension_numbers=(((1,), (0,)), ((), ())),
                preferred_element_type=jnp.float32) + bias
            h = jnp.zeros((Bblk, H), jnp.float32)
            c = jnp.zeros((Bblk, H), jnp.float32)
            # TODO(synk): for long sequences replace the static unroll with
            # lax.fori_loop carrying (h, c) and pl.ds(t*Bblk, Bblk) slices.
            for t in range(T):
                lin = (xproj_scr[pl.ds(t * Bblk, Bblk), :]
                       + jnp.dot(h.astype(jnp.bfloat16), whh,
                                 preferred_element_type=jnp.float32))
                # packed gates [i|f|g|o] in one Gp-lane group: one sigmoid and
                # one tanh on the full vreg + a lane blend, then cheap slices.
                act = jnp.where(is_g_lane, jnp.tanh(lin), jax.nn.sigmoid(lin))
                i_g = act[:, 0 * H:1 * H]
                f_g = act[:, 1 * H:2 * H]
                g_g = act[:, 2 * H:3 * H]
                o_g = act[:, 3 * H:4 * H]
                c_new = f_g * c + i_g * g_g
                h_new = o_g * jnp.tanh(c_new)
                m = step_masks[t]
                # packed-sequence semantics: state frozen past each sequence
                # end; padded output steps are zero.
                h = jnp.where(m, h_new, h)
                c = jnp.where(m, c_new, c)
                seq_scr[pl.ds(t * Bblk, Bblk), :] = jnp.where(m, h_new, 0.0)
            return h

        # ---- Encoder stack ----
        latent = run_layer(0, x_ref[...].reshape(T * Bblk, Fp))
        for l in range(1, n_enc):
            latent = run_layer(l, seq_scr[...])

        # ---- KL sparsity penalty on last-encoder activations (valid steps) --
        acts = seq_scr[...]                                      # (T*Bblk, H)
        abs_sum = jnp.sum(jnp.abs(acts).reshape(T, Bblk, H), axis=0)
        avg = abs_sum * inv_len                                  # (Bblk, H)
        avg = jnp.clip(avg, eps, 1.0 - eps)                      # inf/NaN guard
        kl = (rho * (log_rho - jnp.log(avg))
              + (1.0 - rho) * (log_1mrho - jnp.log(1.0 - avg)))
        row = (pl.program_id(0) * Bblk
               + jax.lax.broadcasted_iota(jnp.int32, (Bblk, H), 0))
        kl_sum = jnp.sum(jnp.where(row < B_real, kl, 0.0), keepdims=True)

        # ---- Decoder input: latent repeated len_i times, zero-padded ----
        for t in range(T):
            seq_scr[pl.ds(t * Bblk, Bblk), :] = jnp.where(
                step_masks[t], latent, 0.0)

        # ---- Decoder stack ----
        for l in range(n_enc, n_layers):
            run_layer(l, seq_scr[...])

        # ---- Output Linear (bf16 x bf16 -> f32) + per-sequence MSE ----
        rec2d = jax.lax.dot_general(
            seq_scr[...].astype(jnp.bfloat16), wout_ref[...],
            dimension_numbers=(((1,), (0,)), ((), ())),
            preferred_element_type=jnp.float32) + bout_ref[...]  # (T*Bblk, Fp)
        rec3 = rec2d.reshape(T, Bblk, Fp)
        lens_int = lens_col.astype(jnp.int32)                    # (Bblk, 1)
        t_idx = jax.lax.broadcasted_iota(jnp.int32, (T, Bblk, Fp), 0)
        valid3 = t_idx < lens_int[None, :, :]                    # (T, Bblk, Fp)
        rec_m = jnp.where(valid3, rec3, 0.0)     # padded rows/steps -> 0
        rec_ref[...] = rec_m
        x_m = jnp.where(valid3, x_ref[...], 0.0)  # robust to non-zero padding
        diff = rec_m - x_m
        per_b = jnp.sum(jnp.sum(diff * diff, axis=2, keepdims=True), axis=0)
        # F.mse_loss per sequence = sum / (len_i * F); averaged over the batch.
        mse_part = (jnp.sum(per_b * inv_len, keepdims=True)
                    * (1.0 / (F_real * B_real)))
        if training:
            total = mse_part + sparsity_weight * kl_sum
        else:
            total = mse_part
        loss_ref[...] = total.reshape(1, 1, 1)    # per-block partial loss

    return kernel


# ----------------------------------------------------------------------------
# Parameter construction (PyTorch-style uniform init, packed gate layout)
# ----------------------------------------------------------------------------
def init_params(key, n_features, emb_dim, lstm_layers):
    H = emb_dim
    Gp = _round_up(4 * H, 128)
    Fp = _round_up(n_features, 128)
    k = 1.0 / math.sqrt(H)

    def uni(key, shape):
        return jax.random.uniform(key, shape, jnp.float32, minval=-k, maxval=k)

    def pack_lstm(w_ih, w_hh, b_ih, b_hh, din, din_p):
        # PyTorch layout: (4H, din) with gates stacked [i; f; g; o].  Transpose
        # and keep the four gate blocks contiguous in one Gp-lane group
        # (no per-gate padding), so whh is (H, 4H) instead of (Hp, 4*Hp).
        wih_t = jnp.pad(w_ih.T, ((0, din_p - din), (0, Gp - 4 * H)))
        whh_t = jnp.pad(w_hh.T, ((0, 0), (0, Gp - 4 * H)))
        bias = jnp.pad(b_ih + b_hh, (0, Gp - 4 * H)).reshape(1, Gp)
        return dict(wih_t=wih_t.astype(jnp.bfloat16),
                    whh_t=whh_t.astype(jnp.bfloat16),
                    bias=bias.astype(jnp.float32))

    def lstm_stack(key, in_dim, in_dim_p):
        layers = []
        for l in range(lstm_layers):
            key, k1, k2, k3, k4 = jax.random.split(key, 5)
            d, dp = (in_dim, in_dim_p) if l == 0 else (H, H)
            layers.append(pack_lstm(uni(k1, (4 * H, d)), uni(k2, (4 * H, H)),
                                    uni(k3, (4 * H,)), uni(k4, (4 * H,)),
                                    d, dp))
        return key, layers

    key, enc = lstm_stack(key, n_features, Fp)
    key, dec = lstm_stack(key, H, H)
    key, k1, k2 = jax.random.split(key, 3)
    w_out = uni(k1, (n_features, H))            # nn.Linear(emb_dim, n_features)
    b_out = uni(k2, (n_features,))
    w_out_t = jnp.pad(w_out.T, ((0, 0), (0, Fp - n_features))).astype(jnp.bfloat16)
    b_out_p = jnp.pad(b_out, (0, Fp - n_features)).reshape(1, Fp).astype(jnp.float32)
    return dict(layers=enc + dec, w_out_t=w_out_t, b_out=b_out_p)


# ----------------------------------------------------------------------------
# Full LSTM_SAE forward (one pallas_call, batch-block 'parallel' grid)
# ----------------------------------------------------------------------------
def lstm_sae_forward(params, x_btf, seq_lengths, *, n_features, emb_dim,
                     lstm_layers, sparsity_weight, sparsity_parameter,
                     training=True, batch_block=None):
    """x_btf: (B, T, n_features) padded batch-first; seq_lengths: (B,) int32.

    NOTE: the recurrent matmul has M = batch rows per block — batching more
    independent sequences per call (target >=128 on v5e, >=256 on v6e/v7x)
    is the main MXU-utilization lever; set batch_block to a multiple of 8 that
    divides the padded batch to shard blocks across v7x's two TensorCores.
    """
    B, T, F = x_btf.shape
    H = emb_dim
    Gp = _round_up(4 * H, 128)
    Fp = _round_up(F, 128)
    Bp = _round_up(max(B, 8), 8)
    Bblk = Bp if batch_block is None else batch_block
    assert Bblk % 8 == 0 and Bp % Bblk == 0
    n_blk = Bp // Bblk

    x = jnp.transpose(x_btf, (1, 0, 2)).astype(jnp.float32)     # (T, B, F)
    x = jnp.pad(x, ((0, 0), (0, Bp - B), (0, Fp - F)))          # (T, Bp, Fp)
    # real lengths (0 for pad rows) — per-step masks are built in-kernel.
    lens = jnp.pad(seq_lengths.astype(jnp.float32), (0, Bp - B)).reshape(Bp, 1)

    n_layers = 2 * lstm_layers
    inputs = [x, lens]
    for layer in params["layers"]:
        inputs += [layer["wih_t"], layer["whh_t"], layer["bias"]]
    inputs += [params["w_out_t"], params["b_out"]]

    kernel = make_fused_kernel(
        n_layers=n_layers, n_enc=lstm_layers, T=T, Bblk=Bblk, H=H, Gp=Gp,
        Fp=Fp, B_real=B, F_real=F, rho=sparsity_parameter,
        sparsity_weight=sparsity_weight, training=training)

    def full_spec(shape):
        nd = len(shape)
        return pl.BlockSpec(shape, lambda i: (0,) * nd)

    in_specs = ([pl.BlockSpec((T, Bblk, Fp), lambda i: (0, i, 0)),   # x
                 pl.BlockSpec((Bblk, 1), lambda i: (i, 0))]          # lens
                + [full_spec(a.shape) for a in inputs[2:]])          # weights
    out_specs = (pl.BlockSpec((T, Bblk, Fp), lambda i: (0, i, 0)),   # rec
                 pl.BlockSpec((1, 1, 1), lambda i: (i, 0, 0)))       # loss/block

    # TODO(synk): when scaling T/B, store xproj in bf16 (or chunk over T) and
    # set pltpu.CompilerParams(vmem_limit_bytes=...) explicitly; at these
    # sizes total VMEM use is < 200 KiB so defaults are fine on all chips.
    rec, loss_blk = pl.pallas_call(
        kernel,
        grid=(n_blk,),
        out_shape=(jax.ShapeDtypeStruct((T, Bp, Fp), jnp.float32),
                   jax.ShapeDtypeStruct((n_blk, 1, 1), jnp.float32)),
        in_specs=in_specs,
        out_specs=out_specs,
        scratch_shapes=[pltpu.VMEM((T * Bblk, Gp), jnp.float32),
                        pltpu.VMEM((T * Bblk, H), jnp.float32)],
        compiler_params=pltpu.CompilerParams(
            dimension_semantics=("parallel",)),
    )(*inputs)

    loss = jnp.sum(loss_blk)                                    # partials add
    reconstructions = jnp.transpose(rec[:, :B, :F], (1, 0, 2))  # (B, T, F)
    return loss, reconstructions


# ----------------------------------------------------------------------------
if __name__ == "__main__":
    n_features = 8
    emb_dim = 32            # 4*emb_dim == 128 -> fully packed gate lane group
    lstm_layers = 2
    sparsity_weight = 0.1
    sparsity_parameter = 0.05

    B, T = 4, 8
    key = jax.random.PRNGKey(0)
    key, kx = jax.random.split(key)
    x = jax.random.normal(kx, (B, T, n_features), jnp.float32)
    seq_lengths = jnp.array([8, 6, 5, 3], dtype=jnp.int32)
    # zero out padding like pad_packed_sequence would produce
    pad_mask = (jnp.arange(T)[None, :] < seq_lengths[:, None]).astype(jnp.float32)
    x = x * pad_mask[:, :, None]

    params = init_params(key, n_features, emb_dim, lstm_layers)

    fwd = jax.jit(functools.partial(
        lstm_sae_forward,
        n_features=n_features, emb_dim=emb_dim, lstm_layers=lstm_layers,
        sparsity_weight=sparsity_weight,
        sparsity_parameter=sparsity_parameter,
        training=True))

    loss, recons = fwd(params, x, seq_lengths)
    loss = jax.block_until_ready(loss)
    recons = jax.block_until_ready(recons)

    assert recons.shape == (B, T, n_features)
    assert bool(jnp.isfinite(loss))
    print("KERNEL_OK")
</pallas_src>

<mosaic_0001>
module attributes {stable_mosaic.version = 11 : i64} {
  func.func @kernel(%arg0: i32, %arg1: memref<8x8x128xf32, #tpu.memory_space<vmem>>, %arg2: memref<8x1xf32, #tpu.memory_space<vmem>>, %arg3: memref<128x128xbf16, #tpu.memory_space<vmem>>, %arg4: memref<32x128xbf16, #tpu.memory_space<vmem>>, %arg5: memref<1x128xf32, #tpu.memory_space<vmem>>, %arg6: memref<32x128xbf16, #tpu.memory_space<vmem>>, %arg7: memref<32x128xbf16, #tpu.memory_space<vmem>>, %arg8: memref<1x128xf32, #tpu.memory_space<vmem>>, %arg9: memref<32x128xbf16, #tpu.memory_space<vmem>>, %arg10: memref<32x128xbf16, #tpu.memory_space<vmem>>, %arg11: memref<1x128xf32, #tpu.memory_space<vmem>>, %arg12: memref<32x128xbf16, #tpu.memory_space<vmem>>, %arg13: memref<32x128xbf16, #tpu.memory_space<vmem>>, %arg14: memref<1x128xf32, #tpu.memory_space<vmem>>, %arg15: memref<32x128xbf16, #tpu.memory_space<vmem>>, %arg16: memref<1x128xf32, #tpu.memory_space<vmem>>, %arg17: memref<8x8x128xf32, #tpu.memory_space<vmem>>, %arg18: memref<1x1x1xf32, #tpu.memory_space<vmem>>, %arg19: memref<64x128xf32, #tpu.memory_space<vmem>>, %arg20: memref<64x32xf32, #tpu.memory_space<vmem>>) attributes {dimension_semantics = [#tpu.dimension_semantics<parallel>], iteration_bounds = array<i64: 1>, scalar_prefetch = 0 : i64, scratch_operands = 2 : i64, tpu.core_type = #tpu.core_type<tc>, window_params = [{transform_indices = @transform_0, window_bounds = array<i64: 8, 8, 128>}, {transform_indices = @transform_1, window_bounds = array<i64: 8, 1>}, {pipeline_mode = #tpu.pipeline_mode<synchronous>, transform_indices = @transform_2, window_bounds = array<i64: 128, 128>}, {pipeline_mode = #tpu.pipeline_mode<synchronous>, transform_indices = @transform_3, window_bounds = array<i64: 32, 128>}, {pipeline_mode = #tpu.pipeline_mode<synchronous>, transform_indices = @transform_4, window_bounds = array<i64: 1, 128>}, {pipeline_mode = #tpu.pipeline_mode<synchronous>, transform_indices = @transform_5, window_bounds = array<i64: 32, 128>}, {pipeline_mode = #tpu.pipeline_mode<synchronous>, transform_indices = @transform_6, window_bounds = array<i64: 32, 128>}, {pipeline_mode = #tpu.pipeline_mode<synchronous>, transform_indices = @transform_7, window_bounds = array<i64: 1, 128>}, {pipeline_mode = #tpu.pipeline_mode<synchronous>, transform_indices = @transform_8, window_bounds = array<i64: 32, 128>}, {pipeline_mode = #tpu.pipeline_mode<synchronous>, transform_indices = @transform_9, window_bounds = array<i64: 32, 128>}, {pipeline_mode = #tpu.pipeline_mode<synchronous>, transform_indices = @transform_10, window_bounds = array<i64: 1, 128>}, {pipeline_mode = #tpu.pipeline_mode<synchronous>, transform_indices = @transform_11, window_bounds = array<i64: 32, 128>}, {pipeline_mode = #tpu.pipeline_mode<synchronous>, transform_indices = @transform_12, window_bounds = array<i64: 32, 128>}, {pipeline_mode = #tpu.pipeline_mode<synchronous>, transform_indices = @transform_13, window_bounds = array<i64: 1, 128>}, {pipeline_mode = #tpu.pipeline_mode<synchronous>, transform_indices = @transform_14, window_bounds = array<i64: 32, 128>}, {pipeline_mode = #tpu.pipeline_mode<synchronous>, transform_indices = @transform_15, window_bounds = array<i64: 1, 128>}, {transform_indices = @transform_16, window_bounds = array<i64: 8, 8, 128>}, {transform_indices = @transform_17, window_bounds = array<i64: 1, 1, 1>}]} {
    %c0 = arith.constant 0 : index
    %c0_0 = arith.constant 0 : index
    %0 = vector.load %arg2[%c0, %c0_0] : memref<8x1xf32, #tpu.memory_space<vmem>>, vector<8x1xf32>
    %cst = arith.constant 1.000000e+00 : f32
    %1 = vector.broadcast %cst : f32 to vector<8x1xf32>
    %2 = arith.maximumf %0, %1 : vector<8x1xf32>
    %cst_1 = arith.constant 1.000000e+00 : f32
    %3 = vector.broadcast %cst_1 : f32 to vector<8x1xf32>
    %4 = arith.divf %3, %2 : vector<8x1xf32>
    %5 = vector.shape_cast %0 : vector<8x1xf32> to vector<8x1xf32>
    %6 = vector.broadcast %5 : vector<8x1xf32> to vector<8x32xf32>
    %cst_2 = arith.constant 0.000000e+00 : f32
    %7 = vector.broadcast %cst_2 : f32 to vector<8x32xf32>
    %8 = arith.cmpf ogt, %6, %7 : vector<8x32xf32>
    %cst_3 = arith.constant 1.000000e+00 : f32
    %9 = vector.broadcast %cst_3 : f32 to vector<8x32xf32>
    %10 = arith.cmpf ogt, %6, %9 : vector<8x32xf32>
    %cst_4 = arith.constant 2.000000e+00 : f32
    %11 = vector.broadcast %cst_4 : f32 to vector<8x32xf32>
    %12 = arith.cmpf ogt, %6, %11 : vector<8x32xf32>
    %cst_5 = arith.constant 3.000000e+00 : f32
    %13 = vector.broadcast %cst_5 : f32 to vector<8x32xf32>
    %14 = arith.cmpf ogt, %6, %13 : vector<8x32xf32>
    %cst_6 = arith.constant 4.000000e+00 : f32
    %15 = vector.broadcast %cst_6 : f32 to vector<8x32xf32>
    %16 = arith.cmpf ogt, %6, %15 : vector<8x32xf32>
    %cst_7 = arith.constant 5.000000e+00 : f32
    %17 = vector.broadcast %cst_7 : f32 to vector<8x32xf32>
    %18 = arith.cmpf ogt, %6, %17 : vector<8x32xf32>
    %cst_8 = arith.constant 6.000000e+00 : f32
    %19 = vector.broadcast %cst_8 : f32 to vector<8x32xf32>
    %20 = arith.cmpf ogt, %6, %19 : vector<8x32xf32>
    %cst_9 = arith.constant 7.000000e+00 : f32
    %21 = vector.broadcast %cst_9 : f32 to vector<8x32xf32>
    %22 = arith.cmpf ogt, %6, %21 : vector<8x32xf32>
    %23 = tpu.iota {dimensions = array<i32: 1>} : vector<8x128xi32>
    %c64_i32 = arith.constant 64 : i32
    %24 = vector.broadcast %c64_i32 : i32 to vector<8x128xi32>
    %25 = arith.cmpi sge, %23, %24 : vector<8x128xi32>
    %c96_i32 = arith.constant 96 : i32
    %26 = vector.broadcast %c96_i32 : i32 to vector<8x128xi32>
    %27 = arith.cmpi slt, %23, %26 : vector<8x128xi32>
    %28 = arith.andi %25, %27 : vector<8x128xi1>
    %c0_10 = arith.constant 0 : index
    %c0_11 = arith.constant 0 : index
    %c0_12 = arith.constant 0 : index
    %29 = vector.load %arg1[%c0_10, %c0_11, %c0_12] : memref<8x8x128xf32, #tpu.memory_space<vmem>>, vector<8x8x128xf32>
    %30 = vector.shape_cast %29 : vector<8x8x128xf32> to vector<64x128xf32>
    %c0_13 = arith.constant 0 : index
    %c0_14 = arith.constant 0 : index
    %31 = vector.load %arg3[%c0_13, %c0_14] : memref<128x128xbf16, #tpu.memory_space<vmem>>, vector<128x128xbf16>
    %c0_15 = arith.constant 0 : index
    %c0_16 = arith.constant 0 : index
    %32 = vector.load %arg4[%c0_15, %c0_16] : memref<32x128xbf16, #tpu.memory_space<vmem>>, vector<32x128xbf16>
    %c0_17 = arith.constant 0 : index
    %c0_18 = arith.constant 0 : index
    %33 = vector.load %arg5[%c0_17, %c0_18] : memref<1x128xf32, #tpu.memory_space<vmem>>, vector<1x128xf32>
    %34 = arith.truncf %30 : vector<64x128xf32> to vector<64x128xbf16>
    %cst_19 = arith.constant dense<0.000000e+00> : vector<64x128xf32>
    %35 = tpu.matmul %34, %31, %cst_19 {dimension_numbers = #tpu.dot_dimension_numbers<[1], [0], [0], [1], [0, 0, 1, 1], [], []>} : vector<64x128xbf16>, vector<128x128xbf16>, vector<64x128xf32> -> vector<64x128xf32>
    %36 = vector.broadcast %33 : vector<1x128xf32> to vector<64x128xf32>
    %37 = arith.addf %35, %36 : vector<64x128xf32>
    %c0_20 = arith.constant 0 : index
    %c0_21 = arith.constant 0 : index
    %38 = vector.load %arg19[%c0_20, %c0_21] : memref<64x128xf32, #tpu.memory_space<vmem>>, vector<64x128xf32>
    tpu.vector_store %arg19[%c0_20, %c0_21], %37 {strides = array<i32>} : memref<64x128xf32, #tpu.memory_space<vmem>>, vector<64x128xf32>,
    %cst_22 = arith.constant 0.000000e+00 : f32
    %39 = vector.broadcast %cst_22 : f32 to vector<8x32xf32>
    %cst_23 = arith.constant 0.000000e+00 : f32
    %40 = vector.broadcast %cst_23 : f32 to vector<8x32xf32>
    %c0_24 = arith.constant 0 : index
    %c0_25 = arith.constant 0 : index
    %41 = vector.load %arg19[%c0_24, %c0_25] : memref<64x128xf32, #tpu.memory_space<vmem>>, vector<8x128xf32>
    %42 = arith.truncf %39 : vector<8x32xf32> to vector<8x32xbf16>
    %cst_26 = arith.constant dense<0.000000e+00> : vector<8x128xf32>
    %43 = tpu.matmul %42, %32, %cst_26 {dimension_numbers = #tpu.dot_dimension_numbers<[1], [0], [0], [1], [0, 0, 1, 1], [], []>} : vector<8x32xbf16>, vector<32x128xbf16>, vector<8x128xf32> -> vector<8x128xf32>
    %44 = arith.addf %41, %43 : vector<8x128xf32>
    %45 = math.tanh %44 : vector<8x128xf32>
    %46 = arith.negf %44 : vector<8x128xf32>
    %47 = math.exp %46 : vector<8x128xf32>
    %cst_27 = arith.constant 1.000000e+00 : f32
    %48 = vector.broadcast %cst_27 : f32 to vector<8x128xf32>
    %49 = arith.addf %48, %47 : vector<8x128xf32>
    %50 = arith.divf %48, %49 : vector<8x128xf32>
    %51 = arith.select %28, %45, %50 : vector<8x128xi1>, vector<8x128xf32>
    %52 = vector.extract_strided_slice %51 {offsets = [0, 0], sizes = [8, 32], strides = [1, 1]} : vector<8x128xf32> to vector<8x32xf32>
    %53 = vector.extract_strided_slice %51 {offsets = [0, 32], sizes = [8, 32], strides = [1, 1]} : vector<8x128xf32> to vector<8x32xf32>
    %54 = vector.extract_strided_slice %51 {offsets = [0, 64], sizes = [8, 32], strides = [1, 1]} : vector<8x128xf32> to vector<8x32xf32>
    %55 = vector.extract_strided_slice %51 {offsets = [0, 96], sizes = [8, 32], strides = [1, 1]} : vector<8x128xf32> to vector<8x32xf32>
    %56 = arith.mulf %53, %40 : vector<8x32xf32>
    %57 = arith.mulf %52, %54 : vector<8x32xf32>
    %58 = arith.addf %56, %57 : vector<8x32xf32>
    %59 = math.tanh %58 : vector<8x32xf32>
    %60 = arith.mulf %55, %59 : vector<8x32xf32>
    %61 = arith.select %8, %60, %39 : vector<8x32xi1>, vector<8x32xf32>
    %62 = arith.select %8, %58, %40 : vector<8x32xi1>, vector<8x32xf32>
    %cst_28 = arith.constant 0.000000e+00 : f32
    %63 = vector.broadcast %cst_28 : f32 to vector<8x32xf32>
    %64 = arith.select %8, %60, %63 : vector<8x32xi1>, vector<8x32xf32>
    %c0_29 = arith.constant 0 : index
    %c0_30 = arith.constant 0 : index
    %65 = vector.load %arg20[%c0_29, %c0_30] : memref<64x32xf32, #tpu.memory_space<vmem>>, vector<8x32xf32>
    tpu.vector_store %arg20[%c0_29, %c0_30], %64 {strides = array<i32>} : memref<64x32xf32, #tpu.memory_space<vmem>>, vector<8x32xf32>,
    %c8 = arith.constant 8 : index
    %c0_31 = arith.constant 0 : index
    %66 = vector.load %arg19[%c8, %c0_31] : memref<64x128xf32, #tpu.memory_space<vmem>>, vector<8x128xf32>
    %67 = arith.truncf %61 : vector<8x32xf32> to vector<8x32xbf16>
    %cst_32 = arith.constant dense<0.000000e+00> : vector<8x128xf32>
    %68 = tpu.matmul %67, %32, %cst_32 {dimension_numbers = #tpu.dot_dimension_numbers<[1], [0], [0], [1], [0, 0, 1, 1], [], []>} : vector<8x32xbf16>, vector<32x128xbf16>, vector<8x128xf32> -> vector<8x128xf32>
    %69 = arith.addf %66, %68 : vector<8x128xf32>
    %70 = math.tanh %69 : vector<8x128xf32>
    %71 = arith.negf %69 : vector<8x128xf32>
    %72 = math.exp %71 : vector<8x128xf32>
    %cst_33 = arith.constant 1.000000e+00 : f32
    %73 = vector.broadcast %cst_33 : f32 to vector<8x128xf32>
    %74 = arith.addf %73, %72 : vector<8x128xf32>
    %75 = arith.divf %73, %74 : vector<8x128xf32>
    %76 = arith.select %28, %70, %75 : vector<8x128xi1>, vector<8x128xf32>
    %77 = vector.extract_strided_slice %76 {offsets = [0, 0], sizes = [8, 32], strides = [1, 1]} : vector<8x128xf32> to vector<8x32xf32>
    %78 = vector.extract_strided_slice %76 {offsets = [0, 32], sizes = [8, 32], strides = [1, 1]} : vector<8x128xf32> to vector<8x32xf32>
    %79 = vector.extract_strided_slice %76 {offsets = [0, 64], sizes = [8, 32], strides = [1, 1]} : vector<8x128xf32> to vector<8x32xf32>
    %80 = vector.extract_strided_slice %76 {offsets = [0, 96], sizes = [8, 32], strides = [1, 1]} : vector<8x128xf32> to vector<8x32xf32>
    %81 = arith.mulf %78, %62 : vector<8x32xf32>
    %82 = arith.mulf %77, %79 : vector<8x32xf32>
    %83 = arith.addf %81, %82 : vector<8x32xf32>
    %84 = math.tanh %83 : vector<8x32xf32>
    %85 = arith.mulf %80, %84 : vector<8x32xf32>
    %86 = arith.select %10, %85, %61 : vector<8x32xi1>, vector<8x32xf32>
    %87 = arith.select %10, %83, %62 : vector<8x32xi1>, vector<8x32xf32>
    %cst_34 = arith.constant 0.000000e+00 : f32
    %88 = vector.broadcast %cst_34 : f32 to vector<8x32xf32>
    %89 = arith.select %10, %85, %88 : vector<8x32xi1>, vector<8x32xf32>
    %c8_35 = arith.constant 8 : index
    %c0_36 = arith.constant 0 : index
    %90 = vector.load %arg20[%c8_35, %c0_36] : memref<64x32xf32, #tpu.memory_space<vmem>>, vector<8x32xf32>
    tpu.vector_store %arg20[%c8_35, %c0_36], %89 {strides = array<i32>} : memref<64x32xf32, #tpu.memory_space<vmem>>, vector<8x32xf32>,
    %c16 = arith.constant 16 : index
    %c0_37 = arith.constant 0 : index
    %91 = vector.load %arg19[%c16, %c0_37] : memref<64x128xf32, #tpu.memory_space<vmem>>, vector<8x128xf32>
    %92 = arith.truncf %86 : vector<8x32xf32> to vector<8x32xbf16>
    %cst_38 = arith.constant dense<0.000000e+00> : vector<8x128xf32>
    %93 = tpu.matmul %92, %32, %cst_38 {dimension_numbers = #tpu.dot_dimension_numbers<[1], [0], [0], [1], [0, 0, 1, 1], [], []>} : vector<8x32xbf16>, vector<32x128xbf16>, vector<8x128xf32> -> vector<8x128xf32>
    %94 = arith.addf %91, %93 : vector<8x128xf32>
    %95 = math.tanh %94 : vector<8x128xf32>
    %96 = arith.negf %94 : vector<8x128xf32>
    %97 = math.exp %96 : vector<8x128xf32>
    %cst_39 = arith.constant 1.000000e+00 : f32
    %98 = vector.broadcast %cst_39 : f32 to vector<8x128xf32>
    %99 = arith.addf %98, %97 : vector<8x128xf32>
    %100 = arith.divf %98, %99 : vector<8x128xf32>
    %101 = arith.select %28, %95, %100 : vector<8x128xi1>, vector<8x128xf32>
    %102 = vector.extract_strided_slice %101 {offsets = [0, 0], sizes = [8, 32], strides = [1, 1]} : vector<8x128xf32> to vector<8x32xf32>
    %103 = vector.extract_strided_slice %101 {offsets = [0, 32], sizes = [8, 32], strides = [1, 1]} : vector<8x128xf32> to vector<8x32xf32>
    %104 = vector.extract_strided_slice %101 {offsets = [0, 64], sizes = [8, 32], strides = [1, 1]} : vector<8x128xf32> to vector<8x32xf32>
    %105 = vector.extract_strided_slice %101 {offsets = [0, 96], sizes = [8, 32], strides = [1, 1]} : vector<8x128xf32> to vector<8x32xf32>
    %106 = arith.mulf %103, %87 : vector<8x32xf32>
    %107 = arith.mulf %102, %104 : vector<8x32xf32>
    %108 = arith.addf %106, %107 : vector<8x32xf32>
    %109 = math.tanh %108 : vector<8x32xf32>
    %110 = arith.mulf %105, %109 : vector<8x32xf32>
    %111 = arith.select %12, %110, %86 : vector<8x32xi1>, vector<8x32xf32>
    %112 = arith.select %12, %108, %87 : vector<8x32xi1>, vector<8x32xf32>
    %cst_40 = arith.constant 0.000000e+00 : f32
    %113 = vector.broadcast %cst_40 : f32 to vector<8x32xf32>
    %114 = arith.select %12, %110, %113 : vector<8x32xi1>, vector<8x32xf32>
    %c16_41 = arith.constant 16 : index
    %c0_42 = arith.constant 0 : index
    %115 = vector.load %arg20[%c16_41, %c0_42] : memref<64x32xf32, #tpu.memory_space<vmem>>, vector<8x32xf32>
    tpu.vector_store %arg20[%c16_41, %c0_42], %114 {strides = array<i32>} : memref<64x32xf32, #tpu.memory_space<vmem>>, vector<8x32xf32>,
    %c24 = arith.constant 24 : index
    %c0_43 = arith.constant 0 : index
    %116 = vector.load %arg19[%c24, %c0_43] : memref<64x128xf32, #tpu.memory_space<vmem>>, vector<8x128xf32>
    %117 = arith.truncf %111 : vector<8x32xf32> to vector<8x32xbf16>
    %cst_44 = arith.constant dense<0.000000e+00> : vector<8x128xf32>
    %118 = tpu.matmul %117, %32, %cst_44 {dimension_numbers = #tpu.dot_dimension_numbers<[1], [0], [0], [1], [0, 0, 1, 1], [], []>} : vector<8x32xbf16>, vector<32x128xbf16>, vector<8x128xf32> -> vector<8x128xf32>
    %119 = arith.addf %116, %118 : vector<8x128xf32>
    %120 = math.tanh %119 : vector<8x128xf32>
    %121 = arith.negf %119 : vector<8x128xf32>
    %122 = math.exp %121 : vector<8x128xf32>
    %cst_45 = arith.constant 1.000000e+00 : f32
    %123 = vector.broadcast %cst_45 : f32 to vector<8x128xf32>
    %124 = arith.addf %123, %122 : vector<8x128xf32>
    %125 = arith.divf %123, %124 : vector<8x128xf32>
    %126 = arith.select %28, %120, %125 : vector<8x128xi1>, vector<8x128xf32>
    %127 = vector.extract_strided_slice %126 {offsets = [0, 0], sizes = [8, 32], strides = [1, 1]} : vector<8x128xf32> to vector<8x32xf32>
    %128 = vector.extract_strided_slice %126 {offsets = [0, 32], sizes = [8, 32], strides = [1, 1]} : vector<8x128xf32> to vector<8x32xf32>
    %129 = vector.extract_strided_slice %126 {offsets = [0, 64], sizes = [8, 32], strides = [1, 1]} : vector<8x128xf32> to vector<8x32xf32>
    %130 = vector.extract_strided_slice %126 {offsets = [0, 96], sizes = [8, 32], strides = [1, 1]} : vector<8x128xf32> to vector<8x32xf32>
    %131 = arith.mulf %128, %112 : vector<8x32xf32>
    %132 = arith.mulf %127, %129 : vector<8x32xf32>
    %133 = arith.addf %131, %132 : vector<8x32xf32>
    %134 = math.tanh %133 : vector<8x32xf32>
    %135 = arith.mulf %130, %134 : vector<8x32xf32>
    %136 = arith.select %14, %135, %111 : vector<8x32xi1>, vector<8x32xf32>
    %137 = arith.select %14, %133, %112 : vector<8x32xi1>, vector<8x32xf32>
    %cst_46 = arith.constant 0.000000e+00 : f32
    %138 = vector.broadcast %cst_46 : f32 to vector<8x32xf32>
    %139 = arith.select %14, %135, %138 : vector<8x32xi1>, vector<8x32xf32>
    %c24_47 = arith.constant 24 : index
    %c0_48 = arith.constant 0 : index
    %140 = vector.load %arg20[%c24_47, %c0_48] : memref<64x32xf32, #tpu.memory_space<vmem>>, vector<8x32xf32>
    tpu.vector_store %arg20[%c24_47, %c0_48], %139 {strides = array<i32>} : memref<64x32xf32, #tpu.memory_space<vmem>>, vector<8x32xf32>,
    %c32 = arith.constant 32 : index
    %c0_49 = arith.constant 0 : index
    %141 = vector.load %arg19[%c32, %c0_49] : memref<64x128xf32, #tpu.memory_space<vmem>>, vector<8x128xf32>
    %142 = arith.truncf %136 : vector<8x32xf32> to vector<8x32xbf16>
    %cst_50 = arith.constant dense<0.000000e+00> : vector<8x128xf32>
    %143 = tpu.matmul %142, %32, %cst_50 {dimension_numbers = #tpu.dot_dimension_numbers<[1], [0], [0], [1], [0, 0, 1, 1], [], []>} : vector<8x32xbf16>, vector<32x128xbf16>, vector<8x128xf32> -> vector<8x128xf32>
    %144 = arith.addf %141, %143 : vector<8x128xf32>
    %145 = math.tanh %144 : vector<8x128xf32>
    %146 = arith.negf %144 : vector<8x128xf32>
    %147 = math.exp %146 : vector<8x128xf32>
    %cst_51 = arith.constant 1.000000e+00 : f32
    %148 = vector.broadcast %cst_51 : f32 to vector<8x128xf32>
    %149 = arith.addf %148, %147 : vector<8x128xf32>
    %150 = arith.divf %148, %149 : vector<8x128xf32>
    %151 = arith.select %28, %145, %150 : vector<8x128xi1>, vector<8x128xf32>
    %152 = vector.extract_strided_slice %151 {offsets = [0, 0], sizes = [8, 32], strides = [1, 1]} : vector<8x128xf32> to vector<8x32xf32>
    %153 = vector.extract_strided_slice %151 {offsets = [0, 32], sizes = [8, 32], strides = [1, 1]} : vector<8x128xf32> to vector<8x32xf32>
    %154 = vector.extract_strided_slice %151 {offsets = [0, 64], sizes = [8, 32], strides = [1, 1]} : vector<8x128xf32> to vector<8x32xf32>
    %155 = vector.extract_strided_slice %151 {offsets = [0, 96], sizes = [8, 32], strides = [1, 1]} : vector<8x128xf32> to vector<8x32xf32>
    %156 = arith.mulf %153, %137 : vector<8x32xf32>
    %157 = arith.mulf %152, %154 : vector<8x32xf32>
    %158 = arith.addf %156, %157 : vector<8x32xf32>
    %159 = math.tanh %158 : vector<8x32xf32>
    %160 = arith.mulf %155, %159 : vector<8x32xf32>
    %161 = arith.select %16, %160, %136 : vector<8x32xi1>, vector<8x32xf32>
    %162 = arith.select %16, %158, %137 : vector<8x32xi1>, vector<8x32xf32>
    %cst_52 = arith.constant 0.000000e+00 : f32
    %163 = vector.broadcast %cst_52 : f32 to vector<8x32xf32>
    %164 = arith.select %16, %160, %163 : vector<8x32xi1>, vector<8x32xf32>
    %c32_53 = arith.constant 32 : index
    %c0_54 = arith.constant 0 : index
    %165 = vector.load %arg20[%c32_53, %c0_54] : memref<64x32xf32, #tpu.memory_space<vmem>>, vector<8x32xf32>
    tpu.vector_store %arg20[%c32_53, %c0_54], %164 {strides = array<i32>} : memref<64x32xf32, #tpu.memory_space<vmem>>, vector<8x32xf32>,
    %c40 = arith.constant 40 : index
    %c0_55 = arith.constant 0 : index
    %166 = vector.load %arg19[%c40, %c0_55] : memref<64x128xf32, #tpu.memory_space<vmem>>, vector<8x128xf32>
    %167 = arith.truncf %161 : vector<8x32xf32> to vector<8x32xbf16>
    %cst_56 = arith.constant dense<0.000000e+00> : vector<8x128xf32>
    %168 = tpu.matmul %167, %32, %cst_56 {dimension_numbers = #tpu.dot_dimension_numbers<[1], [0], [0], [1], [0, 0, 1, 1], [], []>} : vector<8x32xbf16>, vector<32x128xbf16>, vector<8x128xf32> -> vector<8x128xf32>
    %169 = arith.addf %166, %168 : vector<8x128xf32>
    %170 = math.tanh %169 : vector<8x128xf32>
    %171 = arith.negf %169 : vector<8x128xf32>
    %172 = math.exp %171 : vector<8x128xf32>
    %cst_57 = arith.constant 1.000000e+00 : f32
    %173 = vector.broadcast %cst_57 : f32 to vector<8x128xf32>
    %174 = arith.addf %173, %172 : vector<8x128xf32>
    %175 = arith.divf %173, %174 : vector<8x128xf32>
    %176 = arith.select %28, %170, %175 : vector<8x128xi1>, vector<8x128xf32>
    %177 = vector.extract_strided_slice %176 {offsets = [0, 0], sizes = [8, 32], strides = [1, 1]} : vector<8x128xf32> to vector<8x32xf32>
    %178 = vector.extract_strided_slice %176 {offsets = [0, 32], sizes = [8, 32], strides = [1, 1]} : vector<8x128xf32> to vector<8x32xf32>
    %179 = vector.extract_strided_slice %176 {offsets = [0, 64], sizes = [8, 32], strides = [1, 1]} : vector<8x128xf32> to vector<8x32xf32>
    %180 = vector.extract_strided_slice %176 {offsets = [0, 96], sizes = [8, 32], strides = [1, 1]} : vector<8x128xf32> to vector<8x32xf32>
    %181 = arith.mulf %178, %162 : vector<8x32xf32>
    %182 = arith.mulf %177, %179 : vector<8x32xf32>
    %183 = arith.addf %181, %182 : vector<8x32xf32>
    %184 = math.tanh %183 : vector<8x32xf32>
    %185 = arith.mulf %180, %184 : vector<8x32xf32>
    %186 = arith.select %18, %185, %161 : vector<8x32xi1>, vector<8x32xf32>
    %187 = arith.select %18, %183, %162 : vector<8x32xi1>, vector<8x32xf32>
    %cst_58 = arith.constant 0.000000e+00 : f32
    %188 = vector.broadcast %cst_58 : f32 to vector<8x32xf32>
    %189 = arith.select %18, %185, %188 : vector<8x32xi1>, vector<8x32xf32>
    %c40_59 = arith.constant 40 : index
    %c0_60 = arith.constant 0 : index
    %190 = vector.load %arg20[%c40_59, %c0_60] : memref<64x32xf32, #tpu.memory_space<vmem>>, vector<8x32xf32>
    tpu.vector_store %arg20[%c40_59, %c0_60], %189 {strides = array<i32>} : memref<64x32xf32, #tpu.memory_space<vmem>>, vector<8x32xf32>,
    %c48 = arith.constant 48 : index
    %c0_61 = arith.constant 0 : index
    %191 = vector.load %arg19[%c48, %c0_61] : memref<64x128xf32, #tpu.memory_space<vmem>>, vector<8x128xf32>
    %192 = arith.truncf %186 : vector<8x32xf32> to vector<8x32xbf16>
    %cst_62 = arith.constant dense<0.000000e+00> : vector<8x128xf32>
    %193 = tpu.matmul %192, %32, %cst_62 {dimension_numbers = #tpu.dot_dimension_numbers<[1], [0], [0], [1], [0, 0, 1, 1], [], []>} : vector<8x32xbf16>, vector<32x128xbf16>, vector<8x128xf32> -> vector<8x128xf32>
    %194 = arith.addf %191, %193 : vector<8x128xf32>
    %195 = math.tanh %194 : vector<8x128xf32>
    %196 = arith.negf %194 : vector<8x128xf32>
    %197 = math.exp %196 : vector<8x128xf32>
    %cst_63 = arith.constant 1.000000e+00 : f32
    %198 = vector.broadcast %cst_63 : f32 to vector<8x128xf32>
    %199 = arith.addf %198, %197 : vector<8x128xf32>
    %200 = arith.divf %198, %199 : vector<8x128xf32>
    %201 = arith.select %28, %195, %200 : vector<8x128xi1>, vector<8x128xf32>
    %202 = vector.extract_strided_slice %201 {offsets = [0, 0], sizes = [8, 32], strides = [1, 1]} : vector<8x128xf32> to vector<8x32xf32>
    %203 = vector.extract_strided_slice %201 {offsets = [0, 32], sizes = [8, 32], strides = [1, 1]} : vector<8x128xf32> to vector<8x32xf32>
    %204 = vector.extract_strided_slice %201 {offsets = [0, 64], sizes = [8, 32], strides = [1, 1]} : vector<8x128xf32> to vector<8x32xf32>
    %205 = vector.extract_strided_slice %201 {offsets = [0, 96], sizes = [8, 32], strides = [1, 1]} : vector<8x128xf32> to vector<8x32xf32>
    %206 = arith.mulf %203, %187 : vector<8x32xf32>
    %207 = arith.mulf %202, %204 : vector<8x32xf32>
    %208 = arith.addf %206, %207 : vector<8x32xf32>
    %209 = math.tanh %208 : vector<8x32xf32>
    %210 = arith.mulf %205, %209 : vector<8x32xf32>
    %211 = arith.select %20, %210, %186 : vector<8x32xi1>, vector<8x32xf32>
    %212 = arith.select %20, %208, %187 : vector<8x32xi1>, vector<8x32xf32>
    %cst_64 = arith.constant 0.000000e+00 : f32
    %213 = vector.broadcast %cst_64 : f32 to vector<8x32xf32>
    %214 = arith.select %20, %210, %213 : vector<8x32xi1>, vector<8x32xf32>
    %c48_65 = arith.constant 48 : index
    %c0_66 = arith.constant 0 : index
    %215 = vector.load %arg20[%c48_65, %c0_66] : memref<64x32xf32, #tpu.memory_space<vmem>>, vector<8x32xf32>
    tpu.vector_store %arg20[%c48_65, %c0_66], %214 {strides = array<i32>} : memref<64x32xf32, #tpu.memory_space<vmem>>, vector<8x32xf32>,
    %c56 = arith.constant 56 : index
    %c0_67 = arith.constant 0 : index
    %216 = vector.load %arg19[%c56, %c0_67] : memref<64x128xf32, #tpu.memory_space<vmem>>, vector<8x128xf32>
    %217 = arith.truncf %211 : vector<8x32xf32> to vector<8x32xbf16>
    %cst_68 = arith.constant dense<0.000000e+00> : vector<8x128xf32>
    %218 = tpu.matmul %217, %32, %cst_68 {dimension_numbers = #tpu.dot_dimension_numbers<[1], [0], [0], [1], [0, 0, 1, 1], [], []>} : vector<8x32xbf16>, vector<32x128xbf16>, vector<8x128xf32> -> vector<8x128xf32>
    %219 = arith.addf %216, %218 : vector<8x128xf32>
    %220 = math.tanh %219 : vector<8x128xf32>
    %221 = arith.negf %219 : vector<8x128xf32>
    %222 = math.exp %221 : vector<8x128xf32>
    %cst_69 = arith.constant 1.000000e+00 : f32
    %223 = vector.broadcast %cst_69 : f32 to vector<8x128xf32>
    %224 = arith.addf %223, %222 : vector<8x128xf32>
    %225 = arith.divf %223, %224 : vector<8x128xf32>
    %226 = arith.select %28, %220, %225 : vector<8x128xi1>, vector<8x128xf32>
    %227 = vector.extract_strided_slice %226 {offsets = [0, 0], sizes = [8, 32], strides = [1, 1]} : vector<8x128xf32> to vector<8x32xf32>
    %228 = vector.extract_strided_slice %226 {offsets = [0, 32], sizes = [8, 32], strides = [1, 1]} : vector<8x128xf32> to vector<8x32xf32>
    %229 = vector.extract_strided_slice %226 {offsets = [0, 64], sizes = [8, 32], strides = [1, 1]} : vector<8x128xf32> to vector<8x32xf32>
    %230 = vector.extract_strided_slice %226 {offsets = [0, 96], sizes = [8, 32], strides = [1, 1]} : vector<8x128xf32> to vector<8x32xf32>
    %231 = arith.mulf %228, %212 : vector<8x32xf32>
    %232 = arith.mulf %227, %229 : vector<8x32xf32>
    %233 = arith.addf %231, %232 : vector<8x32xf32>
    %234 = math.tanh %233 : vector<8x32xf32>
    %235 = arith.mulf %230, %234 : vector<8x32xf32>
    %cst_70 = arith.constant 0.000000e+00 : f32
    %236 = vector.broadcast %cst_70 : f32 to vector<8x32xf32>
    %237 = arith.select %22, %235, %236 : vector<8x32xi1>, vector<8x32xf32>
    %c56_71 = arith.constant 56 : index
    %c0_72 = arith.constant 0 : index
    %238 = vector.load %arg20[%c56_71, %c0_72] : memref<64x32xf32, #tpu.memory_space<vmem>>, vector<8x32xf32>
    tpu.vector_store %arg20[%c56_71, %c0_72], %237 {strides = array<i32>} : memref<64x32xf32, #tpu.memory_space<vmem>>, vector<8x32xf32>,
    %c0_73 = arith.constant 0 : index
    %c0_74 = arith.constant 0 : index
    %239 = vector.load %arg20[%c0_73, %c0_74] : memref<64x32xf32, #tpu.memory_space<vmem>>, vector<64x32xf32>
    %c0_75 = arith.constant 0 : index
    %c0_76 = arith.constant 0 : index
    %240 = vector.load %arg6[%c0_75, %c0_76] : memref<32x128xbf16, #tpu.memory_space<vmem>>, vector<32x128xbf16>
    %c0_77 = arith.constant 0 : index
    %c0_78 = arith.constant 0 : index
    %241 = vector.load %arg7[%c0_77, %c0_78] : memref<32x128xbf16, #tpu.memory_space<vmem>>, vector<32x128xbf16>
    %c0_79 = arith.constant 0 : index
    %c0_80 = arith.constant 0 : index
    %242 = vector.load %arg8[%c0_79, %c0_80] : memref<1x128xf32, #tpu.memory_space<vmem>>, vector<1x128xf32>
    %243 = arith.truncf %239 : vector<64x32xf32> to vector<64x32xbf16>
    %cst_81 = arith.constant dense<0.000000e+00> : vector<64x128xf32>
    %244 = tpu.matmul %243, %240, %cst_81 {dimension_numbers = #tpu.dot_dimension_numbers<[1], [0], [0], [1], [0, 0, 1, 1], [], []>} : vector<64x32xbf16>, vector<32x128xbf16>, vector<64x128xf32> -> vector<64x128xf32>
    %245 = vector.broadcast %242 : vector<1x128xf32> to vector<64x128xf32>
    %246 = arith.addf %244, %245 : vector<64x128xf32>
    %c0_82 = arith.constant 0 : index
    %c0_83 = arith.constant 0 : index
    %247 = vector.load %arg19[%c0_82, %c0_83] : memref<64x128xf32, #tpu.memory_space<vmem>>, vector<64x128xf32>
    tpu.vector_store %arg19[%c0_82, %c0_83], %246 {strides = array<i32>} : memref<64x128xf32, #tpu.memory_space<vmem>>, vector<64x128xf32>,
    %cst_84 = arith.constant 0.000000e+00 : f32
    %248 = vector.broadcast %cst_84 : f32 to vector<8x32xf32>
    %cst_85 = arith.constant 0.000000e+00 : f32
    %249 = vector.broadcast %cst_85 : f32 to vector<8x32xf32>
    %c0_86 = arith.constant 0 : index
    %c0_87 = arith.constant 0 : index
    %250 = vector.load %arg19[%c0_86, %c0_87] : memref<64x128xf32, #tpu.memory_space<vmem>>, vector<8x128xf32>
    %251 = arith.truncf %248 : vector<8x32xf32> to vector<8x32xbf16>
    %cst_88 = arith.constant dense<0.000000e+00> : vector<8x128xf32>
    %252 = tpu.matmul %251, %241, %cst_88 {dimension_numbers = #tpu.dot_dimension_numbers<[1], [0], [0], [1], [0, 0, 1, 1], [], []>} : vector<8x32xbf16>, vector<32x128xbf16>, vector<8x128xf32> -> vector<8x128xf32>
    %253 = arith.addf %250, %252 : vector<8x128xf32>
    %254 = math.tanh %253 : vector<8x128xf32>
    %255 = arith.negf %253 : vector<8x128xf32>
    %256 = math.exp %255 : vector<8x128xf32>
    %cst_89 = arith.constant 1.000000e+00 : f32
    %257 = vector.broadcast %cst_89 : f32 to vector<8x128xf32>
    %258 = arith.addf %257, %256 : vector<8x128xf32>
    %259 = arith.divf %257, %258 : vector<8x128xf32>
    %260 = arith.select %28, %254, %259 : vector<8x128xi1>, vector<8x128xf32>
    %261 = vector.extract_strided_slice %260 {offsets = [0, 0], sizes = [8, 32], strides = [1, 1]} : vector<8x128xf32> to vector<8x32xf32>
    %262 = vector.extract_strided_slice %260 {offsets = [0, 32], sizes = [8, 32], strides = [1, 1]} : vector<8x128xf32> to vector<8x32xf32>
    %263 = vector.extract_strided_slice %260 {offsets = [0, 64], sizes = [8, 32], strides = [1, 1]} : vector<8x128xf32> to vector<8x32xf32>
    %264 = vector.extract_strided_slice %260 {offsets = [0, 96], sizes = [8, 32], strides = [1, 1]} : vector<8x128xf32> to vector<8x32xf32>
    %265 = arith.mulf %262, %249 : vector<8x32xf32>
    %266 = arith.mulf %261, %263 : vector<8x32xf32>
    %267 = arith.addf %265, %266 : vector<8x32xf32>
    %268 = math.tanh %267 : vector<8x32xf32>
    %269 = arith.mulf %264, %268 : vector<8x32xf32>
    %270 = arith.select %8, %269, %248 : vector<8x32xi1>, vector<8x32xf32>
    %271 = arith.select %8, %267, %249 : vector<8x32xi1>, vector<8x32xf32>
    %cst_90 = arith.constant 0.000000e+00 : f32
    %272 = vector.broadcast %cst_90 : f32 to vector<8x32xf32>
    %273 = arith.select %8, %269, %272 : vector<8x32xi1>, vector<8x32xf32>
    %c0_91 = arith.constant 0 : index
    %c0_92 = arith.constant 0 : index
    %274 = vector.load %arg20[%c0_91, %c0_92] : memref<64x32xf32, #tpu.memory_space<vmem>>, vector<8x32xf32>
    tpu.vector_store %arg20[%c0_91, %c0_92], %273 {strides = array<i32>} : memref<64x32xf32, #tpu.memory_space<vmem>>, vector<8x32xf32>,
    %c8_93 = arith.constant 8 : index
    %c0_94 = arith.constant 0 : index
    %275 = vector.load %arg19[%c8_93, %c0_94] : memref<64x128xf32, #tpu.memory_space<vmem>>, vector<8x128xf32>
    %276 = arith.truncf %270 : vector<8x32xf32> to vector<8x32xbf16>
    %cst_95 = arith.constant dense<0.000000e+00> : vector<8x128xf32>
    %277 = tpu.matmul %276, %241, %cst_95 {dimension_numbers = #tpu.dot_dimension_numbers<[1], [0], [0], [1], [0, 0, 1, 1], [], []>} : vector<8x32xbf16>, vector<32x128xbf16>, vector<8x128xf32> -> vector<8x128xf32>
    %278 = arith.addf %275, %277 : vector<8x128xf32>
    %279 = math.tanh %278 : vector<8x128xf32>
    %280 = arith.negf %278 : vector<8x128xf32>
    %281 = math.exp %280 : vector<8x128xf32>
    %cst_96 = arith.constant 1.000000e+00 : f32
    %282 = vector.broadcast %cst_96 : f32 to vector<8x128xf32>
    %283 = arith.addf %282, %281 : vector<8x128xf32>
    %284 = arith.divf %282, %283 : vector<8x128xf32>
    %285 = arith.select %28, %279, %284 : vector<8x128xi1>, vector<8x128xf32>
    %286 = vector.extract_strided_slice %285 {offsets = [0, 0], sizes = [8, 32], strides = [1, 1]} : vector<8x128xf32> to vector<8x32xf32>
    %287 = vector.extract_strided_slice %285 {offsets = [0, 32], sizes = [8, 32], strides = [1, 1]} : vector<8x128xf32> to vector<8x32xf32>
    %288 = vector.extract_strided_slice %285 {offsets = [0, 64], sizes = [8, 32], strides = [1, 1]} : vector<8x128xf32> to vector<8x32xf32>
    %289 = vector.extract_strided_slice %285 {offsets = [0, 96], sizes = [8, 32], strides = [1, 1]} : vector<8x128xf32> to vector<8x32xf32>
    %290 = arith.mulf %287, %271 : vector<8x32xf32>
    %291 = arith.mulf %286, %288 : vector<8x32xf32>
    %292 = arith.addf %290, %291 : vector<8x32xf32>
    %293 = math.tanh %292 : vector<8x32xf32>
    %294 = arith.mulf %289, %293 : vector<8x32xf32>
    %295 = arith.select %10, %294, %270 : vector<8x32xi1>, vector<8x32xf32>
    %296 = arith.select %10, %292, %271 : vector<8x32xi1>, vector<8x32xf32>
    %cst_97 = arith.constant 0.000000e+00 : f32
    %297 = vector.broadcast %cst_97 : f32 to vector<8x32xf32>
    %298 = arith.select %10, %294, %297 : vector<8x32xi1>, vector<8x32xf32>
    %c8_98 = arith.constant 8 : index
    %c0_99 = arith.constant 0 : index
    %299 = vector.load %arg20[%c8_98, %c0_99] : memref<64x32xf32, #tpu.memory_space<vmem>>, vector<8x32xf32>
    tpu.vector_store %arg20[%c8_98, %c0_99], %298 {strides = array<i32>} : memref<64x32xf32, #tpu.memory_space<vmem>>, vector<8x32xf32>,
    %c16_100 = arith.constant 16 : index
    %c0_101 = arith.constant 0 : index
    %300 = vector.load %arg19[%c16_100, %c0_101] : memref<64x128xf32, #tpu.memory_space<vmem>>, vector<8x128xf32>
    %301 = arith.truncf %295 : vector<8x32xf32> to vector<8x32xbf16>
    %cst_102 = arith.constant dense<0.000000e+00> : vector<8x128xf32>
    %302 = tpu.matmul %301, %241, %cst_102 {dimension_numbers = #tpu.dot_dimension_numbers<[1], [0], [0], [1], [0, 0, 1, 1], [], []>} : vector<8x32xbf16>, vector<32x128xbf16>, vector<8x128xf32> -> vector<8x128xf32>
    %303 = arith.addf %300, %302 : vector<8x128xf32>
    %304 = math.tanh %303 : vector<8x128xf32>
    %305 = arith.negf %303 : vector<8x128xf32>
    %306 = math.exp %305 : vector<8x128xf32>
    %cst_103 = arith.constant 1.000000e+00 : f32
    %307 = vector.broadcast %cst_103 : f32 to vector<8x128xf32>
    %308 = arith.addf %307, %306 : vector<8x128xf32>
    %309 = arith.divf %307, %308 : vector<8x128xf32>
    %310 = arith.select %28, %304, %309 : vector<8x128xi1>, vector<8x128xf32>
    %311 = vector.extract_strided_slice %310 {offsets = [0, 0], sizes = [8, 32], strides = [1, 1]} : vector<8x128xf32> to vector<8x32xf32>
    %312 = vector.extract_strided_slice %310 {offsets = [0, 32], sizes = [8, 32], strides = [1, 1]} : vector<8x128xf32> to vector<8x32xf32>
    %313 = vector.extract_strided_slice %310 {offsets = [0, 64], sizes = [8, 32], strides = [1, 1]} : vector<8x128xf32> to vector<8x32xf32>
    %314 = vector.extract_strided_slice %310 {offsets = [0, 96], sizes = [8, 32], strides = [1, 1]} : vector<8x128xf32> to vector<8x32xf32>
    %315 = arith.mulf %312, %296 : vector<8x32xf32>
    %316 = arith.mulf %311, %313 : vector<8x32xf32>
    %317 = arith.addf %315, %316 : vector<8x32xf32>
    %318 = math.tanh %317 : vector<8x32xf32>
    %319 = arith.mulf %314, %318 : vector<8x32xf32>
    %320 = arith.select %12, %319, %295 : vector<8x32xi1>, vector<8x32xf32>
    %321 = arith.select %12, %317, %296 : vector<8x32xi1>, vector<8x32xf32>
    %cst_104 = arith.constant 0.000000e+00 : f32
    %322 = vector.broadcast %cst_104 : f32 to vector<8x32xf32>
    %323 = arith.select %12, %319, %322 : vector<8x32xi1>, vector<8x32xf32>
    %c16_105 = arith.constant 16 : index
    %c0_106 = arith.constant 0 : index
    %324 = vector.load %arg20[%c16_105, %c0_106] : memref<64x32xf32, #tpu.memory_space<vmem>>, vector<8x32xf32>
    tpu.vector_store %arg20[%c16_105, %c0_106], %323 {strides = array<i32>} : memref<64x32xf32, #tpu.memory_space<vmem>>, vector<8x32xf32>,
    %c24_107 = arith.constant 24 : index
    %c0_108 = arith.constant 0 : index
    %325 = vector.load %arg19[%c24_107, %c0_108] : memref<64x128xf32, #tpu.memory_space<vmem>>, vector<8x128xf32>
    %326 = arith.truncf %320 : vector<8x32xf32> to vector<8x32xbf16>
    %cst_109 = arith.constant dense<0.000000e+00> : vector<8x128xf32>
    %327 = tpu.matmul %326, %241, %cst_109 {dimension_numbers = #tpu.dot_dimension_numbers<[1], [0], [0], [1], [0, 0, 1, 1], [], []>} : vector<8x32xbf16>, vector<32x128xbf16>, vector<8x128xf32> -> vector<8x128xf32>
    %328 = arith.addf %325, %327 : vector<8x128xf32>
    %329 = math.tanh %328 : vector<8x128xf32>
    %330 = arith.negf %328 : vector<8x128xf32>
    %331 = math.exp %330 : vector<8x128xf32>
    %cst_110 = arith.constant 1.000000e+00 : f32
    %332 = vector.broadcast %cst_110 : f32 to vector<8x128xf32>
    %333 = arith.addf %332, %331 : vector<8x128xf32>
    %334 = arith.divf %332, %333 : vector<8x128xf32>
    %335 = arith.select %28, %329, %334 : vector<8x128xi1>, vector<8x128xf32>
    %336 = vector.extract_strided_slice %335 {offsets = [0, 0], sizes = [8, 32], strides = [1, 1]} : vector<8x128xf32> to vector<8x32xf32>
    %337 = vector.extract_strided_slice %335 {offsets = [0, 32], sizes = [8, 32], strides = [1, 1]} : vector<8x128xf32> to vector<8x32xf32>
    %338 = vector.extract_strided_slice %335 {offsets = [0, 64], sizes = [8, 32], strides = [1, 1]} : vector<8x128xf32> to vector<8x32xf32>
    %339 = vector.extract_strided_slice %335 {offsets = [0, 96], sizes = [8, 32], strides = [1, 1]} : vector<8x128xf32> to vector<8x32xf32>
    %340 = arith.mulf %337, %321 : vector<8x32xf32>
    %341 = arith.mulf %336, %338 : vector<8x32xf32>
    %342 = arith.addf %340, %341 : vector<8x32xf32>
    %343 = math.tanh %342 : vector<8x32xf32>
    %344 = arith.mulf %339, %343 : vector<8x32xf32>
    %345 = arith.select %14, %344, %320 : vector<8x32xi1>, vector<8x32xf32>
    %346 = arith.select %14, %342, %321 : vector<8x32xi1>, vector<8x32xf32>
    %cst_111 = arith.constant 0.000000e+00 : f32
    %347 = vector.broadcast %cst_111 : f32 to vector<8x32xf32>
    %348 = arith.select %14, %344, %347 : vector<8x32xi1>, vector<8x32xf32>
    %c24_112 = arith.constant 24 : index
    %c0_113 = arith.constant 0 : index
    %349 = vector.load %arg20[%c24_112, %c0_113] : memref<64x32xf32, #tpu.memory_space<vmem>>, vector<8x32xf32>
    tpu.vector_store %arg20[%c24_112, %c0_113], %348 {strides = array<i32>} : memref<64x32xf32, #tpu.memory_space<vmem>>, vector<8x32xf32>,
    %c32_114 = arith.constant 32 : index
    %c0_115 = arith.constant 0 : index
    %350 = vector.load %arg19[%c32_114, %c0_115] : memref<64x128xf32, #tpu.memory_space<vmem>>, vector<8x128xf32>
    %351 = arith.truncf %345 : vector<8x32xf32> to vector<8x32xbf16>
    %cst_116 = arith.constant dense<0.000000e+00> : vector<8x128xf32>
    %352 = tpu.matmul %351, %241, %cst_116 {dimension_numbers = #tpu.dot_dimension_numbers<[1], [0], [0], [1], [0, 0, 1, 1], [], []>} : vector<8x32xbf16>, vector<32x128xbf16>, vector<8x128xf32> -> vector<8x128xf32>
    %353 = arith.addf %350, %352 : vector<8x128xf32>
    %354 = math.tanh %353 : vector<8x128xf32>
    %355 = arith.negf %353 : vector<8x128xf32>
    %356 = math.exp %355 : vector<8x128xf32>
    %cst_117 = arith.constant 1.000000e+00 : f32
    %357 = vector.broadcast %cst_117 : f32 to vector<8x128xf32>
    %358 = arith.addf %357, %356 : vector<8x128xf32>
    %359 = arith.divf %357, %358 : vector<8x128xf32>
    %360 = arith.select %28, %354, %359 : vector<8x128xi1>, vector<8x128xf32>
    %361 = vector.extract_strided_slice %360 {offsets = [0, 0], sizes = [8, 32], strides = [1, 1]} : vector<8x128xf32> to vector<8x32xf32>
    %362 = vector.extract_strided_slice %360 {offsets = [0, 32], sizes = [8, 32], strides = [1, 1]} : vector<8x128xf32> to vector<8x32xf32>
    %363 = vector.extract_strided_slice %360 {offsets = [0, 64], sizes = [8, 32], strides = [1, 1]} : vector<8x128xf32> to vector<8x32xf32>
    %364 = vector.extract_strided_slice %360 {offsets = [0, 96], sizes = [8, 32], strides = [1, 1]} : vector<8x128xf32> to vector<8x32xf32>
    %365 = arith.mulf %362, %346 : vector<8x32xf32>
    %366 = arith.mulf %361, %363 : vector<8x32xf32>
    %367 = arith.addf %365, %366 : vector<8x32xf32>
    %368 = math.tanh %367 : vector<8x32xf32>
    %369 = arith.mulf %364, %368 : vector<8x32xf32>
    %370 = arith.select %16, %369, %345 : vector<8x32xi1>, vector<8x32xf32>
    %371 = arith.select %16, %367, %346 : vector<8x32xi1>, vector<8x32xf32>
    %cst_118 = arith.constant 0.000000e+00 : f32
    %372 = vector.broadcast %cst_118 : f32 to vector<8x32xf32>
    %373 = arith.select %16, %369, %372 : vector<8x32xi1>, vector<8x32xf32>
    %c32_119 = arith.constant 32 : index
    %c0_120 = arith.constant 0 : index
    %374 = vector.load %arg20[%c32_119, %c0_120] : memref<64x32xf32, #tpu.memory_space<vmem>>, vector<8x32xf32>
    tpu.vector_store %arg20[%c32_119, %c0_120], %373 {strides = array<i32>} : memref<64x32xf32, #tpu.memory_space<vmem>>, vector<8x32xf32>,
    %c40_121 = arith.constant 40 : index
    %c0_122 = arith.constant 0 : index
    %375 = vector.load %arg19[%c40_121, %c0_122] : memref<64x128xf32, #tpu.memory_space<vmem>>, vector<8x128xf32>
    %376 = arith.truncf %370 : vector<8x32xf32> to vector<8x32xbf16>
    %cst_123 = arith.constant dense<0.000000e+00> : vector<8x128xf32>
    %377 = tpu.matmul %376, %241, %cst_123 {dimension_numbers = #tpu.dot_dimension_numbers<[1], [0], [0], [1], [0, 0, 1, 1], [], []>} : vector<8x32xbf16>, vector<32x128xbf16>, vector<8x128xf32> -> vector<8x128xf32>
    %378 = arith.addf %375, %377 : vector<8x128xf32>
    %379 = math.tanh %378 : vector<8x128xf32>
    %380 = arith.negf %378 : vector<8x128xf32>
    %381 = math.exp %380 : vector<8x128xf32>
    %cst_124 = arith.constant 1.000000e+00 : f32
    %382 = vector.broadcast %cst_124 : f32 to vector<8x128xf32>
    %383 = arith.addf %382, %381 : vector<8x128xf32>
    %384 = arith.divf %382, %383 : vector<8x128xf32>
    %385 = arith.select %28, %379, %384 : vector<8x128xi1>, vector<8x128xf32>
    %386 = vector.extract_strided_slice %385 {offsets = [0, 0], sizes = [8, 32], strides = [1, 1]} : vector<8x128xf32> to vector<8x32xf32>
    %387 = vector.extract_strided_slice %385 {offsets = [0, 32], sizes = [8, 32], strides = [1, 1]} : vector<8x128xf32> to vector<8x32xf32>
    %388 = vector.extract_strided_slice %385 {offsets = [0, 64], sizes = [8, 32], strides = [1, 1]} : vector<8x128xf32> to vector<8x32xf32>
    %389 = vector.extract_strided_slice %385 {offsets = [0, 96], sizes = [8, 32], strides = [1, 1]} : vector<8x128xf32> to vector<8x32xf32>
    %390 = arith.mulf %387, %371 : vector<8x32xf32>
    %391 = arith.mulf %386, %388 : vector<8x32xf32>
    %392 = arith.addf %390, %391 : vector<8x32xf32>
    %393 = math.tanh %392 : vector<8x32xf32>
    %394 = arith.mulf %389, %393 : vector<8x32xf32>
    %395 = arith.select %18, %394, %370 : vector<8x32xi1>, vector<8x32xf32>
    %396 = arith.select %18, %392, %371 : vector<8x32xi1>, vector<8x32xf32>
    %cst_125 = arith.constant 0.000000e+00 : f32
    %397 = vector.broadcast %cst_125 : f32 to vector<8x32xf32>
    %398 = arith.select %18, %394, %397 : vector<8x32xi1>, vector<8x32xf32>
    %c40_126 = arith.constant 40 : index
    %c0_127 = arith.constant 0 : index
    %399 = vector.load %arg20[%c40_126, %c0_127] : memref<64x32xf32, #tpu.memory_space<vmem>>, vector<8x32xf32>
    tpu.vector_store %arg20[%c40_126, %c0_127], %398 {strides = array<i32>} : memref<64x32xf32, #tpu.memory_space<vmem>>, vector<8x32xf32>,
    %c48_128 = arith.constant 48 : index
    %c0_129 = arith.constant 0 : index
    %400 = vector.load %arg19[%c48_128, %c0_129] : memref<64x128xf32, #tpu.memory_space<vmem>>, vector<8x128xf32>
    %401 = arith.truncf %395 : vector<8x32xf32> to vector<8x32xbf16>
    %cst_130 = arith.constant dense<0.000000e+00> : vector<8x128xf32>
    %402 = tpu.matmul %401, %241, %cst_130 {dimension_numbers = #tpu.dot_dimension_numbers<[1], [0], [0], [1], [0, 0, 1, 1], [], []>} : vector<8x32xbf16>, vector<32x128xbf16>, vector<8x128xf32> -> vector<8x128xf32>
    %403 = arith.addf %400, %402 : vector<8x128xf32>
    %404 = math.tanh %403 : vector<8x128xf32>
    %405 = arith.negf %403 : vector<8x128xf32>
    %406 = math.exp %405 : vector<8x128xf32>
    %cst_131 = arith.constant 1.000000e+00 : f32
    %407 = vector.broadcast %cst_131 : f32 to vector<8x128xf32>
    %408 = arith.addf %407, %406 : vector<8x128xf32>
    %409 = arith.divf %407, %408 : vector<8x128xf32>
    %410 = arith.select %28, %404, %409 : vector<8x128xi1>, vector<8x128xf32>
    %411 = vector.extract_strided_slice %410 {offsets = [0, 0], sizes = [8, 32], strides = [1, 1]} : vector<8x128xf32> to vector<8x32xf32>
    %412 = vector.extract_strided_slice %410 {offsets = [0, 32], sizes = [8, 32], strides = [1, 1]} : vector<8x128xf32> to vector<8x32xf32>
    %413 = vector.extract_strided_slice %410 {offsets = [0, 64], sizes = [8, 32], strides = [1, 1]} : vector<8x128xf32> to vector<8x32xf32>
    %414 = vector.extract_strided_slice %410 {offsets = [0, 96], sizes = [8, 32], strides = [1, 1]} : vector<8x128xf32> to vector<8x32xf32>
    %415 = arith.mulf %412, %396 : vector<8x32xf32>
    %416 = arith.mulf %411, %413 : vector<8x32xf32>
    %417 = arith.addf %415, %416 : vector<8x32xf32>
    %418 = math.tanh %417 : vector<8x32xf32>
    %419 = arith.mulf %414, %418 : vector<8x32xf32>
    %420 = arith.select %20, %419, %395 : vector<8x32xi1>, vector<8x32xf32>
    %421 = arith.select %20, %417, %396 : vector<8x32xi1>, vector<8x32xf32>
    %cst_132 = arith.constant 0.000000e+00 : f32
    %422 = vector.broadcast %cst_132 : f32 to vector<8x32xf32>
    %423 = arith.select %20, %419, %422 : vector<8x32xi1>, vector<8x32xf32>
    %c48_133 = arith.constant 48 : index
    %c0_134 = arith.constant 0 : index
    %424 = vector.load %arg20[%c48_133, %c0_134] : memref<64x32xf32, #tpu.memory_space<vmem>>, vector<8x32xf32>
    tpu.vector_store %arg20[%c48_133, %c0_134], %423 {strides = array<i32>} : memref<64x32xf32, #tpu.memory_space<vmem>>, vector<8x32xf32>,
    %c56_135 = arith.constant 56 : index
    %c0_136 = arith.constant 0 : index
    %425 = vector.load %arg19[%c56_135, %c0_136] : memref<64x128xf32, #tpu.memory_space<vmem>>, vector<8x128xf32>
    %426 = arith.truncf %420 : vector<8x32xf32> to vector<8x32xbf16>
    %cst_137 = arith.constant dense<0.000000e+00> : vector<8x128xf32>
    %427 = tpu.matmul %426, %241, %cst_137 {dimension_numbers = #tpu.dot_dimension_numbers<[1], [0], [0], [1], [0, 0, 1, 1], [], []>} : vector<8x32xbf16>, vector<32x128xbf16>, vector<8x128xf32> -> vector<8x128xf32>
    %428 = arith.addf %425, %427 : vector<8x128xf32>
    %429 = math.tanh %428 : vector<8x128xf32>
    %430 = arith.negf %428 : vector<8x128xf32>
    %431 = math.exp %430 : vector<8x128xf32>
    %cst_138 = arith.constant 1.000000e+00 : f32
    %432 = vector.broadcast %cst_138 : f32 to vector<8x128xf32>
    %433 = arith.addf %432, %431 : vector<8x128xf32>
    %434 = arith.divf %432, %433 : vector<8x128xf32>
    %435 = arith.select %28, %429, %434 : vector<8x128xi1>, vector<8x128xf32>
    %436 = vector.extract_strided_slice %435 {offsets = [0, 0], sizes = [8, 32], strides = [1, 1]} : vector<8x128xf32> to vector<8x32xf32>
    %437 = vector.extract_strided_slice %435 {offsets = [0, 32], sizes = [8, 32], strides = [1, 1]} : vector<8x128xf32> to vector<8x32xf32>
    %438 = vector.extract_strided_slice %435 {offsets = [0, 64], sizes = [8, 32], strides = [1, 1]} : vector<8x128xf32> to vector<8x32xf32>
    %439 = vector.extract_strided_slice %435 {offsets = [0, 96], sizes = [8, 32], strides = [1, 1]} : vector<8x128xf32> to vector<8x32xf32>
    %440 = arith.mulf %437, %421 : vector<8x32xf32>
    %441 = arith.mulf %436, %438 : vector<8x32xf32>
    %442 = arith.addf %440, %441 : vector<8x32xf32>
    %443 = math.tanh %442 : vector<8x32xf32>
    %444 = arith.mulf %439, %443 : vector<8x32xf32>
    %445 = arith.select %22, %444, %420 : vector<8x32xi1>, vector<8x32xf32>
    %cst_139 = arith.constant 0.000000e+00 : f32
    %446 = vector.broadcast %cst_139 : f32 to vector<8x32xf32>
    %447 = arith.select %22, %444, %446 : vector<8x32xi1>, vector<8x32xf32>
    %c56_140 = arith.constant 56 : index
    %c0_141 = arith.constant 0 : index
    %448 = vector.load %arg20[%c56_140, %c0_141] : memref<64x32xf32, #tpu.memory_space<vmem>>, vector<8x32xf32>
    tpu.vector_store %arg20[%c56_140, %c0_141], %447 {strides = array<i32>} : memref<64x32xf32, #tpu.memory_space<vmem>>, vector<8x32xf32>,
    %c0_142 = arith.constant 0 : index
    %c0_143 = arith.constant 0 : index
    %449 = vector.load %arg20[%c0_142, %c0_143] : memref<64x32xf32, #tpu.memory_space<vmem>>, vector<64x32xf32>
    %450 = math.absf %449 : vector<64x32xf32>
    %451 = vector.shape_cast %450 : vector<64x32xf32> to vector<8x8x32xf32>
    %cst_144 = arith.constant dense<0.000000e+00> : vector<8x32xf32>
    %452 = vector.multi_reduction <add>, %451, %cst_144 [0] : vector<8x8x32xf32> to vector<8x32xf32>
    %453 = vector.broadcast %4 : vector<8x1xf32> to vector<8x32xf32>
    %454 = arith.mulf %452, %453 : vector<8x32xf32>
    %cst_145 = arith.constant 9.99999997E-7 : f32
    %cst_146 = arith.constant 0.999998986 : f32
    %455 = vector.broadcast %cst_145 : f32 to vector<8x32xf32>
    %456 = arith.maximumf %455, %454 : vector<8x32xf32>
    %457 = vector.broadcast %cst_146 : f32 to vector<8x32xf32>
    %458 = arith.minimumf %457, %456 : vector<8x32xf32>
    %459 = math.log %458 : vector<8x32xf32>
    %cst_147 = arith.constant -2.99573231 : f32
    %460 = vector.broadcast %cst_147 : f32 to vector<8x32xf32>
    %461 = arith.subf %460, %459 : vector<8x32xf32>
    %cst_148 = arith.constant 5.000000e-02 : f32
    %462 = vector.broadcast %cst_148 : f32 to vector<8x32xf32>
    %463 = arith.mulf %462, %461 : vector<8x32xf32>
    %cst_149 = arith.constant 1.000000e+00 : f32
    %464 = vector.broadcast %cst_149 : f32 to vector<8x32xf32>
    %465 = arith.subf %464, %458 : vector<8x32xf32>
    %466 = math.log %465 : vector<8x32xf32>
    %cst_150 = arith.constant -0.0512932949 : f32
    %467 = vector.broadcast %cst_150 : f32 to vector<8x32xf32>
    %468 = arith.subf %467, %466 : vector<8x32xf32>
    %cst_151 = arith.constant 0.949999988 : f32
    %469 = vector.broadcast %cst_151 : f32 to vector<8x32xf32>
    %470 = arith.mulf %469, %468 : vector<8x32xf32>
    %471 = arith.addf %463, %470 : vector<8x32xf32>
    %c8_i32 = arith.constant 8 : i32
    %472 = arith.muli %arg0, %c8_i32 : i32
    %473 = tpu.iota {dimensions = array<i32: 0>} : vector<8x32xi32>
    %474 = vector.broadcast %472 : i32 to vector<8x32xi32>
    %475 = arith.addi %474, %473 : vector<8x32xi32>
    %c4_i32 = arith.constant 4 : i32
    %476 = vector.broadcast %c4_i32 : i32 to vector<8x32xi32>
    %477 = arith.cmpi slt, %475, %476 : vector<8x32xi32>
    %cst_152 = arith.constant 0.000000e+00 : f32
    %478 = vector.broadcast %cst_152 : f32 to vector<8x32xf32>
    %479 = arith.select %477, %471, %478 : vector<8x32xi1>, vector<8x32xf32>
    %480 = vector.shape_cast %479 : vector<8x32xf32> to vector<1x8x32xf32>
    %cst_153 = arith.constant dense<0.000000e+00> : vector<1xf32>
    %481 = vector.multi_reduction <add>, %480, %cst_153 [1, 2] : vector<1x8x32xf32> to vector<1xf32>
    %482 = vector.shape_cast %481 : vector<1xf32> to vector<1x1x1xf32>
    %483 = vector.extract %482[0, 0, 0] : f32 from vector<1x1x1xf32>
    %484 = vector.broadcast %483 : f32 to vector<1x1xf32>
    %cst_154 = arith.constant 0.000000e+00 : f32
    %485 = vector.broadcast %cst_154 : f32 to vector<8x32xf32>
    %486 = arith.select %8, %445, %485 : vector<8x32xi1>, vector<8x32xf32>
    %c0_155 = arith.constant 0 : index
    %c0_156 = arith.constant 0 : index
    %487 = vector.load %arg20[%c0_155, %c0_156] : memref<64x32xf32, #tpu.memory_space<vmem>>, vector<8x32xf32>
    tpu.vector_store %arg20[%c0_155, %c0_156], %486 {strides = array<i32>} : memref<64x32xf32, #tpu.memory_space<vmem>>, vector<8x32xf32>,
    %cst_157 = arith.constant 0.000000e+00 : f32
    %488 = vector.broadcast %cst_157 : f32 to vector<8x32xf32>
    %489 = arith.select %10, %445, %488 : vector<8x32xi1>, vector<8x32xf32>
    %c8_158 = arith.constant 8 : index
    %c0_159 = arith.constant 0 : index
    %490 = vector.load %arg20[%c8_158, %c0_159] : memref<64x32xf32, #tpu.memory_space<vmem>>, vector<8x32xf32>
    tpu.vector_store %arg20[%c8_158, %c0_159], %489 {strides = array<i32>} : memref<64x32xf32, #tpu.memory_space<vmem>>, vector<8x32xf32>,
    %cst_160 = arith.constant 0.000000e+00 : f32
    %491 = vector.broadcast %cst_160 : f32 to vector<8x32xf32>
    %492 = arith.select %12, %445, %491 : vector<8x32xi1>, vector<8x32xf32>
    %c16_161 = arith.constant 16 : index
    %c0_162 = arith.constant 0 : index
    %493 = vector.load %arg20[%c16_161, %c0_162] : memref<64x32xf32, #tpu.memory_space<vmem>>, vector<8x32xf32>
    tpu.vector_store %arg20[%c16_161, %c0_162], %492 {strides = array<i32>} : memref<64x32xf32, #tpu.memory_space<vmem>>, vector<8x32xf32>,
    %cst_163 = arith.constant 0.000000e+00 : f32
    %494 = vector.broadcast %cst_163 : f32 to vector<8x32xf32>
    %495 = arith.select %14, %445, %494 : vector<8x32xi1>, vector<8x32xf32>
    %c24_164 = arith.constant 24 : index
    %c0_165 = arith.constant 0 : index
    %496 = vector.load %arg20[%c24_164, %c0_165] : memref<64x32xf32, #tpu.memory_space<vmem>>, vector<8x32xf32>
    tpu.vector_store %arg20[%c24_164, %c0_165], %495 {strides = array<i32>} : memref<64x32xf32, #tpu.memory_space<vmem>>, vector<8x32xf32>,
    %cst_166 = arith.constant 0.000000e+00 : f32
    %497 = vector.broadcast %cst_166 : f32 to vector<8x32xf32>
    %498 = arith.select %16, %445, %497 : vector<8x32xi1>, vector<8x32xf32>
    %c32_167 = arith.constant 32 : index
    %c0_168 = arith.constant 0 : index
    %499 = vector.load %arg20[%c32_167, %c0_168] : memref<64x32xf32, #tpu.memory_space<vmem>>, vector<8x32xf32>
    tpu.vector_store %arg20[%c32_167, %c0_168], %498 {strides = array<i32>} : memref<64x32xf32, #tpu.memory_space<vmem>>, vector<8x32xf32>,
    %cst_169 = arith.constant 0.000000e+00 : f32
    %500 = vector.broadcast %cst_169 : f32 to vector<8x32xf32>
    %501 = arith.select %18, %445, %500 : vector<8x32xi1>, vector<8x32xf32>
    %c40_170 = arith.constant 40 : index
    %c0_171 = arith.constant 0 : index
    %502 = vector.load %arg20[%c40_170, %c0_171] : memref<64x32xf32, #tpu.memory_space<vmem>>, vector<8x32xf32>
    tpu.vector_store %arg20[%c40_170, %c0_171], %501 {strides = array<i32>} : memref<64x32xf32, #tpu.memory_space<vmem>>, vector<8x32xf32>,
    %cst_172 = arith.constant 0.000000e+00 : f32
    %503 = vector.broadcast %cst_172 : f32 to vector<8x32xf32>
    %504 = arith.select %20, %445, %503 : vector<8x32xi1>, vector<8x32xf32>
    %c48_173 = arith.constant 48 : index
    %c0_174 = arith.constant 0 : index
    %505 = vector.load %arg20[%c48_173, %c0_174] : memref<64x32xf32, #tpu.memory_space<vmem>>, vector<8x32xf32>
    tpu.vector_store %arg20[%c48_173, %c0_174], %504 {strides = array<i32>} : memref<64x32xf32, #tpu.memory_space<vmem>>, vector<8x32xf32>,
    %cst_175 = arith.constant 0.000000e+00 : f32
    %506 = vector.broadcast %cst_175 : f32 to vector<8x32xf32>
    %507 = arith.select %22, %445, %506 : vector<8x32xi1>, vector<8x32xf32>
    %c56_176 = arith.constant 56 : index
    %c0_177 = arith.constant 0 : index
    %508 = vector.load %arg20[%c56_176, %c0_177] : memref<64x32xf32, #tpu.memory_space<vmem>>, vector<8x32xf32>
    tpu.vector_store %arg20[%c56_176, %c0_177], %507 {strides = array<i32>} : memref<64x32xf32, #tpu.memory_space<vmem>>, vector<8x32xf32>,
    %c0_178 = arith.constant 0 : index
    %c0_179 = arith.constant 0 : index
    %509 = vector.load %arg20[%c0_178, %c0_179] : memref<64x32xf32, #tpu.memory_space<vmem>>, vector<64x32xf32>
    %c0_180 = arith.constant 0 : index
    %c0_181 = arith.constant 0 : index
    %510 = vector.load %arg9[%c0_180, %c0_181] : memref<32x128xbf16, #tpu.memory_space<vmem>>, vector<32x128xbf16>
    %c0_182 = arith.constant 0 : index
    %c0_183 = arith.constant 0 : index
    %511 = vector.load %arg10[%c0_182, %c0_183] : memref<32x128xbf16, #tpu.memory_space<vmem>>, vector<32x128xbf16>
    %c0_184 = arith.constant 0 : index
    %c0_185 = arith.constant 0 : index
    %512 = vector.load %arg11[%c0_184, %c0_185] : memref<1x128xf32, #tpu.memory_space<vmem>>, vector<1x128xf32>
    %513 = arith.truncf %509 : vector<64x32xf32> to vector<64x32xbf16>
    %cst_186 = arith.constant dense<0.000000e+00> : vector<64x128xf32>
    %514 = tpu.matmul %513, %510, %cst_186 {dimension_numbers = #tpu.dot_dimension_numbers<[1], [0], [0], [1], [0, 0, 1, 1], [], []>} : vector<64x32xbf16>, vector<32x128xbf16>, vector<64x128xf32> -> vector<64x128xf32>
    %515 = vector.broadcast %512 : vector<1x128xf32> to vector<64x128xf32>
    %516 = arith.addf %514, %515 : vector<64x128xf32>
    %c0_187 = arith.constant 0 : index
    %c0_188 = arith.constant 0 : index
    %517 = vector.load %arg19[%c0_187, %c0_188] : memref<64x128xf32, #tpu.memory_space<vmem>>, vector<64x128xf32>
    tpu.vector_store %arg19[%c0_187, %c0_188], %516 {strides = array<i32>} : memref<64x128xf32, #tpu.memory_space<vmem>>, vector<64x128xf32>,
    %cst_189 = arith.constant 0.000000e+00 : f32
    %518 = vector.broadcast %cst_189 : f32 to vector<8x32xf32>
    %cst_190 = arith.constant 0.000000e+00 : f32
    %519 = vector.broadcast %cst_190 : f32 to vector<8x32xf32>
    %c0_191 = arith.constant 0 : index
    %c0_192 = arith.constant 0 : index
    %520 = vector.load %arg19[%c0_191, %c0_192] : memref<64x128xf32, #tpu.memory_space<vmem>>, vector<8x128xf32>
    %521 = arith.truncf %518 : vector<8x32xf32> to vector<8x32xbf16>
    %cst_193 = arith.constant dense<0.000000e+00> : vector<8x128xf32>
    %522 = tpu.matmul %521, %511, %cst_193 {dimension_numbers = #tpu.dot_dimension_numbers<[1], [0], [0], [1], [0, 0, 1, 1], [], []>} : vector<8x32xbf16>, vector<32x128xbf16>, vector<8x128xf32> -> vector<8x128xf32>
    %523 = arith.addf %520, %522 : vector<8x128xf32>
    %524 = math.tanh %523 : vector<8x128xf32>
    %525 = arith.negf %523 : vector<8x128xf32>
    %526 = math.exp %525 : vector<8x128xf32>
    %cst_194 = arith.constant 1.000000e+00 : f32
    %527 = vector.broadcast %cst_194 : f32 to vector<8x128xf32>
    %528 = arith.addf %527, %526 : vector<8x128xf32>
    %529 = arith.divf %527, %528 : vector<8x128xf32>
    %530 = arith.select %28, %524, %529 : vector<8x128xi1>, vector<8x128xf32>
    %531 = vector.extract_strided_slice %530 {offsets = [0, 0], sizes = [8, 32], strides = [1, 1]} : vector<8x128xf32> to vector<8x32xf32>
    %532 = vector.extract_strided_slice %530 {offsets = [0, 32], sizes = [8, 32], strides = [1, 1]} : vector<8x128xf32> to vector<8x32xf32>
    %533 = vector.extract_strided_slice %530 {offsets = [0, 64], sizes = [8, 32], strides = [1, 1]} : vector<8x128xf32> to vector<8x32xf32>
    %534 = vector.extract_strided_slice %530 {offsets = [0, 96], sizes = [8, 32], strides = [1, 1]} : vector<8x128xf32> to vector<8x32xf32>
    %535 = arith.mulf %532, %519 : vector<8x32xf32>
    %536 = arith.mulf %531, %533 : vector<8x32xf32>
    %537 = arith.addf %535, %536 : vector<8x32xf32>
    %538 = math.tanh %537 : vector<8x32xf32>
    %539 = arith.mulf %534, %538 : vector<8x32xf32>
    %540 = arith.select %8, %539, %518 : vector<8x32xi1>, vector<8x32xf32>
    %541 = arith.select %8, %537, %519 : vector<8x32xi1>, vector<8x32xf32>
    %cst_195 = arith.constant 0.000000e+00 : f32
    %542 = vector.broadcast %cst_195 : f32 to vector<8x32xf32>
    %543 = arith.select %8, %539, %542 : vector<8x32xi1>, vector<8x32xf32>
    %c0_196 = arith.constant 0 : index
    %c0_197 = arith.constant 0 : index
    %544 = vector.load %arg20[%c0_196, %c0_197] : memref<64x32xf32, #tpu.memory_space<vmem>>, vector<8x32xf32>
    tpu.vector_store %arg20[%c0_196, %c0_197], %543 {strides = array<i32>} : memref<64x32xf32, #tpu.memory_space<vmem>>, vector<8x32xf32>,
    %c8_198 = arith.constant 8 : index
    %c0_199 = arith.constant 0 : index
    %545 = vector.load %arg19[%c8_198, %c0_199] : memref<64x128xf32, #tpu.memory_space<vmem>>, vector<8x128xf32>
    %546 = arith.truncf %540 : vector<8x32xf32> to vector<8x32xbf16>
    %cst_200 = arith.constant dense<0.000000e+00> : vector<8x128xf32>
    %547 = tpu.matmul %546, %511, %cst_200 {dimension_numbers = #tpu.dot_dimension_numbers<[1], [0], [0], [1], [0, 0, 1, 1], [], []>} : vector<8x32xbf16>, vector<32x128xbf16>, vector<8x128xf32> -> vector<8x128xf32>
    %548 = arith.addf %545, %547 : vector<8x128xf32>
    %549 = math.tanh %548 : vector<8x128xf32>
    %550 = arith.negf %548 : vector<8x128xf32>
    %551 = math.exp %550 : vector<8x128xf32>
    %cst_201 = arith.constant 1.000000e+00 : f32
    %552 = vector.broadcast %cst_201 : f32 to vector<8x128xf32>
    %553 = arith.addf %552, %551 : vector<8x128xf32>
    %554 = arith.divf %552, %553 : vector<8x128xf32>
    %555 = arith.select %28, %549, %554 : vector<8x128xi1>, vector<8x128xf32>
    %556 = vector.extract_strided_slice %555 {offsets = [0, 0], sizes = [8, 32], strides = [1, 1]} : vector<8x128xf32> to vector<8x32xf32>
    %557 = vector.extract_strided_slice %555 {offsets = [0, 32], sizes = [8, 32], strides = [1, 1]} : vector<8x128xf32> to vector<8x32xf32>
    %558 = vector.extract_strided_slice %555 {offsets = [0, 64], sizes = [8, 32], strides = [1, 1]} : vector<8x128xf32> to vector<8x32xf32>
    %559 = vector.extract_strided_slice %555 {offsets = [0, 96], sizes = [8, 32], strides = [1, 1]} : vector<8x128xf32> to vector<8x32xf32>
    %560 = arith.mulf %557, %541 : vector<8x32xf32>
    %561 = arith.mulf %556, %558 : vector<8x32xf32>
    %562 = arith.addf %560, %561 : vector<8x32xf32>
    %563 = math.tanh %562 : vector<8x32xf32>
    %564 = arith.mulf %559, %563 : vector<8x32xf32>
    %565 = arith.select %10, %564, %540 : vector<8x32xi1>, vector<8x32xf32>
    %566 = arith.select %10, %562, %541 : vector<8x32xi1>, vector<8x32xf32>
    %cst_202 = arith.constant 0.000000e+00 : f32
    %567 = vector.broadcast %cst_202 : f32 to vector<8x32xf32>
    %568 = arith.select %10, %564, %567 : vector<8x32xi1>, vector<8x32xf32>
    %c8_203 = arith.constant 8 : index
    %c0_204 = arith.constant 0 : index
    %569 = vector.load %arg20[%c8_203, %c0_204] : memref<64x32xf32, #tpu.memory_space<vmem>>, vector<8x32xf32>
    tpu.vector_store %arg20[%c8_203, %c0_204], %568 {strides = array<i32>} : memref<64x32xf32, #tpu.memory_space<vmem>>, vector<8x32xf32>,
    %c16_205 = arith.constant 16 : index
    %c0_206 = arith.constant 0 : index
    %570 = vector.load %arg19[%c16_205, %c0_206] : memref<64x128xf32, #tpu.memory_space<vmem>>, vector<8x128xf32>
    %571 = arith.truncf %565 : vector<8x32xf32> to vector<8x32xbf16>
    %cst_207 = arith.constant dense<0.000000e+00> : vector<8x128xf32>
    %572 = tpu.matmul %571, %511, %cst_207 {dimension_numbers = #tpu.dot_dimension_numbers<[1], [0], [0], [1], [0, 0, 1, 1], [], []>} : vector<8x32xbf16>, vector<32x128xbf16>, vector<8x128xf32> -> vector<8x128xf32>
    %573 = arith.addf %570, %572 : vector<8x128xf32>
    %574 = math.tanh %573 : vector<8x128xf32>
    %575 = arith.negf %573 : vector<8x128xf32>
    %576 = math.exp %575 : vector<8x128xf32>
    %cst_208 = arith.constant 1.000000e+00 : f32
    %577 = vector.broadcast %cst_208 : f32 to vector<8x128xf32>
    %578 = arith.addf %577, %576 : vector<8x128xf32>
    %579 = arith.divf %577, %578 : vector<8x128xf32>
    %580 = arith.select %28, %574, %579 : vector<8x128xi1>, vector<8x128xf32>
    %581 = vector.extract_strided_slice %580 {offsets = [0, 0], sizes = [8, 32], strides = [1, 1]} : vector<8x128xf32> to vector<8x32xf32>
    %582 = vector.extract_strided_slice %580 {offsets = [0, 32], sizes = [8, 32], strides = [1, 1]} : vector<8x128xf32> to vector<8x32xf32>
    %583 = vector.extract_strided_slice %580 {offsets = [0, 64], sizes = [8, 32], strides = [1, 1]} : vector<8x128xf32> to vector<8x32xf32>
    %584 = vector.extract_strided_slice %580 {offsets = [0, 96], sizes = [8, 32], strides = [1, 1]} : vector<8x128xf32> to vector<8x32xf32>
    %585 = arith.mulf %582, %566 : vector<8x32xf32>
    %586 = arith.mulf %581, %583 : vector<8x32xf32>
    %587 = arith.addf %585, %586 : vector<8x32xf32>
    %588 = math.tanh %587 : vector<8x32xf32>
    %589 = arith.mulf %584, %588 : vector<8x32xf32>
    %590 = arith.select %12, %589, %565 : vector<8x32xi1>, vector<8x32xf32>
    %591 = arith.select %12, %587, %566 : vector<8x32xi1>, vector<8x32xf32>
    %cst_209 = arith.constant 0.000000e+00 : f32
    %592 = vector.broadcast %cst_209 : f32 to vector<8x32xf32>
    %593 = arith.select %12, %589, %592 : vector<8x32xi1>, vector<8x32xf32>
    %c16_210 = arith.constant 16 : index
    %c0_211 = arith.constant 0 : index
    %594 = vector.load %arg20[%c16_210, %c0_211] : memref<64x32xf32, #tpu.memory_space<vmem>>, vector<8x32xf32>
    tpu.vector_store %arg20[%c16_210, %c0_211], %593 {strides = array<i32>} : memref<64x32xf32, #tpu.memory_space<vmem>>, vector<8x32xf32>,
    %c24_212 = arith.constant 24 : index
    %c0_213 = arith.constant 0 : index
    %595 = vector.load %arg19[%c24_212, %c0_213] : memref<64x128xf32, #tpu.memory_space<vmem>>, vector<8x128xf32>
    %596 = arith.truncf %590 : vector<8x32xf32> to vector<8x32xbf16>
    %cst_214 = arith.constant dense<0.000000e+00> : vector<8x128xf32>
    %597 = tpu.matmul %596, %511, %cst_214 {dimension_numbers = #tpu.dot_dimension_numbers<[1], [0], [0], [1], [0, 0, 1, 1], [], []>} : vector<8x32xbf16>, vector<32x128xbf16>, vector<8x128xf32> -> vector<8x128xf32>
    %598 = arith.addf %595, %597 : vector<8x128xf32>
    %599 = math.tanh %598 : vector<8x128xf32>
    %600 = arith.negf %598 : vector<8x128xf32>
    %601 = math.exp %600 : vector<8x128xf32>
    %cst_215 = arith.constant 1.000000e+00 : f32
    %602 = vector.broadcast %cst_215 : f32 to vector<8x128xf32>
    %603 = arith.addf %602, %601 : vector<8x128xf32>
    %604 = arith.divf %602, %603 : vector<8x128xf32>
    %605 = arith.select %28, %599, %604 : vector<8x128xi1>, vector<8x128xf32>
    %606 = vector.extract_strided_slice %605 {offsets = [0, 0], sizes = [8, 32], strides = [1, 1]} : vector<8x128xf32> to vector<8x32xf32>
    %607 = vector.extract_strided_slice %605 {offsets = [0, 32], sizes = [8, 32], strides = [1, 1]} : vector<8x128xf32> to vector<8x32xf32>
    %608 = vector.extract_strided_slice %605 {offsets = [0, 64], sizes = [8, 32], strides = [1, 1]} : vector<8x128xf32> to vector<8x32xf32>
    %609 = vector.extract_strided_slice %605 {offsets = [0, 96], sizes = [8, 32], strides = [1, 1]} : vector<8x128xf32> to vector<8x32xf32>
    %610 = arith.mulf %607, %591 : vector<8x32xf32>
    %611 = arith.mulf %606, %608 : vector<8x32xf32>
    %612 = arith.addf %610, %611 : vector<8x32xf32>
    %613 = math.tanh %612 : vector<8x32xf32>
    %614 = arith.mulf %609, %613 : vector<8x32xf32>
    %615 = arith.select %14, %614, %590 : vector<8x32xi1>, vector<8x32xf32>
    %616 = arith.select %14, %612, %591 : vector<8x32xi1>, vector<8x32xf32>
    %cst_216 = arith.constant 0.000000e+00 : f32
    %617 = vector.broadcast %cst_216 : f32 to vector<8x32xf32>
    %618 = arith.select %14, %614, %617 : vector<8x32xi1>, vector<8x32xf32>
    %c24_217 = arith.constant 24 : index
    %c0_218 = arith.constant 0 : index
    %619 = vector.load %arg20[%c24_217, %c0_218] : memref<64x32xf32, #tpu.memory_space<vmem>>, vector<8x32xf32>
    tpu.vector_store %arg20[%c24_217, %c0_218], %618 {strides = array<i32>} : memref<64x32xf32, #tpu.memory_space<vmem>>, vector<8x32xf32>,
    %c32_219 = arith.constant 32 : index
    %c0_220 = arith.constant 0 : index
    %620 = vector.load %arg19[%c32_219, %c0_220] : memref<64x128xf32, #tpu.memory_space<vmem>>, vector<8x128xf32>
    %621 = arith.truncf %615 : vector<8x32xf32> to vector<8x32xbf16>
    %cst_221 = arith.constant dense<0.000000e+00> : vector<8x128xf32>
    %622 = tpu.matmul %621, %511, %cst_221 {dimension_numbers = #tpu.dot_dimension_numbers<[1], [0], [0], [1], [0, 0, 1, 1], [], []>} : vector<8x32xbf16>, vector<32x128xbf16>, vector<8x128xf32> -> vector<8x128xf32>
    %623 = arith.addf %620, %622 : vector<8x128xf32>
    %624 = math.tanh %623 : vector<8x128xf32>
    %625 = arith.negf %623 : vector<8x128xf32>
    %626 = math.exp %625 : vector<8x128xf32>
    %cst_222 = arith.constant 1.000000e+00 : f32
    %627 = vector.broadcast %cst_222 : f32 to vector<8x128xf32>
    %628 = arith.addf %627, %626 : vector<8x128xf32>
    %629 = arith.divf %627, %628 : vector<8x128xf32>
    %630 = arith.select %28, %624, %629 : vector<8x128xi1>, vector<8x128xf32>
    %631 = vector.extract_strided_slice %630 {offsets = [0, 0], sizes = [8, 32], strides = [1, 1]} : vector<8x128xf32> to vector<8x32xf32>
    %632 = vector.extract_strided_slice %630 {offsets = [0, 32], sizes = [8, 32], strides = [1, 1]} : vector<8x128xf32> to vector<8x32xf32>
    %633 = vector.extract_strided_slice %630 {offsets = [0, 64], sizes = [8, 32], strides = [1, 1]} : vector<8x128xf32> to vector<8x32xf32>
    %634 = vector.extract_strided_slice %630 {offsets = [0, 96], sizes = [8, 32], strides = [1, 1]} : vector<8x128xf32> to vector<8x32xf32>
    %635 = arith.mulf %632, %616 : vector<8x32xf32>
    %636 = arith.mulf %631, %633 : vector<8x32xf32>
    %637 = arith.addf %635, %636 : vector<8x32xf32>
    %638 = math.tanh %637 : vector<8x32xf32>
    %639 = arith.mulf %634, %638 : vector<8x32xf32>
    %640 = arith.select %16, %639, %615 : vector<8x32xi1>, vector<8x32xf32>
    %641 = arith.select %16, %637, %616 : vector<8x32xi1>, vector<8x32xf32>
    %cst_223 = arith.constant 0.000000e+00 : f32
    %642 = vector.broadcast %cst_223 : f32 to vector<8x32xf32>
    %643 = arith.select %16, %639, %642 : vector<8x32xi1>, vector<8x32xf32>
    %c32_224 = arith.constant 32 : index
    %c0_225 = arith.constant 0 : index
    %644 = vector.load %arg20[%c32_224, %c0_225] : memref<64x32xf32, #tpu.memory_space<vmem>>, vector<8x32xf32>
    tpu.vector_store %arg20[%c32_224, %c0_225], %643 {strides = array<i32>} : memref<64x32xf32, #tpu.memory_space<vmem>>, vector<8x32xf32>,
    %c40_226 = arith.constant 40 : index
    %c0_227 = arith.constant 0 : index
    %645 = vector.load %arg19[%c40_226, %c0_227] : memref<64x128xf32, #tpu.memory_space<vmem>>, vector<8x128xf32>
    %646 = arith.truncf %640 : vector<8x32xf32> to vector<8x32xbf16>
    %cst_228 = arith.constant dense<0.000000e+00> : vector<8x128xf32>
    %647 = tpu.matmul %646, %511, %cst_228 {dimension_numbers = #tpu.dot_dimension_numbers<[1], [0], [0], [1], [0, 0, 1, 1], [], []>} : vector<8x32xbf16>, vector<32x128xbf16>, vector<8x128xf32> -> vector<8x128xf32>
    %648 = arith.addf %645, %647 : vector<8x128xf32>
    %649 = math.tanh %648 : vector<8x128xf32>
    %650 = arith.negf %648 : vector<8x128xf32>
    %651 = math.exp %650 : vector<8x128xf32>
    %cst_229 = arith.constant 1.000000e+00 : f32
    %652 = vector.broadcast %cst_229 : f32 to vector<8x128xf32>
    %653 = arith.addf %652, %651 : vector<8x128xf32>
    %654 = arith.divf %652, %653 : vector<8x128xf32>
    %655 = arith.select %28, %649, %654 : vector<8x128xi1>, vector<8x128xf32>
    %656 = vector.extract_strided_slice %655 {offsets = [0, 0], sizes = [8, 32], strides = [1, 1]} : vector<8x128xf32> to vector<8x32xf32>
    %657 = vector.extract_strided_slice %655 {offsets = [0, 32], sizes = [8, 32], strides = [1, 1]} : vector<8x128xf32> to vector<8x32xf32>
    %658 = vector.extract_strided_slice %655 {offsets = [0, 64], sizes = [8, 32], strides = [1, 1]} : vector<8x128xf32> to vector<8x32xf32>
    %659 = vector.extract_strided_slice %655 {offsets = [0, 96], sizes = [8, 32], strides = [1, 1]} : vector<8x128xf32> to vector<8x32xf32>
    %660 = arith.mulf %657, %641 : vector<8x32xf32>
    %661 = arith.mulf %656, %658 : vector<8x32xf32>
    %662 = arith.addf %660, %661 : vector<8x32xf32>
    %663 = math.tanh %662 : vector<8x32xf32>
    %664 = arith.mulf %659, %663 : vector<8x32xf32>
    %665 = arith.select %18, %664, %640 : vector<8x32xi1>, vector<8x32xf32>
    %666 = arith.select %18, %662, %641 : vector<8x32xi1>, vector<8x32xf32>
    %cst_230 = arith.constant 0.000000e+00 : f32
    %667 = vector.broadcast %cst_230 : f32 to vector<8x32xf32>
    %668 = arith.select %18, %664, %667 : vector<8x32xi1>, vector<8x32xf32>
    %c40_231 = arith.constant 40 : index
    %c0_232 = arith.constant 0 : index
    %669 = vector.load %arg20[%c40_231, %c0_232] : memref<64x32xf32, #tpu.memory_space<vmem>>, vector<8x32xf32>
    tpu.vector_store %arg20[%c40_231, %c0_232], %668 {strides = array<i32>} : memref<64x32xf32, #tpu.memory_space<vmem>>, vector<8x32xf32>,
    %c48_233 = arith.constant 48 : index
    %c0_234 = arith.constant 0 : index
    %670 = vector.load %arg19[%c48_233, %c0_234] : memref<64x128xf32, #tpu.memory_space<vmem>>, vector<8x128xf32>
    %671 = arith.truncf %665 : vector<8x32xf32> to vector<8x32xbf16>
    %cst_235 = arith.constant dense<0.000000e+00> : vector<8x128xf32>
    %672 = tpu.matmul %671, %511, %cst_235 {dimension_numbers = #tpu.dot_dimension_numbers<[1], [0], [0], [1], [0, 0, 1, 1], [], []>} : vector<8x32xbf16>, vector<32x128xbf16>, vector<8x128xf32> -> vector<8x128xf32>
    %673 = arith.addf %670, %672 : vector<8x128xf32>
    %674 = math.tanh %673 : vector<8x128xf32>
    %675 = arith.negf %673 : vector<8x128xf32>
    %676 = math.exp %675 : vector<8x128xf32>
    %cst_236 = arith.constant 1.000000e+00 : f32
    %677 = vector.broadcast %cst_236 : f32 to vector<8x128xf32>
    %678 = arith.addf %677, %676 : vector<8x128xf32>
    %679 = arith.divf %677, %678 : vector<8x128xf32>
    %680 = arith.select %28, %674, %679 : vector<8x128xi1>, vector<8x128xf32>
    %681 = vector.extract_strided_slice %680 {offsets = [0, 0], sizes = [8, 32], strides = [1, 1]} : vector<8x128xf32> to vector<8x32xf32>
    %682 = vector.extract_strided_slice %680 {offsets = [0, 32], sizes = [8, 32], strides = [1, 1]} : vector<8x128xf32> to vector<8x32xf32>
    %683 = vector.extract_strided_slice %680 {offsets = [0, 64], sizes = [8, 32], strides = [1, 1]} : vector<8x128xf32> to vector<8x32xf32>
    %684 = vector.extract_strided_slice %680 {offsets = [0, 96], sizes = [8, 32], strides = [1, 1]} : vector<8x128xf32> to vector<8x32xf32>
    %685 = arith.mulf %682, %666 : vector<8x32xf32>
    %686 = arith.mulf %681, %683 : vector<8x32xf32>
    %687 = arith.addf %685, %686 : vector<8x32xf32>
    %688 = math.tanh %687 : vector<8x32xf32>
    %689 = arith.mulf %684, %688 : vector<8x32xf32>
    %690 = arith.select %20, %689, %665 : vector<8x32xi1>, vector<8x32xf32>
    %691 = arith.select %20, %687, %666 : vector<8x32xi1>, vector<8x32xf32>
    %cst_237 = arith.constant 0.000000e+00 : f32
    %692 = vector.broadcast %cst_237 : f32 to vector<8x32xf32>
    %693 = arith.select %20, %689, %692 : vector<8x32xi1>, vector<8x32xf32>
    %c48_238 = arith.constant 48 : index
    %c0_239 = arith.constant 0 : index
    %694 = vector.load %arg20[%c48_238, %c0_239] : memref<64x32xf32, #tpu.memory_space<vmem>>, vector<8x32xf32>
    tpu.vector_store %arg20[%c48_238, %c0_239], %693 {strides = array<i32>} : memref<64x32xf32, #tpu.memory_space<vmem>>, vector<8x32xf32>,
    %c56_240 = arith.constant 56 : index
    %c0_241 = arith.constant 0 : index
    %695 = vector.load %arg19[%c56_240, %c0_241] : memref<64x128xf32, #tpu.memory_space<vmem>>, vector<8x128xf32>
    %696 = arith.truncf %690 : vector<8x32xf32> to vector<8x32xbf16>
    %cst_242 = arith.constant dense<0.000000e+00> : vector<8x128xf32>
    %697 = tpu.matmul %696, %511, %cst_242 {dimension_numbers = #tpu.dot_dimension_numbers<[1], [0], [0], [1], [0, 0, 1, 1], [], []>} : vector<8x32xbf16>, vector<32x128xbf16>, vector<8x128xf32> -> vector<8x128xf32>
    %698 = arith.addf %695, %697 : vector<8x128xf32>
    %699 = math.tanh %698 : vector<8x128xf32>
    %700 = arith.negf %698 : vector<8x128xf32>
    %701 = math.exp %700 : vector<8x128xf32>
    %cst_243 = arith.constant 1.000000e+00 : f32
    %702 = vector.broadcast %cst_243 : f32 to vector<8x128xf32>
    %703 = arith.addf %702, %701 : vector<8x128xf32>
    %704 = arith.divf %702, %703 : vector<8x128xf32>
    %705 = arith.select %28, %699, %704 : vector<8x128xi1>, vector<8x128xf32>
    %706 = vector.extract_strided_slice %705 {offsets = [0, 0], sizes = [8, 32], strides = [1, 1]} : vector<8x128xf32> to vector<8x32xf32>
    %707 = vector.extract_strided_slice %705 {offsets = [0, 32], sizes = [8, 32], strides = [1, 1]} : vector<8x128xf32> to vector<8x32xf32>
    %708 = vector.extract_strided_slice %705 {offsets = [0, 64], sizes = [8, 32], strides = [1, 1]} : vector<8x128xf32> to vector<8x32xf32>
    %709 = vector.extract_strided_slice %705 {offsets = [0, 96], sizes = [8, 32], strides = [1, 1]} : vector<8x128xf32> to vector<8x32xf32>
    %710 = arith.mulf %707, %691 : vector<8x32xf32>
    %711 = arith.mulf %706, %708 : vector<8x32xf32>
    %712 = arith.addf %710, %711 : vector<8x32xf32>
    %713 = math.tanh %712 : vector<8x32xf32>
    %714 = arith.mulf %709, %713 : vector<8x32xf32>
    %cst_244 = arith.constant 0.000000e+00 : f32
    %715 = vector.broadcast %cst_244 : f32 to vector<8x32xf32>
    %716 = arith.select %22, %714, %715 : vector<8x32xi1>, vector<8x32xf32>
    %c56_245 = arith.constant 56 : index
    %c0_246 = arith.constant 0 : index
    %717 = vector.load %arg20[%c56_245, %c0_246] : memref<64x32xf32, #tpu.memory_space<vmem>>, vector<8x32xf32>
    tpu.vector_store %arg20[%c56_245, %c0_246], %716 {strides = array<i32>} : memref<64x32xf32, #tpu.memory_space<vmem>>, vector<8x32xf32>,
    %c0_247 = arith.constant 0 : index
    %c0_248 = arith.constant 0 : index
    %718 = vector.load %arg20[%c0_247, %c0_248] : memref<64x32xf32, #tpu.memory_space<vmem>>, vector<64x32xf32>
    %c0_249 = arith.constant 0 : index
    %c0_250 = arith.constant 0 : index
    %719 = vector.load %arg12[%c0_249, %c0_250] : memref<32x128xbf16, #tpu.memory_space<vmem>>, vector<32x128xbf16>
    %c0_251 = arith.constant 0 : index
    %c0_252 = arith.constant 0 : index
    %720 = vector.load %arg13[%c0_251, %c0_252] : memref<32x128xbf16, #tpu.memory_space<vmem>>, vector<32x128xbf16>
    %c0_253 = arith.constant 0 : index
    %c0_254 = arith.constant 0 : index
    %721 = vector.load %arg14[%c0_253, %c0_254] : memref<1x128xf32, #tpu.memory_space<vmem>>, vector<1x128xf32>
    %722 = arith.truncf %718 : vector<64x32xf32> to vector<64x32xbf16>
    %cst_255 = arith.constant dense<0.000000e+00> : vector<64x128xf32>
    %723 = tpu.matmul %722, %719, %cst_255 {dimension_numbers = #tpu.dot_dimension_numbers<[1], [0], [0], [1], [0, 0, 1, 1], [], []>} : vector<64x32xbf16>, vector<32x128xbf16>, vector<64x128xf32> -> vector<64x128xf32>
    %724 = vector.broadcast %721 : vector<1x128xf32> to vector<64x128xf32>
    %725 = arith.addf %723, %724 : vector<64x128xf32>
    %c0_256 = arith.constant 0 : index
    %c0_257 = arith.constant 0 : index
    %726 = vector.load %arg19[%c0_256, %c0_257] : memref<64x128xf32, #tpu.memory_space<vmem>>, vector<64x128xf32>
    tpu.vector_store %arg19[%c0_256, %c0_257], %725 {strides = array<i32>} : memref<64x128xf32, #tpu.memory_space<vmem>>, vector<64x128xf32>,
    %cst_258 = arith.constant 0.000000e+00 : f32
    %727 = vector.broadcast %cst_258 : f32 to vector<8x32xf32>
    %cst_259 = arith.constant 0.000000e+00 : f32
    %728 = vector.broadcast %cst_259 : f32 to vector<8x32xf32>
    %c0_260 = arith.constant 0 : index
    %c0_261 = arith.constant 0 : index
    %729 = vector.load %arg19[%c0_260, %c0_261] : memref<64x128xf32, #tpu.memory_space<vmem>>, vector<8x128xf32>
    %730 = arith.truncf %727 : vector<8x32xf32> to vector<8x32xbf16>
    %cst_262 = arith.constant dense<0.000000e+00> : vector<8x128xf32>
    %731 = tpu.matmul %730, %720, %cst_262 {dimension_numbers = #tpu.dot_dimension_numbers<[1], [0], [0], [1], [0, 0, 1, 1], [], []>} : vector<8x32xbf16>, vector<32x128xbf16>, vector<8x128xf32> -> vector<8x128xf32>
    %732 = arith.addf %729, %731 : vector<8x128xf32>
    %733 = math.tanh %732 : vector<8x128xf32>
    %734 = arith.negf %732 : vector<8x128xf32>
    %735 = math.exp %734 : vector<8x128xf32>
    %cst_263 = arith.constant 1.000000e+00 : f32
    %736 = vector.broadcast %cst_263 : f32 to vector<8x128xf32>
    %737 = arith.addf %736, %735 : vector<8x128xf32>
    %738 = arith.divf %736, %737 : vector<8x128xf32>
    %739 = arith.select %28, %733, %738 : vector<8x128xi1>, vector<8x128xf32>
    %740 = vector.extract_strided_slice %739 {offsets = [0, 0], sizes = [8, 32], strides = [1, 1]} : vector<8x128xf32> to vector<8x32xf32>
    %741 = vector.extract_strided_slice %739 {offsets = [0, 32], sizes = [8, 32], strides = [1, 1]} : vector<8x128xf32> to vector<8x32xf32>
    %742 = vector.extract_strided_slice %739 {offsets = [0, 64], sizes = [8, 32], strides = [1, 1]} : vector<8x128xf32> to vector<8x32xf32>
    %743 = vector.extract_strided_slice %739 {offsets = [0, 96], sizes = [8, 32], strides = [1, 1]} : vector<8x128xf32> to vector<8x32xf32>
    %744 = arith.mulf %741, %728 : vector<8x32xf32>
    %745 = arith.mulf %740, %742 : vector<8x32xf32>
    %746 = arith.addf %744, %745 : vector<8x32xf32>
    %747 = math.tanh %746 : vector<8x32xf32>
    %748 = arith.mulf %743, %747 : vector<8x32xf32>
    %749 = arith.select %8, %748, %727 : vector<8x32xi1>, vector<8x32xf32>
    %750 = arith.select %8, %746, %728 : vector<8x32xi1>, vector<8x32xf32>
    %cst_264 = arith.constant 0.000000e+00 : f32
    %751 = vector.broadcast %cst_264 : f32 to vector<8x32xf32>
    %752 = arith.select %8, %748, %751 : vector<8x32xi1>, vector<8x32xf32>
    %c0_265 = arith.constant 0 : index
    %c0_266 = arith.constant 0 : index
    %753 = vector.load %arg20[%c0_265, %c0_266] : memref<64x32xf32, #tpu.memory_space<vmem>>, vector<8x32xf32>
    tpu.vector_store %arg20[%c0_265, %c0_266], %752 {strides = array<i32>} : memref<64x32xf32, #tpu.memory_space<vmem>>, vector<8x32xf32>,
    %c8_267 = arith.constant 8 : index
    %c0_268 = arith.constant 0 : index
    %754 = vector.load %arg19[%c8_267, %c0_268] : memref<64x128xf32, #tpu.memory_space<vmem>>, vector<8x128xf32>
    %755 = arith.truncf %749 : vector<8x32xf32> to vector<8x32xbf16>
    %cst_269 = arith.constant dense<0.000000e+00> : vector<8x128xf32>
    %756 = tpu.matmul %755, %720, %cst_269 {dimension_numbers = #tpu.dot_dimension_numbers<[1], [0], [0], [1], [0, 0, 1, 1], [], []>} : vector<8x32xbf16>, vector<32x128xbf16>, vector<8x128xf32> -> vector<8x128xf32>
    %757 = arith.addf %754, %756 : vector<8x128xf32>
    %758 = math.tanh %757 : vector<8x128xf32>
    %759 = arith.negf %757 : vector<8x128xf32>
    %760 = math.exp %759 : vector<8x128xf32>
    %cst_270 = arith.constant 1.000000e+00 : f32
    %761 = vector.broadcast %cst_270 : f32 to vector<8x128xf32>
    %762 = arith.addf %761, %760 : vector<8x128xf32>
    %763 = arith.divf %761, %762 : vector<8x128xf32>
    %764 = arith.select %28, %758, %763 : vector<8x128xi1>, vector<8x128xf32>
    %765 = vector.extract_strided_slice %764 {offsets = [0, 0], sizes = [8, 32], strides = [1, 1]} : vector<8x128xf32> to vector<8x32xf32>
    %766 = vector.extract_strided_slice %764 {offsets = [0, 32], sizes = [8, 32], strides = [1, 1]} : vector<8x128xf32> to vector<8x32xf32>
    %767 = vector.extract_strided_slice %764 {offsets = [0, 64], sizes = [8, 32], strides = [1, 1]} : vector<8x128xf32> to vector<8x32xf32>
    %768 = vector.extract_strided_slice %764 {offsets = [0, 96], sizes = [8, 32], strides = [1, 1]} : vector<8x128xf32> to vector<8x32xf32>
    %769 = arith.mulf %766, %750 : vector<8x32xf32>
    %770 = arith.mulf %765, %767 : vector<8x32xf32>
    %771 = arith.addf %769, %770 : vector<8x32xf32>
    %772 = math.tanh %771 : vector<8x32xf32>
    %773 = arith.mulf %768, %772 : vector<8x32xf32>
    %774 = arith.select %10, %773, %749 : vector<8x32xi1>, vector<8x32xf32>
    %775 = arith.select %10, %771, %750 : vector<8x32xi1>, vector<8x32xf32>
    %cst_271 = arith.constant 0.000000e+00 : f32
    %776 = vector.broadcast %cst_271 : f32 to vector<8x32xf32>
    %777 = arith.select %10, %773, %776 : vector<8x32xi1>, vector<8x32xf32>
    %c8_272 = arith.constant 8 : index
    %c0_273 = arith.constant 0 : index
    %778 = vector.load %arg20[%c8_272, %c0_273] : memref<64x32xf32, #tpu.memory_space<vmem>>, vector<8x32xf32>
    tpu.vector_store %arg20[%c8_272, %c0_273], %777 {strides = array<i32>} : memref<64x32xf32, #tpu.memory_space<vmem>>, vector<8x32xf32>,
    %c16_274 = arith.constant 16 : index
    %c0_275 = arith.constant 0 : index
    %779 = vector.load %arg19[%c16_274, %c0_275] : memref<64x128xf32, #tpu.memory_space<vmem>>, vector<8x128xf32>
    %780 = arith.truncf %774 : vector<8x32xf32> to vector<8x32xbf16>
    %cst_276 = arith.constant dense<0.000000e+00> : vector<8x128xf32>
    %781 = tpu.matmul %780, %720, %cst_276 {dimension_numbers = #tpu.dot_dimension_numbers<[1], [0], [0], [1], [0, 0, 1, 1], [], []>} : vector<8x32xbf16>, vector<32x128xbf16>, vector<8x128xf32> -> vector<8x128xf32>
    %782 = arith.addf %779, %781 : vector<8x128xf32>
    %783 = math.tanh %782 : vector<8x128xf32>
    %784 = arith.negf %782 : vector<8x128xf32>
    %785 = math.exp %784 : vector<8x128xf32>
    %cst_277 = arith.constant 1.000000e+00 : f32
    %786 = vector.broadcast %cst_277 : f32 to vector<8x128xf32>
    %787 = arith.addf %786, %785 : vector<8x128xf32>
    %788 = arith.divf %786, %787 : vector<8x128xf32>
    %789 = arith.select %28, %783, %788 : vector<8x128xi1>, vector<8x128xf32>
    %790 = vector.extract_strided_slice %789 {offsets = [0, 0], sizes = [8, 32], strides = [1, 1]} : vector<8x128xf32> to vector<8x32xf32>
    %791 = vector.extract_strided_slice %789 {offsets = [0, 32], sizes = [8, 32], strides = [1, 1]} : vector<8x128xf32> to vector<8x32xf32>
    %792 = vector.extract_strided_slice %789 {offsets = [0, 64], sizes = [8, 32], strides = [1, 1]} : vector<8x128xf32> to vector<8x32xf32>
    %793 = vector.extract_strided_slice %789 {offsets = [0, 96], sizes = [8, 32], strides = [1, 1]} : vector<8x128xf32> to vector<8x32xf32>
    %794 = arith.mulf %791, %775 : vector<8x32xf32>
    %795 = arith.mulf %790, %792 : vector<8x32xf32>
    %796 = arith.addf %794, %795 : vector<8x32xf32>
    %797 = math.tanh %796 : vector<8x32xf32>
    %798 = arith.mulf %793, %797 : vector<8x32xf32>
    %799 = arith.select %12, %798, %774 : vector<8x32xi1>, vector<8x32xf32>
    %800 = arith.select %12, %796, %775 : vector<8x32xi1>, vector<8x32xf32>
    %cst_278 = arith.constant 0.000000e+00 : f32
    %801 = vector.broadcast %cst_278 : f32 to vector<8x32xf32>
    %802 = arith.select %12, %798, %801 : vector<8x32xi1>, vector<8x32xf32>
    %c16_279 = arith.constant 16 : index
    %c0_280 = arith.constant 0 : index
    %803 = vector.load %arg20[%c16_279, %c0_280] : memref<64x32xf32, #tpu.memory_space<vmem>>, vector<8x32xf32>
    tpu.vector_store %arg20[%c16_279, %c0_280], %802 {strides = array<i32>} : memref<64x32xf32, #tpu.memory_space<vmem>>, vector<8x32xf32>,
    %c24_281 = arith.constant 24 : index
    %c0_282 = arith.constant 0 : index
    %804 = vector.load %arg19[%c24_281, %c0_282] : memref<64x128xf32, #tpu.memory_space<vmem>>, vector<8x128xf32>
    %805 = arith.truncf %799 : vector<8x32xf32> to vector<8x32xbf16>
    %cst_283 = arith.constant dense<0.000000e+00> : vector<8x128xf32>
    %806 = tpu.matmul %805, %720, %cst_283 {dimension_numbers = #tpu.dot_dimension_numbers<[1], [0], [0], [1], [0, 0, 1, 1], [], []>} : vector<8x32xbf16>, vector<32x128xbf16>, vector<8x128xf32> -> vector<8x128xf32>
    %807 = arith.addf %804, %806 : vector<8x128xf32>
    %808 = math.tanh %807 : vector<8x128xf32>
    %809 = arith.negf %807 : vector<8x128xf32>
    %810 = math.exp %809 : vector<8x128xf32>
    %cst_284 = arith.constant 1.000000e+00 : f32
    %811 = vector.broadcast %cst_284 : f32 to vector<8x128xf32>
    %812 = arith.addf %811, %810 : vector<8x128xf32>
    %813 = arith.divf %811, %812 : vector<8x128xf32>
    %814 = arith.select %28, %808, %813 : vector<8x128xi1>, vector<8x128xf32>
    %815 = vector.extract_strided_slice %814 {offsets = [0, 0], sizes = [8, 32], strides = [1, 1]} : vector<8x128xf32> to vector<8x32xf32>
    %816 = vector.extract_strided_slice %814 {offsets = [0, 32], sizes = [8, 32], strides = [1, 1]} : vector<8x128xf32> to vector<8x32xf32>
    %817 = vector.extract_strided_slice %814 {offsets = [0, 64], sizes = [8, 32], strides = [1, 1]} : vector<8x128xf32> to vector<8x32xf32>
    %818 = vector.extract_strided_slice %814 {offsets = [0, 96], sizes = [8, 32], strides = [1, 1]} : vector<8x128xf32> to vector<8x32xf32>
    %819 = arith.mulf %816, %800 : vector<8x32xf32>
    %820 = arith.mulf %815, %817 : vector<8x32xf32>
    %821 = arith.addf %819, %820 : vector<8x32xf32>
    %822 = math.tanh %821 : vector<8x32xf32>
    %823 = arith.mulf %818, %822 : vector<8x32xf32>
    %824 = arith.select %14, %823, %799 : vector<8x32xi1>, vector<8x32xf32>
    %825 = arith.select %14, %821, %800 : vector<8x32xi1>, vector<8x32xf32>
    %cst_285 = arith.constant 0.000000e+00 : f32
    %826 = vector.broadcast %cst_285 : f32 to vector<8x32xf32>
    %827 = arith.select %14, %823, %826 : vector<8x32xi1>, vector<8x32xf32>
    %c24_286 = arith.constant 24 : index
    %c0_287 = arith.constant 0 : index
    %828 = vector.load %arg20[%c24_286, %c0_287] : memref<64x32xf32, #tpu.memory_space<vmem>>, vector<8x32xf32>
    tpu.vector_store %arg20[%c24_286, %c0_287], %827 {strides = array<i32>} : memref<64x32xf32, #tpu.memory_space<vmem>>, vector<8x32xf32>,
    %c32_288 = arith.constant 32 : index
    %c0_289 = arith.constant 0 : index
    %829 = vector.load %arg19[%c32_288, %c0_289] : memref<64x128xf32, #tpu.memory_space<vmem>>, vector<8x128xf32>
    %830 = arith.truncf %824 : vector<8x32xf32> to vector<8x32xbf16>
    %cst_290 = arith.constant dense<0.000000e+00> : vector<8x128xf32>
    %831 = tpu.matmul %830, %720, %cst_290 {dimension_numbers = #tpu.dot_dimension_numbers<[1], [0], [0], [1], [0, 0, 1, 1], [], []>} : vector<8x32xbf16>, vector<32x128xbf16>, vector<8x128xf32> -> vector<8x128xf32>
    %832 = arith.addf %829, %831 : vector<8x128xf32>
    %833 = math.tanh %832 : vector<8x128xf32>
    %834 = arith.negf %832 : vector<8x128xf32>
    %835 = math.exp %834 : vector<8x128xf32>
    %cst_291 = arith.constant 1.000000e+00 : f32
    %836 = vector.broadcast %cst_291 : f32 to vector<8x128xf32>
    %837 = arith.addf %836, %835 : vector<8x128xf32>
    %838 = arith.divf %836, %837 : vector<8x128xf32>
    %839 = arith.select %28, %833, %838 : vector<8x128xi1>, vector<8x128xf32>
    %840 = vector.extract_strided_slice %839 {offsets = [0, 0], sizes = [8, 32], strides = [1, 1]} : vector<8x128xf32> to vector<8x32xf32>
    %841 = vector.extract_strided_slice %839 {offsets = [0, 32], sizes = [8, 32], strides = [1, 1]} : vector<8x128xf32> to vector<8x32xf32>
    %842 = vector.extract_strided_slice %839 {offsets = [0, 64], sizes = [8, 32], strides = [1, 1]} : vector<8x128xf32> to vector<8x32xf32>
    %843 = vector.extract_strided_slice %839 {offsets = [0, 96], sizes = [8, 32], strides = [1, 1]} : vector<8x128xf32> to vector<8x32xf32>
    %844 = arith.mulf %841, %825 : vector<8x32xf32>
    %845 = arith.mulf %840, %842 : vector<8x32xf32>
    %846 = arith.addf %844, %845 : vector<8x32xf32>
    %847 = math.tanh %846 : vector<8x32xf32>
    %848 = arith.mulf %843, %847 : vector<8x32xf32>
    %849 = arith.select %16, %848, %824 : vector<8x32xi1>, vector<8x32xf32>
    %850 = arith.select %16, %846, %825 : vector<8x32xi1>, vector<8x32xf32>
    %cst_292 = arith.constant 0.000000e+00 : f32
    %851 = vector.broadcast %cst_292 : f32 to vector<8x32xf32>
    %852 = arith.select %16, %848, %851 : vector<8x32xi1>, vector<8x32xf32>
    %c32_293 = arith.constant 32 : index
    %c0_294 = arith.constant 0 : index
    %853 = vector.load %arg20[%c32_293, %c0_294] : memref<64x32xf32, #tpu.memory_space<vmem>>, vector<8x32xf32>
    tpu.vector_store %arg20[%c32_293, %c0_294], %852 {strides = array<i32>} : memref<64x32xf32, #tpu.memory_space<vmem>>, vector<8x32xf32>,
    %c40_295 = arith.constant 40 : index
    %c0_296 = arith.constant 0 : index
    %854 = vector.load %arg19[%c40_295, %c0_296] : memref<64x128xf32, #tpu.memory_space<vmem>>, vector<8x128xf32>
    %855 = arith.truncf %849 : vector<8x32xf32> to vector<8x32xbf16>
    %cst_297 = arith.constant dense<0.000000e+00> : vector<8x128xf32>
    %856 = tpu.matmul %855, %720, %cst_297 {dimension_numbers = #tpu.dot_dimension_numbers<[1], [0], [0], [1], [0, 0, 1, 1], [], []>} : vector<8x32xbf16>, vector<32x128xbf16>, vector<8x128xf32> -> vector<8x128xf32>
    %857 = arith.addf %854, %856 : vector<8x128xf32>
    %858 = math.tanh %857 : vector<8x128xf32>
    %859 = arith.negf %857 : vector<8x128xf32>
    %860 = math.exp %859 : vector<8x128xf32>
    %cst_298 = arith.constant 1.000000e+00 : f32
    %861 = vector.broadcast %cst_298 : f32 to vector<8x128xf32>
    %862 = arith.addf %861, %860 : vector<8x128xf32>
    %863 = arith.divf %861, %862 : vector<8x128xf32>
    %864 = arith.select %28, %858, %863 : vector<8x128xi1>, vector<8x128xf32>
    %865 = vector.extract_strided_slice %864 {offsets = [0, 0], sizes = [8, 32], strides = [1, 1]} : vector<8x128xf32> to vector<8x32xf32>
    %866 = vector.extract_strided_slice %864 {offsets = [0, 32], sizes = [8, 32], strides = [1, 1]} : vector<8x128xf32> to vector<8x32xf32>
    %867 = vector.extract_strided_slice %864 {offsets = [0, 64], sizes = [8, 32], strides = [1, 1]} : vector<8x128xf32> to vector<8x32xf32>
    %868 = vector.extract_strided_slice %864 {offsets = [0, 96], sizes = [8, 32], strides = [1, 1]} : vector<8x128xf32> to vector<8x32xf32>
    %869 = arith.mulf %866, %850 : vector<8x32xf32>
    %870 = arith.mulf %865, %867 : vector<8x32xf32>
    %871 = arith.addf %869, %870 : vector<8x32xf32>
    %872 = math.tanh %871 : vector<8x32xf32>
    %873 = arith.mulf %868, %872 : vector<8x32xf32>
    %874 = arith.select %18, %873, %849 : vector<8x32xi1>, vector<8x32xf32>
    %875 = arith.select %18, %871, %850 : vector<8x32xi1>, vector<8x32xf32>
    %cst_299 = arith.constant 0.000000e+00 : f32
    %876 = vector.broadcast %cst_299 : f32 to vector<8x32xf32>
    %877 = arith.select %18, %873, %876 : vector<8x32xi1>, vector<8x32xf32>
    %c40_300 = arith.constant 40 : index
    %c0_301 = arith.constant 0 : index
    %878 = vector.load %arg20[%c40_300, %c0_301] : memref<64x32xf32, #tpu.memory_space<vmem>>, vector<8x32xf32>
    tpu.vector_store %arg20[%c40_300, %c0_301], %877 {strides = array<i32>} : memref<64x32xf32, #tpu.memory_space<vmem>>, vector<8x32xf32>,
    %c48_302 = arith.constant 48 : index
    %c0_303 = arith.constant 0 : index
    %879 = vector.load %arg19[%c48_302, %c0_303] : memref<64x128xf32, #tpu.memory_space<vmem>>, vector<8x128xf32>
    %880 = arith.truncf %874 : vector<8x32xf32> to vector<8x32xbf16>
    %cst_304 = arith.constant dense<0.000000e+00> : vector<8x128xf32>
    %881 = tpu.matmul %880, %720, %cst_304 {dimension_numbers = #tpu.dot_dimension_numbers<[1], [0], [0], [1], [0, 0, 1, 1], [], []>} : vector<8x32xbf16>, vector<32x128xbf16>, vector<8x128xf32> -> vector<8x128xf32>
    %882 = arith.addf %879, %881 : vector<8x128xf32>
    %883 = math.tanh %882 : vector<8x128xf32>
    %884 = arith.negf %882 : vector<8x128xf32>
    %885 = math.exp %884 : vector<8x128xf32>
    %cst_305 = arith.constant 1.000000e+00 : f32
    %886 = vector.broadcast %cst_305 : f32 to vector<8x128xf32>
    %887 = arith.addf %886, %885 : vector<8x128xf32>
    %888 = arith.divf %886, %887 : vector<8x128xf32>
    %889 = arith.select %28, %883, %888 : vector<8x128xi1>, vector<8x128xf32>
    %890 = vector.extract_strided_slice %889 {offsets = [0, 0], sizes = [8, 32], strides = [1, 1]} : vector<8x128xf32> to vector<8x32xf32>
    %891 = vector.extract_strided_slice %889 {offsets = [0, 32], sizes = [8, 32], strides = [1, 1]} : vector<8x128xf32> to vector<8x32xf32>
    %892 = vector.extract_strided_slice %889 {offsets = [0, 64], sizes = [8, 32], strides = [1, 1]} : vector<8x128xf32> to vector<8x32xf32>
    %893 = vector.extract_strided_slice %889 {offsets = [0, 96], sizes = [8, 32], strides = [1, 1]} : vector<8x128xf32> to vector<8x32xf32>
    %894 = arith.mulf %891, %875 : vector<8x32xf32>
    %895 = arith.mulf %890, %892 : vector<8x32xf32>
    %896 = arith.addf %894, %895 : vector<8x32xf32>
    %897 = math.tanh %896 : vector<8x32xf32>
    %898 = arith.mulf %893, %897 : vector<8x32xf32>
    %899 = arith.select %20, %898, %874 : vector<8x32xi1>, vector<8x32xf32>
    %900 = arith.select %20, %896, %875 : vector<8x32xi1>, vector<8x32xf32>
    %cst_306 = arith.constant 0.000000e+00 : f32
    %901 = vector.broadcast %cst_306 : f32 to vector<8x32xf32>
    %902 = arith.select %20, %898, %901 : vector<8x32xi1>, vector<8x32xf32>
    %c48_307 = arith.constant 48 : index
    %c0_308 = arith.constant 0 : index
    %903 = vector.load %arg20[%c48_307, %c0_308] : memref<64x32xf32, #tpu.memory_space<vmem>>, vector<8x32xf32>
    tpu.vector_store %arg20[%c48_307, %c0_308], %902 {strides = array<i32>} : memref<64x32xf32, #tpu.memory_space<vmem>>, vector<8x32xf32>,
    %c56_309 = arith.constant 56 : index
    %c0_310 = arith.constant 0 : index
    %904 = vector.load %arg19[%c56_309, %c0_310] : memref<64x128xf32, #tpu.memory_space<vmem>>, vector<8x128xf32>
    %905 = arith.truncf %899 : vector<8x32xf32> to vector<8x32xbf16>
    %cst_311 = arith.constant dense<0.000000e+00> : vector<8x128xf32>
    %906 = tpu.matmul %905, %720, %cst_311 {dimension_numbers = #tpu.dot_dimension_numbers<[1], [0], [0], [1], [0, 0, 1, 1], [], []>} : vector<8x32xbf16>, vector<32x128xbf16>, vector<8x128xf32> -> vector<8x128xf32>
    %907 = arith.addf %904, %906 : vector<8x128xf32>
    %908 = math.tanh %907 : vector<8x128xf32>
    %909 = arith.negf %907 : vector<8x128xf32>
    %910 = math.exp %909 : vector<8x128xf32>
    %cst_312 = arith.constant 1.000000e+00 : f32
    %911 = vector.broadcast %cst_312 : f32 to vector<8x128xf32>
    %912 = arith.addf %911, %910 : vector<8x128xf32>
    %913 = arith.divf %911, %912 : vector<8x128xf32>
    %914 = arith.select %28, %908, %913 : vector<8x128xi1>, vector<8x128xf32>
    %915 = vector.extract_strided_slice %914 {offsets = [0, 0], sizes = [8, 32], strides = [1, 1]} : vector<8x128xf32> to vector<8x32xf32>
    %916 = vector.extract_strided_slice %914 {offsets = [0, 32], sizes = [8, 32], strides = [1, 1]} : vector<8x128xf32> to vector<8x32xf32>
    %917 = vector.extract_strided_slice %914 {offsets = [0, 64], sizes = [8, 32], strides = [1, 1]} : vector<8x128xf32> to vector<8x32xf32>
    %918 = vector.extract_strided_slice %914 {offsets = [0, 96], sizes = [8, 32], strides = [1, 1]} : vector<8x128xf32> to vector<8x32xf32>
    %919 = arith.mulf %916, %900 : vector<8x32xf32>
    %920 = arith.mulf %915, %917 : vector<8x32xf32>
    %921 = arith.addf %919, %920 : vector<8x32xf32>
    %922 = math.tanh %921 : vector<8x32xf32>
    %923 = arith.mulf %918, %922 : vector<8x32xf32>
    %cst_313 = arith.constant 0.000000e+00 : f32
    %924 = vector.broadcast %cst_313 : f32 to vector<8x32xf32>
    %925 = arith.select %22, %923, %924 : vector<8x32xi1>, vector<8x32xf32>
    %c56_314 = arith.constant 56 : index
    %c0_315 = arith.constant 0 : index
    %926 = vector.load %arg20[%c56_314, %c0_315] : memref<64x32xf32, #tpu.memory_space<vmem>>, vector<8x32xf32>
    tpu.vector_store %arg20[%c56_314, %c0_315], %925 {strides = array<i32>} : memref<64x32xf32, #tpu.memory_space<vmem>>, vector<8x32xf32>,
    %c0_316 = arith.constant 0 : index
    %c0_317 = arith.constant 0 : index
    %927 = vector.load %arg20[%c0_316, %c0_317] : memref<64x32xf32, #tpu.memory_space<vmem>>, vector<64x32xf32>
    %928 = arith.truncf %927 : vector<64x32xf32> to vector<64x32xbf16>
    %c0_318 = arith.constant 0 : index
    %c0_319 = arith.constant 0 : index
    %929 = vector.load %arg15[%c0_318, %c0_319] : memref<32x128xbf16, #tpu.memory_space<vmem>>, vector<32x128xbf16>
    %cst_320 = arith.constant dense<0.000000e+00> : vector<64x128xf32>
    %930 = tpu.matmul %928, %929, %cst_320 {dimension_numbers = #tpu.dot_dimension_numbers<[1], [0], [0], [1], [0, 0, 1, 1], [], []>} : vector<64x32xbf16>, vector<32x128xbf16>, vector<64x128xf32> -> vector<64x128xf32>
    %c0_321 = arith.constant 0 : index
    %c0_322 = arith.constant 0 : index
    %931 = vector.load %arg16[%c0_321, %c0_322] : memref<1x128xf32, #tpu.memory_space<vmem>>, vector<1x128xf32>
    %932 = vector.broadcast %931 : vector<1x128xf32> to vector<64x128xf32>
    %933 = arith.addf %930, %932 : vector<64x128xf32>
    %934 = vector.shape_cast %933 : vector<64x128xf32> to vector<8x8x128xf32>
    %935 = arith.fptosi %0 : vector<8x1xf32> to vector<8x1xi32>
    %936 = tpu.iota {dimensions = array<i32: 0>} : vector<8x8x128xi32>
    %937 = vector.shape_cast %935 : vector<8x1xi32> to vector<1x8x1xi32>
    %938 = vector.broadcast %937 : vector<1x8x1xi32> to vector<8x8x128xi32>
    %939 = arith.cmpi slt, %936, %938 : vector<8x8x128xi32>
    %cst_323 = arith.constant 0.000000e+00 : f32
    %940 = vector.broadcast %cst_323 : f32 to vector<8x8x128xf32>
    %941 = arith.select %939, %934, %940 : vector<8x8x128xi1>, vector<8x8x128xf32>
    %c0_324 = arith.constant 0 : index
    %c0_325 = arith.constant 0 : index
    %c0_326 = arith.constant 0 : index
    %942 = vector.load %arg17[%c0_324, %c0_325, %c0_326] : memref<8x8x128xf32, #tpu.memory_space<vmem>>, vector<8x8x128xf32>
    tpu.vector_store %arg17[%c0_324, %c0_325, %c0_326], %941 {strides = array<i32>} : memref<8x8x128xf32, #tpu.memory_space<vmem>>, vector<8x8x128xf32>,
    %c0_327 = arith.constant 0 : index
    %c0_328 = arith.constant 0 : index
    %c0_329 = arith.constant 0 : index
    %943 = vector.load %arg1[%c0_327, %c0_328, %c0_329] : memref<8x8x128xf32, #tpu.memory_space<vmem>>, vector<8x8x128xf32>
    %cst_330 = arith.constant 0.000000e+00 : f32
    %944 = vector.broadcast %cst_330 : f32 to vector<8x8x128xf32>
    %945 = arith.select %939, %943, %944 : vector<8x8x128xi1>, vector<8x8x128xf32>
    %946 = arith.subf %941, %945 : vector<8x8x128xf32>
    %947 = arith.mulf %946, %946 : vector<8x8x128xf32>
    %cst_331 = arith.constant dense<0.000000e+00> : vector<8x8xf32>
    %948 = vector.multi_reduction <add>, %947, %cst_331 [2] : vector<8x8x128xf32> to vector<8x8xf32>
    %949 = vector.shape_cast %948 : vector<8x8xf32> to vector<8x8x1xf32>
    %cst_332 = arith.constant dense<0.000000e+00> : vector<8x1xf32>
    %950 = vector.multi_reduction <add>, %949, %cst_332 [0] : vector<8x8x1xf32> to vector<8x1xf32>
    %951 = arith.mulf %950, %4 : vector<8x1xf32>
    %952 = vector.shape_cast %951 : vector<8x1xf32> to vector<1x8x1xf32>
    %cst_333 = arith.constant dense<0.000000e+00> : vector<1xf32>
    %953 = vector.multi_reduction <add>, %952, %cst_333 [1, 2] : vector<1x8x1xf32> to vector<1xf32>
    %954 = vector.shape_cast %953 : vector<1xf32> to vector<1x1x1xf32>
    %955 = vector.extract %954[0, 0, 0] : f32 from vector<1x1x1xf32>
    %956 = vector.broadcast %955 : f32 to vector<1x1xf32>
    %cst_334 = arith.constant 3.125000e-02 : f32
    %957 = vector.broadcast %cst_334 : f32 to vector<1x1xf32>
    %958 = arith.mulf %956, %957 : vector<1x1xf32>
    %cst_335 = arith.constant 1.000000e-01 : f32
    %959 = vector.broadcast %cst_335 : f32 to vector<1x1xf32>
    %960 = arith.mulf %959, %484 : vector<1x1xf32>
    %961 = arith.addf %958, %960 : vector<1x1xf32>
    %962 = vector.shape_cast %961 : vector<1x1xf32> to vector<1x1x1xf32>
    %c0_336 = arith.constant 0 : index
    %c0_337 = arith.constant 0 : index
    %c0_338 = arith.constant 0 : index
    %963 = vector.load %arg18[%c0_336, %c0_337, %c0_338] : memref<1x1x1xf32, #tpu.memory_space<vmem>>, vector<1x1x1xf32>
    tpu.vector_store %arg18[%c0_336, %c0_337, %c0_338], %962 {strides = array<i32>} : memref<1x1x1xf32, #tpu.memory_space<vmem>>, vector<1x1x1xf32>,
    return
  }
  func.func @transform_0(%arg0: i32) -> (i32, i32, i32) {
    %c0_i32 = arith.constant 0 : i32
    %c0_i32_0 = arith.constant 0 : i32
    %c0_i32_1 = arith.constant 0 : i32
    return %c0_i32, %arg0, %c0_i32_0 : i32, i32, i32
  }
  func.func @transform_1(%arg0: i32) -> (i32, i32) {
    %c0_i32 = arith.constant 0 : i32
    %c0_i32_0 = arith.constant 0 : i32
    return %arg0, %c0_i32 : i32, i32
  }
  func.func @transform_2(%arg0: i32) -> (i32, i32) {
    %c0_i32 = arith.constant 0 : i32
    %c0_i32_0 = arith.constant 0 : i32
    %c0_i32_1 = arith.constant 0 : i32
    return %c0_i32, %c0_i32_0 : i32, i32
  }
  func.func @transform_3(%arg0: i32) -> (i32, i32) {
    %c0_i32 = arith.constant 0 : i32
    %c0_i32_0 = arith.constant 0 : i32
    %c0_i32_1 = arith.constant 0 : i32
    return %c0_i32, %c0_i32_0 : i32, i32
  }
  func.func @transform_4(%arg0: i32) -> (i32, i32) {
    %c0_i32 = arith.constant 0 : i32
    %c0_i32_0 = arith.constant 0 : i32
    %c0_i32_1 = arith.constant 0 : i32
    return %c0_i32, %c0_i32_0 : i32, i32
  }
  func.func @transform_5(%arg0: i32) -> (i32, i32) {
    %c0_i32 = arith.constant 0 : i32
    %c0_i32_0 = arith.constant 0 : i32
    %c0_i32_1 = arith.constant 0 : i32
    return %c0_i32, %c0_i32_0 : i32, i32
  }
  func.func @transform_6(%arg0: i32) -> (i32, i32) {
    %c0_i32 = arith.constant 0 : i32
    %c0_i32_0 = arith.constant 0 : i32
    %c0_i32_1 = arith.constant 0 : i32
    return %c0_i32, %c0_i32_0 : i32, i32
  }
  func.func @transform_7(%arg0: i32) -> (i32, i32) {
    %c0_i32 = arith.constant 0 : i32
    %c0_i32_0 = arith.constant 0 : i32
    %c0_i32_1 = arith.constant 0 : i32
    return %c0_i32, %c0_i32_0 : i32, i32
  }
  func.func @transform_8(%arg0: i32) -> (i32, i32) {
    %c0_i32 = arith.constant 0 : i32
    %c0_i32_0 = arith.constant 0 : i32
    %c0_i32_1 = arith.constant 0 : i32
    return %c0_i32, %c0_i32_0 : i32, i32
  }
  func.func @transform_9(%arg0: i32) -> (i32, i32) {
    %c0_i32 = arith.constant 0 : i32
    %c0_i32_0 = arith.constant 0 : i32
    %c0_i32_1 = arith.constant 0 : i32
    return %c0_i32, %c0_i32_0 : i32, i32
  }
  func.func @transform_10(%arg0: i32) -> (i32, i32) {
    %c0_i32 = arith.constant 0 : i32
    %c0_i32_0 = arith.constant 0 : i32
    %c0_i32_1 = arith.constant 0 : i32
    return %c0_i32, %c0_i32_0 : i32, i32
  }
  func.func @transform_11(%arg0: i32) -> (i32, i32) {
    %c0_i32 = arith.constant 0 : i32
    %c0_i32_0 = arith.constant 0 : i32
    %c0_i32_1 = arith.constant 0 : i32
    return %c0_i32, %c0_i32_0 : i32, i32
  }
  func.func @transform_12(%arg0: i32) -> (i32, i32) {
    %c0_i32 = arith.constant 0 : i32
    %c0_i32_0 = arith.constant 0 : i32
    %c0_i32_1 = arith.constant 0 : i32
    return %c0_i32, %c0_i32_0 : i32, i32
  }
  func.func @transform_13(%arg0: i32) -> (i32, i32) {
    %c0_i32 = arith.constant 0 : i32
    %c0_i32_0 = arith.constant 0 : i32
    %c0_i32_1 = arith.constant 0 : i32
    return %c0_i32, %c0_i32_0 : i32, i32
  }
  func.func @transform_14(%arg0: i32) -> (i32, i32) {
    %c0_i32 = arith.constant 0 : i32
    %c0_i32_0 = arith.constant 0 : i32
    %c0_i32_1 = arith.constant 0 : i32
    return %c0_i32, %c0_i32_0 : i32, i32
  }
  func.func @transform_15(%arg0: i32) -> (i32, i32) {
    %c0_i32 = arith.constant 0 : i32
    %c0_i32_0 = arith.constant 0 : i32
    %c0_i32_1 = arith.constant 0 : i32
    return %c0_i32, %c0_i32_0 : i32, i32
  }
  func.func @transform_16(%arg0: i32) -> (i32, i32, i32) {
    %c0_i32 = arith.constant 0 : i32
    %c0_i32_0 = arith.constant 0 : i32
    %c0_i32_1 = arith.constant 0 : i32
    return %c0_i32, %arg0, %c0_i32_0 : i32, i32, i32
  }
  func.func @transform_17(%arg0: i32) -> (i32, i32, i32) {
    %c0_i32 = arith.constant 0 : i32
    %c0_i32_0 = arith.constant 0 : i32
    %c0_i32_1 = arith.constant 0 : i32
    return %arg0, %c0_i32, %c0_i32_0 : i32, i32, i32
  }
}

</mosaic_0001>

<bundles_post_ra>
// kernel: lstm_sae_forward.1
= control target key start
LH: loop header
LB: loop body
LE: loop exit
PB: predicated region body
PF: predicated region fallthrough
CT: control target
= control target key end

     0   :  { %s4764_s0 = inlined_call_operand.vmem [shape: f32[8,8,128], index: 0, kind: input, shape index: {}]   ;;  %s4765_s1 = inlined_call_operand.vmem [shape: f32[8,1], index: 1, kind: input, shape index: {}]   ;;  %s4766_s2 = inlined_call_operand.vmem [shape: bf16[128,128], index: 2, kind: input, shape index: {}]   ;;  %s4767_s3 = inlined_call_operand.vmem [shape: bf16[32,128], index: 3, kind: input, shape index: {}]   ;;  %s4768_s4 = inlined_call_operand.vmem [shape: f32[1,128], index: 4, kind: input, shape index: {}]   ;;  %s4769_s5 = inlined_call_operand.vmem [shape: bf16[32,128], index: 5, kind: input, shape index: {}]   ;;  %s4770_s6 = inlined_call_operand.vmem [shape: bf16[32,128], index: 6, kind: input, shape index: {}]   ;;  %s4771_s7 = inlined_call_operand.vmem [shape: f32[1,128], index: 7, kind: input, shape index: {}]   ;;  %s4772_s8 = inlined_call_operand.vmem [shape: bf16[32,128], index: 8, kind: input, shape index: {}]   ;;  %s4773_s9 = inlined_call_operand.vmem [shape: bf16[32,128], index: 9, kind: input, shape index: {}]   ;;  %s4774_s10 = inlined_call_operand.vmem [shape: f32[1,128], index: 10, kind: input, shape index: {}]   ;;  %s4775_s11 = inlined_call_operand.vmem [shape: bf16[32,128], index: 11, kind: input, shape index: {}]   ;;  %s4776_s12 = inlined_call_operand.hbm [shape: bf16[32,128], index: 12, kind: input, shape index: {}]   ;;  %s4777_s13 = inlined_call_operand.vmem [shape: f32[1,128], index: 13, kind: input, shape index: {}]   ;;  %s4778_s14 = inlined_call_operand.hbm [shape: bf16[32,128], index: 14, kind: input, shape index: {}]   ;;  %s4779_s15 = inlined_call_operand.vmem [shape: f32[1,128], index: 15, kind: input, shape index: {}]   ;;  %s4780_s16 = inlined_call_operand.vmem [shape: f32[8,8,128], index: 16, kind: output, shape index: {0}]   ;;  %s4781_s17 = inlined_call_operand.hbm [shape: f32[1,1,1], index: 17, kind: output, shape index: {1}]  }
   0x1   :  { %4784 = sst [smem:[#allocation13_spill]] %s4764_s0 }
   0x2   :  { %4785 = sst [smem:[#allocation14_spill]] %s4765_s1 }
   0x3   :  { %23 = vsyncpa [#allocation5], 0 }
   0x4   :  { %24 = vsyncpa [#allocation8], 0 }
   0x5   :  { %25 = vsyncpa [#allocation6], 0  ;;  %s54_s26 = sshll.u32 %s4776_s12, 4  ;;  %s3559_s27 = smov [#allocation4]   ;;  %s55_s26 = int_to_ptr.hbm [resolvable:$true] %s54_s26 }
   0x6   :  { %s56_s28 = sshll.u32 %s3559_s27, 4  ;;  %s69_s30 = sshll.u32 %s4778_s14, 4  ;;  %s57_s28 = int_to_ptr.vmem [resolvable:$true] %s56_s28  ;;  %s70_s30 = int_to_ptr.hbm [resolvable:$true] %s69_s30 }
   0x7   :  { %s3560_s18 = smov 64   ;;  %s3561_s19 = smov 4  }
   0x8   :  { %62 = dma.hbm_to_vmem [thread:$0]  %s55_s26, 256, %s57_s28, [#allocation5], %s3560_s18, %s3560_s18, %s3561_s19  }
   0x9   :  { %s3562_s1 = smov [#allocation7]  }
   0xa   :  { %s71_s20 = sshll.u32 %s3562_s1, 4  ;;  %s72_s20 = int_to_ptr.vmem [resolvable:$true] %s71_s20 }
   0xb   :  { %77 = dma.hbm_to_vmem [thread:$0]  %s70_s30, 256, %s72_s20, [#allocation8], %s3560_s18, %s3560_s18, %s3561_s19  }
   0xc   :  { %3553 = dma.done.wait [#allocation5], 256  }
   0xd   :  { %3554 = vsyncadd [#allocation5], 4294967040 }
   0xe   :  { %3555 = dma.done.wait [#allocation8], 256  }
   0xf   :  { %3556 = vsyncadd [#allocation8], 4294967040  ;;  %v3563_v0 = vmov 0   ;;  %v3174_v1 = vld [vmem:[%s4766_s2 + $0x38] sm:$0xff]  ;;  %v3176_v2 = vld [vmem:[%s4767_s3 + $0x8] sm:$0xff]  ;;  %s4786_s24 = sld [smem:[#allocation13_spill]]  ;;  %v119_v23 = vlaneseq }
  0x10   :  { %3209 = vset.pattern.permute.xlu1 %v3563_v0  ;;  %3211 = vset.pattern.permute.xlu0 %v3563_v0  ;;  %v3173_v3 = vld [vmem:[%s4766_s2 + $0x30] sm:$0xff]  ;;  %v3175_v4 = vld [vmem:[%s4767_s3] sm:$0xff]  ;;  %v3172_v5 = vld [vmem:[%s4766_s2 + $0x28] sm:$0xff]  ;;  %s4789_s3 = sld [smem:[#allocation14_spill]]  ;;  %vm258_vm8 = vcmask 261120   ;;  %s2982_s21 = sshll.u32 %s4781_s17, 4  ;;  %s2983_s21 = int_to_ptr.hbm [resolvable:$true] %s2982_s21 }
  0x11   :  { %3210 = vset.pattern.permute.xlu2 %v3563_v0  ;;  %208 = vmatpush.bf16.msra.mxu0 %v3174_v1  ;;  %v3171_v6 = vld [vmem:[%s4766_s2 + $0x20] sm:$0xff]  ;;  %v3170_v7 = vld [vmem:[%s4766_s2 + $0x18] sm:$0xff]  ;;  %v3169_v8 = vld [vmem:[%s4766_s2 + $0x10] sm:$0xff]  ;;  %v120_v25 = vand.u32 127, %v119_v23 }
  0x12   :  { %268 = vmatpush.bf16.msra.mxu1 %v3176_v2  ;;  %403 = vmatpush.bf16.msra.mxu3 %v3176_v2  ;;  %v3168_v9 = vld [vmem:[%s4766_s2 + $0x8] sm:$0xff]  ;;  %v3167_v10 = vld [vmem:[%s4766_s2] sm:$0xff]  ;;  %s3564_s2 = smov 32  }
  0x13   :  { %539 = vmatpush.bf16.msra.mxu2 %v3176_v2  ;;  %v3709_v16 = vld [vmem:[%s4768_s4] ss:$0 sm:$0xff]  ;;  %vm121_vm0 = vcmp.ge.s32.totalorder %v120_v25, 64  ;;  %vm122_vm1 = vcmp.lt.s32.totalorder %v120_v25, 96 }
  0x14   :  { %vm3713_vm3 = vmand %vm121_vm0, %vm122_vm1 }
  0x15   :  { %209 = vmatpush.bf16.msra.mxu0 %v3173_v3  ;;  %v124_v11 = vld [vmem:[%s4786_s24] sm:$0xff]  ;;  %v125_v12 = vld [vmem:[%s4786_s24 + $0x8] sm:$0xff]  ;;  %v126_v45 = vld [vmem:[%s4786_s24 + $0x10] sm:$0xff] }
  0x16   :  { %269 = vmatpush.bf16.msra.mxu1 %v3175_v4  ;;  %404 = vmatpush.bf16.msra.mxu3 %v3175_v4  ;;  %v153_v13 = vpack.c.bf16 %v125_v12, %v124_v11  ;;  %v89_v44 = vld [vmem:[%s4789_s3] sm:$0xff]  ;;  %v127_v46 = vld [vmem:[%s4786_s24 + $0x18] sm:$0xff]  ;;  %v129_v49 = vld [vmem:[%s4786_s24 + $0x28] sm:$0xff] }
  0x17   :  { %540 = vmatpush.bf16.msra.mxu2 %v3175_v4  ;;  %v154_v47 = vpack.c.bf16 %v127_v46, %v126_v45  ;;  %v128_v48 = vld [vmem:[%s4786_s24 + $0x20] sm:$0xff]  ;;  %v130_v54 = vld [vmem:[%s4786_s24 + $0x30] sm:$0xff]  ;;  %v131_v55 = vld [vmem:[%s4786_s24 + $0x38] sm:$0xff] }
  0x18   :  { %v155_v50 = vpack.c.bf16 %v129_v49, %v128_v48  ;;  %v156_v58 = vpack.c.bf16 %v131_v55, %v130_v54 }
  0x19   :  { %210 = vmatpush.bf16.msra.mxu0 %v3172_v5  ;;  %270 = vmatmul.bf16.vlgmr.msra.gmra.mxu1 %v3563_v0 }
  0x1a   :  { %471 = vmatpush.bf16.msrb.mxu1 %v3176_v2  ;;  %607 = vmatpush.bf16.msrb.mxu3 %v3176_v2 }
  0x1b   :  { %743 = vmatpush.bf16.msrb.mxu2 %v3176_v2 }
  0x1d   :  { %211 = vmatpush.bf16.msra.mxu0 %v3171_v6 }
  0x1e   :  { %472 = vmatpush.bf16.msrb.mxu1 %v3175_v4  ;;  %608 = vmatpush.bf16.msrb.mxu3 %v3175_v4 }
  0x1f   :  { %744 = vmatpush.bf16.msrb.mxu2 %v3175_v4 }
  0x21   :  { %212 = vmatpush.bf16.msra.mxu0 %v3170_v7 }
  0x22   :  { %675 = vmatpush.bf16.msra.mxu1 %v3176_v2 }
  0x25   :  { %213 = vmatpush.bf16.msra.mxu0 %v3169_v8 }
  0x26   :  { %676 = vmatpush.bf16.msra.mxu1 %v3175_v4 }
  0x29   :  { %214 = vmatpush.bf16.msra.mxu0 %v3168_v9 }
  0x2d   :  { %215 = vmatpush.bf16.msra.mxu0 %v3167_v10 }
  0x30   :  { %216 = vmatmul.bf16.vlgmr.msra.gmra.mxu0 %v153_v13 }
  0x31   :  { %335 = vmatpush.bf16.msrb.mxu0 %v3176_v2 }
  0x35   :  { %336 = vmatpush.bf16.msrb.mxu0 %v3175_v4 }
  0x40   :  { %221 = vmatmul.bf16.gmra.mxu0 %v154_v47 }
  0x50   :  { %226 = vmatmul.bf16.gmra.mxu0 %v155_v50 }
  0x60   :  { %231 = vmatmul.bf16.gmra.mxu0 %v156_v58 }
  0x96   :  { %v271_v14 = vpop.f32.mrf.mxu1 }
  0x9e   :  { %v273_v15 = vpop.f32.mrf.mxu1 }
  0xad   :  { %v217_v17 = vpop.f32.mrf.mxu0 }
  0xae   :  { %v218_v18 = vadd.f32 %v3709_v16, %v217_v17 }
  0xb0   :  { %v275_v19 = vadd.f32 %v271_v14, %v218_v18 }
  0xb2   :  { %v3035_v20 = vmul.f32 -1.442695, %v275_v19 }
  0xb4   :  { %3217 = vpow2.f32 %v3035_v20 }
  0xb5   :  { %v219_v60 = vpop.f32.mrf.mxu0 }
  0xb6   :  { %v220_v4 = vadd.f32 %v3709_v16, %v219_v60 }
  0xba   :  { %v3218_v21 = vpop.eup %3217 }
  0xbb   :  { %v280_v22 = vadd.f32 1.0, %v3218_v21 }
  0xbd   :  { %3219 = vrcp.f32 %v280_v22  ;;  %v292_v28 = vand.u32 2147483648, %v280_v22  ;;  %v290_v30 = vand.u32 2147483647, %v280_v22  ;;  %vm286_vm4 = vweird.f32 %v280_v22  ;;  %v222_v61 = vpop.f32.mrf.mxu0 }
  0xbe   :  { %3221 = vtanh.f32 %v275_v19 }
  0xbf   :  { %v293_v33 = vor.u32 1.1754944e-38, %v292_v28  ;;  %vm291_vm6 = vcmp.eq.f32.partialorder %v290_v30, 8.507059e+37 }
  0xc3   :  { %v3220_v24 = vpop.eup %3219 }
  0xc4   :  { %v282_v26 = vmul.f32 %v3220_v24, %v280_v22  ;;  %vm287_vm2 = vweird.f32 %v3220_v24  ;;  %v3222_v35 = vpop.eup %3221 }
  0xc5   :  { %vm288_vm5 = vmor %vm286_vm4, %vm287_vm2  ;;  %v3757_v62 = vpop.f32.mrf.mxu0 }
  0xc6   :  { %v283_v27 = vsub.f32 1.0, %v282_v26 }
  0xc8   :  { %v284_v29 = vmul.f32 %v3220_v24, %v283_v27 }
  0xca   :  { %v285_v32 = vadd.f32 %v3220_v24, %v284_v29 }
  0xcc   :  { %v289_v34 = vsel %vm288_vm5, %v3220_v24, %v285_v32 }
  0xcd   :  { %v294_v36 = vsel %vm291_vm6, %v293_v33, %v289_v34  ;;  %v3759_v63 = vpop.f32.mrf.mxu0 }
  0xce   :  { %v296_v37 = vsel %vm3713_vm3, %v3222_v35, %v294_v36 }
  0xcf   :  { %299 = vrot.lane.b32.xlu0 %v296_v37, %s3560_s18  ;;  %v297_v40 = vmul.f32 0.0, %v296_v37 }
  0xd5   :  { %v3761_v1 = vpop.f32.mrf.mxu0 }
  0xdd   :  { %v3763_v2 = vpop.f32.mrf.mxu0 }
  0xe5   :  { %v3765_v3 = vpop.f32.mrf.mxu0 }
 0x141   :  { %v300_v38 = vpop.permute.xlu0 %299 }
 0x142   :  { %v302_v39 = vmul.f32 %v300_v38, %v296_v37  ;;  %v223_v38 = vadd.f32 %v3709_v16, %v222_v61 }
 0x144   :  { %304 = vrot.lane.b32.xlu0 %v302_v39, %s3564_s2 }
 0x1b6   :  { %v305_v41 = vpop.permute.xlu0 %304 }
 0x1b7   :  { %v3721_v42 = vadd.f32 %v305_v41, %v297_v40 }
 0x1b9   :  { %3223 = vtanh.f32 %v3721_v42 }
 0x1bf   :  { %v3224_v43 = vpop.eup %3223 }
 0x1c0   :  { %310 = vrot.lane.b32.xlu1 %v3224_v43, %s3560_s18 }
 0x1c8   :  { %108 = vperm.xlu1 %3209, %v89_v44  }
 0x232   :  { %v311_v51 = vpop.permute.xlu1 %310 }
 0x233   :  { %v313_v53 = vmul.f32 %v311_v51, %v296_v37 }
 0x23a   :  { %v3740_v52 = vpop.permute.xlu1 %108 }
 0x23b   :  { %vm111_vm7 = vcmp.gt.f32.partialorder %v3740_v52, 0.0  ;;  %vm112_vm13 = vcmp.gt.f32.partialorder %v3740_v52, 1.0  ;;  %vm113_vm2 = vcmp.gt.f32.partialorder %v3740_v52, 2.0 }
 0x23c   :  { %v3751_v56 = vsel %vm111_vm7, %v313_v53, 0.0  ;;  %v315_v27 = vsel %vm111_vm7, %v3721_v42, 0.0 }
 0x23d   :  { %v322_v57 = vpack.c.bf16 %v3751_v56, %v3751_v56 }
 0x23f   :  { %324 = vrot.lane.b32.xlu2 %v322_v57, %s3564_s2 }
 0x299   :  { %v325_v59 = vpop.permute.xlu2 %324 }
 0x29a   :  { %3036 = vmatmul.msk.bf16.vlgmr.msrb.gmra.mxu0 %vm258_vm8, %v325_v59 }
 0x317   :  { %v338_v5 = vpop.f32.mrf.mxu0 }
 0x318   :  { %v342_v6 = vadd.f32 %v338_v5, %v220_v4 }
 0x31a   :  { %v3037_v7 = vmul.f32 -1.442695, %v342_v6 }
 0x31c   :  { %3225 = vpow2.f32 %v3037_v7 }
 0x31f   :  { %v340_v8 = vpop.f32.mrf.mxu0 }
 0x322   :  { %v3226_v9 = vpop.eup %3225 }
 0x323   :  { %v347_v10 = vadd.f32 1.0, %v3226_v9 }
 0x325   :  { %3227 = vrcp.f32 %v347_v10  ;;  %v359_v14 = vand.u32 2147483648, %v347_v10  ;;  %v357_v17 = vand.u32 2147483647, %v347_v10  ;;  %vm353_vm10 = vweird.f32 %v347_v10 }
 0x326   :  { %3229 = vtanh.f32 %v342_v6 }
 0x327   :  { %v360_v19 = vor.u32 1.1754944e-38, %v359_v14  ;;  %vm358_vm12 = vcmp.eq.f32.partialorder %v357_v17, 8.507059e+37 }
 0x32b   :  { %v3228_v11 = vpop.eup %3227 }
 0x32c   :  { %v349_v12 = vmul.f32 %v3228_v11, %v347_v10  ;;  %vm354_vm9 = vweird.f32 %v3228_v11  ;;  %v3230_v21 = vpop.eup %3229 }
 0x32d   :  { %vm355_vm11 = vmor %vm353_vm10, %vm354_vm9  ;;  %vm114_vm10 = vcmp.gt.f32.partialorder %v3740_v52, 3.0 }
 0x32e   :  { %v350_v13 = vsub.f32 1.0, %v349_v12 }
 0x330   :  { %v351_v15 = vmul.f32 %v3228_v11, %v350_v13  ;;  %v225_v13 = vadd.f32 %v3709_v16, %v3757_v62 }
 0x332   :  { %v352_v18 = vadd.f32 %v3228_v11, %v351_v15 }
 0x334   :  { %v356_v20 = vsel %vm355_vm11, %v3228_v11, %v352_v18 }
 0x335   :  { %v361_v22 = vsel %vm358_vm12, %v360_v19, %v356_v20 }
 0x336   :  { %v363_v24 = vsel %vm3713_vm3, %v3230_v21, %v361_v22 }
 0x337   :  { %366 = vrot.lane.b32.xlu2 %v363_v24, %s3560_s18  ;;  %v364_v28 = vmul.f32 %v363_v24, %v315_v27 }
 0x391   :  { %v367_v25 = vpop.permute.xlu2 %366 }
 0x392   :  { %v369_v26 = vmul.f32 %v367_v25, %v363_v24 }
 0x394   :  { %371 = vrot.lane.b32.xlu0 %v369_v26, %s3564_s2 }
 0x406   :  { %v372_v29 = vpop.permute.xlu0 %371 }
 0x407   :  { %v374_v30 = vadd.f32 %v372_v29, %v364_v28 }
 0x409   :  { %3231 = vtanh.f32 %v374_v30  ;;  %v382_v61 = vsel %vm112_vm13, %v374_v30, %v315_v27 }
 0x40f   :  { %v3232_v32 = vpop.eup %3231 }
 0x410   :  { %377 = vrot.lane.b32.xlu1 %v3232_v32, %s3560_s18 }
 0x482   :  { %v378_v33 = vpop.permute.xlu1 %377 }
 0x483   :  { %v3776_v34 = vmul.f32 %v378_v33, %v363_v24 }
 0x485   :  { %v381_v35 = vsel %vm112_vm13, %v3776_v34, %v3751_v56 }
 0x486   :  { %v390_v36 = vpack.c.bf16 %v381_v35, %v381_v35 }
 0x488   :  { %392 = vrot.lane.b32.xlu2 %v390_v36, %s3564_s2 }
 0x4e2   :  { %v393_v37 = vpop.permute.xlu2 %392 }
 0x4e3   :  { %3038 = vmatmul.msk.bf16.vlgmr.msra.gmra.mxu3 %vm258_vm8, %v393_v37 }
 0x566   :  { %v406_v39 = vpop.f32.mrf.mxu3 }
 0x567   :  { %v410_v40 = vadd.f32 %v406_v39, %v223_v38 }
 0x569   :  { %v3039_v41 = vmul.f32 -1.442695, %v410_v40 }
 0x56b   :  { %3233 = vpow2.f32 %v3039_v41 }
 0x56e   :  { %v408_v42 = vpop.f32.mrf.mxu3 }
 0x571   :  { %v3234_v43 = vpop.eup %3233 }
 0x572   :  { %v415_v44 = vadd.f32 1.0, %v3234_v43 }
 0x574   :  { %3235 = vrcp.f32 %v415_v44  ;;  %v427_v48 = vand.u32 2147483648, %v415_v44  ;;  %v425_v50 = vand.u32 2147483647, %v415_v44  ;;  %vm421_vm15 = vweird.f32 %v415_v44 }
 0x575   :  { %3237 = vtanh.f32 %v410_v40 }
 0x576   :  { %v428_v53 = vor.u32 1.1754944e-38, %v427_v48  ;;  %vm426_vm1 = vcmp.eq.f32.partialorder %v425_v50, 8.507059e+37 }
 0x57a   :  { %v3236_v45 = vpop.eup %3235 }
 0x57b   :  { %v417_v46 = vmul.f32 %v3236_v45, %v415_v44  ;;  %vm422_vm14 = vweird.f32 %v3236_v45  ;;  %v3238_v55 = vpop.eup %3237 }
 0x57c   :  { %vm423_vm0 = vmor %vm421_vm15, %vm422_vm14 }
 0x57d   :  { %v418_v47 = vsub.f32 1.0, %v417_v46 }
 0x57f   :  { %v419_v49 = vmul.f32 %v3236_v45, %v418_v47  ;;  %v228_v47 = vadd.f32 %v3709_v16, %v3759_v63 }
 0x581   :  { %v420_v51 = vadd.f32 %v3236_v45, %v419_v49 }
 0x583   :  { %v424_v54 = vsel %vm423_vm0, %v3236_v45, %v420_v51  ;;  %vm115_vm0 = vcmp.gt.f32.partialorder %v3740_v52, 4.0 }
 0x584   :  { %v429_v57 = vsel %vm426_vm1, %v428_v53, %v424_v54 }
 0x585   :  { %v431_v58 = vsel %vm3713_vm3, %v3238_v55, %v429_v57 }
 0x586   :  { %434 = vrot.lane.b32.xlu0 %v431_v58, %s3560_s18  ;;  %v432_v4 = vmul.f32 %v431_v58, %v382_v61 }
 0x5f8   :  { %v435_v59 = vpop.permute.xlu0 %434 }
 0x5f9   :  { %v437_v60 = vmul.f32 %v435_v59, %v431_v58 }
 0x5fb   :  { %439 = vrot.lane.b32.xlu1 %v437_v60, %s3564_s2 }
 0x66d   :  { %v440_v5 = vpop.permute.xlu1 %439 }
 0x66e   :  { %v442_v6 = vadd.f32 %v440_v5, %v432_v4 }
 0x670   :  { %3239 = vtanh.f32 %v442_v6  ;;  %v450_v37 = vsel %vm113_vm2, %v442_v6, %v382_v61 }
 0x676   :  { %v3240_v7 = vpop.eup %3239 }
 0x677   :  { %445 = vrot.lane.b32.xlu2 %v3240_v7, %s3560_s18 }
 0x6d1   :  { %v446_v8 = vpop.permute.xlu2 %445 }
 0x6d2   :  { %v3793_v9 = vmul.f32 %v446_v8, %v431_v58 }
 0x6d4   :  { %v449_v10 = vsel %vm113_vm2, %v3793_v9, %v381_v35 }
 0x6d5   :  { %v458_v11 = vpack.c.bf16 %v449_v10, %v449_v10 }
 0x6d7   :  { %460 = vrot.lane.b32.xlu0 %v458_v11, %s3564_s2 }
 0x749   :  { %v461_v12 = vpop.permute.xlu0 %460 }
 0x74a   :  { %3040 = vmatmul.msk.bf16.vlgmr.msrb.gmra.mxu1 %vm258_vm8, %v461_v12 }
 0x7c7   :  { %v474_v14 = vpop.f32.mrf.mxu1 }
 0x7c8   :  { %v478_v15 = vadd.f32 %v474_v14, %v225_v13 }
 0x7ca   :  { %v3041_v17 = vmul.f32 -1.442695, %v478_v15 }
 0x7cc   :  { %3241 = vpow2.f32 %v3041_v17 }
 0x7cf   :  { %v476_v18 = vpop.f32.mrf.mxu1 }
 0x7d2   :  { %v3242_v19 = vpop.eup %3241 }
 0x7d3   :  { %v483_v20 = vadd.f32 1.0, %v3242_v19 }
 0x7d5   :  { %3243 = vrcp.f32 %v483_v20  ;;  %v495_v25 = vand.u32 2147483648, %v483_v20  ;;  %v493_v27 = vand.u32 2147483647, %v483_v20  ;;  %vm489_vm5 = vweird.f32 %v483_v20 }
 0x7d6   :  { %3245 = vtanh.f32 %v478_v15 }
 0x7d7   :  { %v496_v62 = vor.u32 1.1754944e-38, %v495_v25  ;;  %vm494_vm9 = vcmp.eq.f32.partialorder %v493_v27, 8.507059e+37 }
 0x7db   :  { %v3244_v21 = vpop.eup %3243 }
 0x7dc   :  { %v485_v22 = vmul.f32 %v3244_v21, %v483_v20  ;;  %vm490_vm4 = vweird.f32 %v3244_v21  ;;  %v3246_v30 = vpop.eup %3245 }
 0x7dd   :  { %vm491_vm6 = vmor %vm489_vm5, %vm490_vm4 }
 0x7de   :  { %v486_v24 = vsub.f32 1.0, %v485_v22 }
 0x7e0   :  { %v487_v26 = vmul.f32 %v3244_v21, %v486_v24  ;;  %v230_v24 = vadd.f32 %v3709_v16, %v3761_v1 }
 0x7e2   :  { %v488_v28 = vadd.f32 %v3244_v21, %v487_v26 }
 0x7e4   :  { %v492_v29 = vsel %vm491_vm6, %v3244_v21, %v488_v28 }
 0x7e5   :  { %v497_v32 = vsel %vm494_vm9, %v496_v62, %v492_v29  ;;  %vm116_vm9 = vcmp.gt.f32.partialorder %v3740_v52, 5.0 }
 0x7e6   :  { %v499_v33 = vsel %vm3713_vm3, %v3246_v30, %v497_v32 }
 0x7e7   :  { %502 = vrot.lane.b32.xlu1 %v499_v33, %s3560_s18  ;;  %v500_v38 = vmul.f32 %v499_v33, %v450_v37 }
 0x859   :  { %v503_v35 = vpop.permute.xlu1 %502 }
 0x85a   :  { %v505_v36 = vmul.f32 %v503_v35, %v499_v33 }
 0x85c   :  { %507 = vrot.lane.b32.xlu2 %v505_v36, %s3564_s2 }
 0x8b6   :  { %v508_v39 = vpop.permute.xlu2 %507 }
 0x8b7   :  { %v510_v40 = vadd.f32 %v508_v39, %v500_v38 }
 0x8b9   :  { %3247 = vtanh.f32 %v510_v40  ;;  %v518_v12 = vsel %vm114_vm10, %v510_v40, %v450_v37 }
 0x8bf   :  { %v3248_v41 = vpop.eup %3247 }
 0x8c0   :  { %513 = vrot.lane.b32.xlu0 %v3248_v41, %s3560_s18 }
 0x932   :  { %v514_v42 = vpop.permute.xlu0 %513 }
 0x933   :  { %v3810_v43 = vmul.f32 %v514_v42, %v499_v33 }
 0x935   :  { %v517_v44 = vsel %vm114_vm10, %v3810_v43, %v449_v10 }
 0x936   :  { %v526_v45 = vpack.c.bf16 %v517_v44, %v517_v44 }
 0x938   :  { %528 = vrot.lane.b32.xlu1 %v526_v45, %s3564_s2 }
 0x9aa   :  { %v529_v46 = vpop.permute.xlu1 %528 }
 0x9ab   :  { %3042 = vmatmul.msk.bf16.vlgmr.msra.gmra.mxu2 %vm258_vm8, %v529_v46 }
 0xa2e   :  { %v542_v48 = vpop.f32.mrf.mxu2 }
 0xa2f   :  { %v546_v49 = vadd.f32 %v542_v48, %v228_v47  ;;  %v383_v47 = vsel %vm112_vm13, %v3776_v34, 0.0  ;;  %v3178_v48 = vld [vmem:[%s4769_s5 + $0x8] sm:$0xff] }
 0xa30   :  { %849 = vmatpush.bf16.msra.mxu3 %v3178_v48 }
 0xa31   :  { %v3043_v50 = vmul.f32 -1.442695, %v546_v49 }
 0xa33   :  { %3249 = vpow2.f32 %v3043_v50 }
 0xa36   :  { %v544_v51 = vpop.f32.mrf.mxu2 }
 0xa39   :  { %v3250_v53 = vpop.eup %3249 }
 0xa3a   :  { %v551_v54 = vadd.f32 1.0, %v3250_v53 }
 0xa3c   :  { %3251 = vrcp.f32 %v551_v54  ;;  %v563_v59 = vand.u32 2147483648, %v551_v54  ;;  %v561_v61 = vand.u32 2147483647, %v551_v54  ;;  %vm557_vm12 = vweird.f32 %v551_v54 }
 0xa3d   :  { %3253 = vtanh.f32 %v546_v49 }
 0xa3e   :  { %v564_v63 = vor.u32 1.1754944e-38, %v563_v59  ;;  %vm562_vm15 = vcmp.eq.f32.partialorder %v561_v61, 8.507059e+37 }
 0xa42   :  { %v3252_v55 = vpop.eup %3251 }
 0xa43   :  { %v553_v57 = vmul.f32 %v3252_v55, %v551_v54  ;;  %vm558_vm11 = vweird.f32 %v3252_v55  ;;  %v3254_v6 = vpop.eup %3253 }
 0xa44   :  { %vm559_vm14 = vmor %vm557_vm12, %vm558_vm11 }
 0xa45   :  { %v554_v58 = vsub.f32 1.0, %v553_v57 }
 0xa47   :  { %v555_v60 = vmul.f32 %v3252_v55, %v554_v58 }
 0xa49   :  { %v556_v4 = vadd.f32 %v3252_v55, %v555_v60 }
 0xa4b   :  { %v560_v5 = vsel %vm559_vm14, %v3252_v55, %v556_v4 }
 0xa4c   :  { %v565_v7 = vsel %vm562_vm15, %v564_v63, %v560_v5  ;;  %v3879_v63 = vld [vmem:[%s4770_s6 + $0x8] sm:$0xff]  ;;  %v3885_v5 = vld [vmem:[%s4770_s6] sm:$0xff] }
 0xa4d   :  { %v567_v8 = vsel %vm3713_vm3, %v3254_v6, %v565_v7  ;;  %899 = vmatpush.bf16.msrb.mxu1 %v3879_v63  ;;  %966 = vmatpush.bf16.msra.mxu2 %v3879_v63  ;;  %v233_v7 = vadd.f32 %v3709_v16, %v3763_v2 }
 0xa4e   :  { %570 = vrot.lane.b32.xlu2 %v567_v8, %s3560_s18  ;;  %v568_v13 = vmul.f32 %v567_v8, %v518_v12  ;;  %1306 = vmatpush.bf16.msra.mxu0 %v3879_v63 }
 0xa51   :  { %900 = vmatpush.bf16.msrb.mxu1 %v3885_v5  ;;  %967 = vmatpush.bf16.msra.mxu2 %v3885_v5 }
 0xa52   :  { %1307 = vmatpush.bf16.msra.mxu0 %v3885_v5 }
 0xaa8   :  { %v571_v10 = vpop.permute.xlu2 %570 }
 0xaa9   :  { %v573_v11 = vmul.f32 %v571_v10, %v567_v8 }
 0xaab   :  { %575 = vrot.lane.b32.xlu0 %v573_v11, %s3564_s2 }
 0xb1d   :  { %v576_v14 = vpop.permute.xlu0 %575 }
 0xb1e   :  { %v578_v15 = vadd.f32 %v576_v14, %v568_v13  ;;  %v3903_v14 = vld [vmem:[%s4771_s7] ss:$0 sm:$0xff] }
 0xb20   :  { %3255 = vtanh.f32 %v578_v15  ;;  %v3856_v49 = vsel %vm115_vm0, %v578_v15, %v518_v12 }
 0xb26   :  { %v3256_v17 = vpop.eup %3255 }
 0xb27   :  { %581 = vrot.lane.b32.xlu1 %v3256_v17, %s3560_s18 }
 0xb99   :  { %v582_v18 = vpop.permute.xlu1 %581 }
 0xb9a   :  { %v3827_v19 = vmul.f32 %v582_v18, %v567_v8 }
 0xb9c   :  { %v585_v20 = vsel %vm115_vm0, %v3827_v19, %v517_v44 }
 0xb9d   :  { %v594_v21 = vpack.c.bf16 %v585_v20, %v585_v20 }
 0xb9f   :  { %596 = vrot.lane.b32.xlu2 %v594_v21, %s3564_s2 }
 0xbf9   :  { %v597_v22 = vpop.permute.xlu2 %596 }
 0xbfa   :  { %3044 = vmatmul.msk.bf16.vlgmr.msrb.gmra.mxu3 %vm258_vm8, %v597_v22 }
 0xc7d   :  { %v610_v25 = vpop.f32.mrf.mxu3 }
 0xc7e   :  { %v614_v26 = vadd.f32 %v610_v25, %v230_v24 }
 0xc80   :  { %v3045_v27 = vmul.f32 -1.442695, %v614_v26 }
 0xc82   :  { %3257 = vpow2.f32 %v3045_v27 }
 0xc85   :  { %v612_v28 = vpop.f32.mrf.mxu3 }
 0xc88   :  { %v3258_v62 = vpop.eup %3257 }
 0xc89   :  { %v619_v29 = vadd.f32 1.0, %v3258_v62 }
 0xc8b   :  { %3259 = vrcp.f32 %v619_v29  ;;  %v631_v35 = vand.u32 2147483648, %v619_v29  ;;  %v629_v37 = vand.u32 2147483647, %v619_v29  ;;  %vm625_vm4 = vweird.f32 %v619_v29 }
 0xc8c   :  { %3261 = vtanh.f32 %v614_v26 }
 0xc8d   :  { %v632_v1 = vor.u32 1.1754944e-38, %v631_v35  ;;  %vm630_vm6 = vcmp.eq.f32.partialorder %v629_v37, 8.507059e+37 }
 0xc91   :  { %v3260_v30 = vpop.eup %3259 }
 0xc92   :  { %v621_v32 = vmul.f32 %v3260_v30, %v619_v29  ;;  %vm626_vm1 = vweird.f32 %v3260_v30  ;;  %v3262_v40 = vpop.eup %3261 }
 0xc93   :  { %vm627_vm5 = vmor %vm625_vm4, %vm626_vm1 }
 0xc94   :  { %v622_v33 = vsub.f32 1.0, %v621_v32 }
 0xc96   :  { %v623_v36 = vmul.f32 %v3260_v30, %v622_v33 }
 0xc98   :  { %v624_v38 = vadd.f32 %v3260_v30, %v623_v36 }
 0xc9a   :  { %v628_v39 = vsel %vm627_vm5, %v3260_v30, %v624_v38 }
 0xc9b   :  { %v633_v41 = vsel %vm630_vm6, %v632_v1, %v628_v39 }
 0xc9c   :  { %v635_v42 = vsel %vm3713_vm3, %v3262_v40, %v633_v41 }
 0xc9d   :  { %638 = vrot.lane.b32.xlu0 %v635_v42, %s3560_s18  ;;  %v636_v50 = vmul.f32 %v635_v42, %v3856_v49 }
 0xca5   :  { %317 = vrot.lane.b32.xlu0 %v3751_v56, %s3564_s2  ;;  %v3177_v56 = vld [vmem:[%s4769_s5] sm:$0xff] }
 0xca6   :  { %850 = vmatpush.bf16.msra.mxu3 %v3177_v56 }
 0xd0f   :  { %v639_v44 = vpop.permute.xlu0 %638 }
 0xd10   :  { %v641_v45 = vmul.f32 %v639_v44, %v635_v42 }
 0xd12   :  { %643 = vrot.lane.b32.xlu1 %v641_v45, %s3564_s2 }
 0xd17   :  { %v318_v46 = vpop.permute.xlu0 %317 }
 0xd18   :  { %320 = vst.msk [vmem:[#allocation3] sm:$0xff] %vm258_vm8, %v318_v46 }
 0xd1a   :  { %385 = vrot.lane.b32.xlu1 %v383_v47, %s3564_s2 }
 0xd1f   :  { %v795_v55 = vld [vmem:[#allocation3] sm:$0xff] }
 0xd84   :  { %v644_v51 = vpop.permute.xlu1 %643 }
 0xd85   :  { %v3859_v34 = vadd.f32 %v644_v51, %v636_v50 }
 0xd87   :  { %3263 = vtanh.f32 %v3859_v34 }
 0xd8c   :  { %v386_v53 = vpop.permute.xlu1 %385 }
 0xd8d   :  { %v3264_v54 = vpop.eup %3263  ;;  %388 = vst.msk [vmem:[#allocation3 + $0x8] sm:$0xff] %vm258_vm8, %v386_v53 }
 0xd8e   :  { %649 = vrot.lane.b32.xlu2 %v3264_v54, %s3560_s18 }
 0xd94   :  { %v796_v57 = vld [vmem:[#allocation3 + $0x8] sm:$0xff] }
 0xd95   :  { %v812_v58 = vpack.c.bf16 %v796_v57, %v795_v55  ;;  %v3918_v55 = vsel %vm116_vm9, %v3859_v34, %v3856_v49 }
 0xd97   :  { %3058 = vmatmul.msk.bf16.vlgmr.msra.gmra.mxu3 %vm258_vm8, %v812_v58 }
 0xde8   :  { %v650_v59 = vpop.permute.xlu2 %649 }
 0xde9   :  { %v3865_v60 = vmul.f32 %v650_v59, %v635_v42 }
 0xdeb   :  { %v3871_v61 = vsel %vm116_vm9, %v3865_v60, %v585_v20 }
 0xdec   :  { %v662_v4 = vpack.c.bf16 %v3871_v61, %v3871_v61 }
 0xdee   :  { %664 = vrot.lane.b32.xlu2 %v662_v4, %s3564_s2 }
 0xe1a   :  { %v852_v15 = vpop.f32.mrf.mxu3 }
 0xe1b   :  { %v853_v18 = vadd.f32 %v3903_v14, %v852_v15 }
 0xe48   :  { %v665_v6 = vpop.permute.xlu2 %664 }
 0xe49   :  { %3046 = vmatmul.msk.bf16.vlgmr.msra.gmra.mxu1 %vm258_vm8, %v665_v6 }
 0xe4a   :  { %1034 = vmatpush.bf16.msra.mxu1 %v3879_v63 }
 0xe4e   :  { %1035 = vmatpush.bf16.msra.mxu1 %v3885_v5 }
 0xe59   :  { %901 = vmatmul.bf16.vlgmr.msrb.gmra.mxu1 %v3563_v0 }
 0xe5a   :  { %1170 = vmatpush.bf16.msrb.mxu1 %v3879_v63 }
 0xe5e   :  { %1171 = vmatpush.bf16.msrb.mxu1 %v3885_v5 }
 0xec6   :  { %v678_v8 = vpop.f32.mrf.mxu1 }
 0xec7   :  { %v682_v10 = vadd.f32 %v678_v8, %v233_v7 }
 0xec9   :  { %v3047_v11 = vmul.f32 -1.442695, %v682_v10 }
 0xecb   :  { %3265 = vpow2.f32 %v3047_v11 }
 0xece   :  { %v680_v12 = vpop.f32.mrf.mxu1 }
 0xed1   :  { %v3266_v13 = vpop.eup %3265 }
 0xed2   :  { %v687_v17 = vadd.f32 1.0, %v3266_v13 }
 0xed4   :  { %3267 = vrcp.f32 %v687_v17  ;;  %v699_v26 = vand.u32 2147483648, %v687_v17  ;;  %v697_v28 = vand.u32 2147483647, %v687_v17  ;;  %vm693_vm12 = vweird.f32 %v687_v17 }
 0xed6   :  { %v902_v20 = vpop.f32.mrf.mxu1  ;;  %v700_v32 = vor.u32 1.1754944e-38, %v699_v26  ;;  %vm698_vm15 = vcmp.eq.f32.partialorder %v697_v28, 8.507059e+37 }
 0xed7   :  { %v906_v21 = vadd.f32 %v902_v20, %v853_v18 }
 0xed9   :  { %v3070_v22 = vmul.f32 -1.442695, %v906_v21 }
 0xeda   :  { %v3268_v16 = vpop.eup %3267 }
 0xedb   :  { %3269 = vpow2.f32 %v3070_v22  ;;  %v689_v2 = vmul.f32 %v3268_v16, %v687_v17  ;;  %vm694_vm11 = vweird.f32 %v3268_v16 }
 0xedc   :  { %3271 = vtanh.f32 %v682_v10  ;;  %vm695_vm14 = vmor %vm693_vm12, %vm694_vm11  ;;  %vm117_vm11 = vcmp.gt.f32.partialorder %v3740_v52, 6.0 }
 0xedd   :  { %v690_v24 = vsub.f32 1.0, %v689_v2 }
 0xede   :  { %v904_v25 = vpop.f32.mrf.mxu1 }
 0xedf   :  { %v691_v27 = vmul.f32 %v3268_v16, %v690_v24 }
 0xee1   :  { %v3270_v62 = vpop.eup %3269  ;;  %v692_v29 = vadd.f32 %v3268_v16, %v691_v27 }
 0xee2   :  { %v911_v30 = vadd.f32 1.0, %v3270_v62  ;;  %v3272_v35 = vpop.eup %3271 }
 0xee3   :  { %v696_v33 = vsel %vm695_vm14, %v3268_v16, %v692_v29  ;;  %v854_v16 = vpop.f32.mrf.mxu3 }
 0xee4   :  { %3273 = vrcp.f32 %v911_v30  ;;  %v701_v36 = vsel %vm698_vm15, %v700_v32, %v696_v33  ;;  %v923_v40 = vand.u32 2147483648, %v911_v30  ;;  %v921_v42 = vand.u32 2147483647, %v911_v30 }
 0xee5   :  { %v703_v37 = vsel %vm3713_vm3, %v3272_v35, %v701_v36  ;;  %3275 = vtanh.f32 %v906_v21  ;;  %vm917_vm4 = vweird.f32 %v911_v30  ;;  %v855_v2 = vadd.f32 %v3903_v14, %v854_v16 }
 0xee6   :  { %706 = vrot.lane.b32.xlu0 %v703_v37, %s3560_s18  ;;  %v924_v45 = vor.u32 1.1754944e-38, %v923_v40  ;;  %vm922_vm6 = vcmp.eq.f32.partialorder %v921_v42, 8.507059e+37  ;;  %v704_v57 = vmul.f32 %v703_v37, %v3918_v55  ;;  %v451_v42 = vsel %vm113_vm2, %v3793_v9, 0.0 }
 0xeea   :  { %v3274_v38 = vpop.eup %3273 }
 0xeeb   :  { %v913_v1 = vmul.f32 %v3274_v38, %v911_v30  ;;  %vm918_vm1 = vweird.f32 %v3274_v38  ;;  %v3276_v47 = vpop.eup %3275 }
 0xeec   :  { %vm919_vm5 = vmor %vm917_vm4, %vm918_vm1 }
 0xeed   :  { %v914_v39 = vsub.f32 1.0, %v913_v1 }
 0xeef   :  { %v915_v41 = vmul.f32 %v3274_v38, %v914_v39 }
 0xef1   :  { %v916_v44 = vadd.f32 %v3274_v38, %v915_v41 }
 0xef3   :  { %v920_v46 = vsel %vm919_vm5, %v3274_v38, %v916_v44 }
 0xef4   :  { %v925_v48 = vsel %vm922_vm6, %v924_v45, %v920_v46 }
 0xef5   :  { %v927_v56 = vsel %vm3713_vm3, %v3276_v47, %v925_v48  ;;  %v519_v47 = vsel %vm114_vm10, %v3810_v43, 0.0 }
 0xef6   :  { %930 = vrot.lane.b32.xlu1 %v927_v56, %s3560_s18  ;;  %v928_v6 = vmul.f32 0.0, %v927_v56 }
 0xf58   :  { %v707_v50 = vpop.permute.xlu0 %706 }
 0xf59   :  { %v709_v51 = vmul.f32 %v707_v50, %v703_v37 }
 0xf5b   :  { %711 = vrot.lane.b32.xlu2 %v709_v51, %s3564_s2 }
 0xf68   :  { %v931_v53 = vpop.permute.xlu1 %930 }
 0xf69   :  { %v933_v54 = vmul.f32 %v931_v53, %v927_v56 }
 0xf6b   :  { %935 = vrot.lane.b32.xlu0 %v933_v54, %s3564_s2 }
 0xfb5   :  { %v712_v58 = vpop.permute.xlu2 %711 }
 0xfb6   :  { %v3921_v59 = vadd.f32 %v712_v58, %v704_v57 }
 0xfb8   :  { %3277 = vtanh.f32 %v3921_v59 }
 0xfbe   :  { %v3278_v4 = vpop.eup %3277 }
 0xfbf   :  { %717 = vrot.lane.b32.xlu1 %v3278_v4, %s3560_s18 }
 0xfdd   :  { %v936_v7 = vpop.permute.xlu0 %935 }
 0xfde   :  { %v938_v8 = vadd.f32 %v936_v7, %v928_v6 }
 0xfe0   :  { %3279 = vtanh.f32 %v938_v8  ;;  %v946_v48 = vsel %vm111_vm7, %v938_v8, 0.0 }
 0xfe6   :  { %v3280_v10 = vpop.eup %3279 }
 0xfe7   :  { %941 = vrot.lane.b32.xlu2 %v3280_v10, %s3560_s18 }
0x1031   :  { %v718_v11 = vpop.permute.xlu1 %717 }
0x1032   :  { %v3926_v49 = vmul.f32 %v718_v11, %v703_v37 }
0x1034   :  { %v721_v34 = vsel %vm117_vm11, %v3926_v49, %v3871_v61 }
0x1035   :  { %v730_v12 = vpack.c.bf16 %v721_v34, %v721_v34 }
0x1037   :  { %732 = vrot.lane.b32.xlu0 %v730_v12, %s3564_s2 }
0x1041   :  { %v942_v13 = vpop.permute.xlu2 %941 }
0x1042   :  { %v944_v15 = vmul.f32 %v942_v13, %v927_v56 }
0x1044   :  { %v3936_v17 = vsel %vm111_vm7, %v944_v15, 0.0 }
0x1045   :  { %v953_v18 = vpack.c.bf16 %v3936_v17, %v3936_v17 }
0x1047   :  { %955 = vrot.lane.b32.xlu1 %v953_v18, %s3564_s2 }
0x10a9   :  { %v733_v20 = vpop.permute.xlu0 %732 }
0x10aa   :  { %3048 = vmatmul.msk.bf16.vlgmr.msrb.gmra.mxu2 %vm258_vm8, %v733_v20 }
0x10ab   :  { %1102 = vmatpush.bf16.msrb.mxu2 %v3879_v63 }
0x10af   :  { %1103 = vmatpush.bf16.msrb.mxu2 %v3885_v5 }
0x10b9   :  { %v956_v61 = vpop.permute.xlu1 %955 }
0x10ba   :  { %3071 = vmatmul.msk.bf16.vlgmr.msra.gmra.mxu2 %vm258_vm8, %v956_v61 }
0x10bb   :  { %1238 = vmatpush.bf16.msra.mxu2 %v3879_v63 }
0x10bf   :  { %1239 = vmatpush.bf16.msra.mxu2 %v3885_v5 }
0x112d   :  { %v3947_v21 = vpop.f32.mrf.mxu2 }
0x1135   :  { %v748_v22 = vpop.f32.mrf.mxu2 }
0x113d   :  { %v969_v24 = vpop.f32.mrf.mxu2 }
0x113e   :  { %v973_v25 = vadd.f32 %v969_v24, %v855_v2 }
0x1140   :  { %v3072_v26 = vmul.f32 -1.442695, %v973_v25 }
0x1142   :  { %3281 = vpow2.f32 %v3072_v26 }
0x1145   :  { %v971_v27 = vpop.f32.mrf.mxu2 }
0x1148   :  { %v3282_v28 = vpop.eup %3281 }
0x1149   :  { %v978_v62 = vadd.f32 1.0, %v3282_v28 }
0x114b   :  { %3283 = vrcp.f32 %v978_v62  ;;  %v990_v33 = vand.u32 2147483648, %v978_v62  ;;  %v988_v36 = vand.u32 2147483647, %v978_v62  ;;  %vm984_vm14 = vweird.f32 %v978_v62 }
0x114c   :  { %3285 = vtanh.f32 %v973_v25 }
0x114d   :  { %v991_v38 = vor.u32 1.1754944e-38, %v990_v33  ;;  %vm989_vm1 = vcmp.eq.f32.partialorder %v988_v36, 8.507059e+37 }
0x1151   :  { %v3284_v29 = vpop.eup %3283 }
0x1152   :  { %v980_v30 = vmul.f32 %v3284_v29, %v978_v62  ;;  %vm985_vm12 = vweird.f32 %v3284_v29  ;;  %v3286_v39 = vpop.eup %3285 }
0x1153   :  { %vm986_vm15 = vmor %vm984_vm14, %vm985_vm12 }
0x1154   :  { %v981_v32 = vsub.f32 1.0, %v980_v30 }
0x1156   :  { %v982_v35 = vmul.f32 %v3284_v29, %v981_v32 }
0x1158   :  { %v983_v37 = vadd.f32 %v3284_v29, %v982_v35 }
0x115a   :  { %v987_v1 = vsel %vm986_vm15, %v3284_v29, %v983_v37 }
0x115b   :  { %v992_v40 = vsel %vm989_vm1, %v991_v38, %v987_v1 }
0x115c   :  { %v994_v41 = vsel %vm3713_vm3, %v3286_v39, %v992_v40 }
0x115d   :  { %997 = vrot.lane.b32.xlu2 %v994_v41, %s3560_s18  ;;  %v995_v56 = vmul.f32 %v994_v41, %v946_v48 }
0x1165   :  { %453 = vrot.lane.b32.xlu2 %v451_v42, %s3564_s2 }
0x11b7   :  { %v998_v44 = vpop.permute.xlu2 %997 }
0x11b8   :  { %v1000_v45 = vmul.f32 %v998_v44, %v994_v41 }
0x11ba   :  { %1002 = vrot.lane.b32.xlu0 %v1000_v45, %s3564_s2 }
0x11bf   :  { %v454_v46 = vpop.permute.xlu2 %453 }
0x11c0   :  { %456 = vst.msk [vmem:[#allocation3 + $0x10] sm:$0xff] %vm258_vm8, %v454_v46 }
0x11c2   :  { %521 = vrot.lane.b32.xlu0 %v519_v47, %s3564_s2 }
0x11c7   :  { %v797_v54 = vld [vmem:[#allocation3 + $0x10] sm:$0xff] }
0x122c   :  { %v1003_v9 = vpop.permute.xlu0 %1002 }
0x122d   :  { %v1005_v50 = vadd.f32 %v1003_v9, %v995_v56 }
0x122f   :  { %3287 = vtanh.f32 %v1005_v50  ;;  %v1013_v32 = vsel %vm112_vm13, %v1005_v50, %v946_v48 }
0x1234   :  { %v522_v51 = vpop.permute.xlu0 %521 }
0x1235   :  { %v3288_v53 = vpop.eup %3287  ;;  %524 = vst.msk [vmem:[#allocation3 + $0x18] sm:$0xff] %vm258_vm8, %v522_v51 }
0x1236   :  { %1008 = vrot.lane.b32.xlu1 %v3288_v53, %s3560_s18 }
0x123c   :  { %v798_v57 = vld [vmem:[#allocation3 + $0x18] sm:$0xff] }
0x123d   :  { %v813_v58 = vpack.c.bf16 %v798_v57, %v797_v54 }
0x123f   :  { %3059 = vmatmul.msk.bf16.gmra.mxu3 %vm258_vm8, %v813_v58 }
0x12a8   :  { %v1009_v43 = vpop.permute.xlu1 %1008 }
0x12a9   :  { %v3968_v4 = vmul.f32 %v1009_v43, %v994_v41 }
0x12ab   :  { %v1012_v6 = vsel %vm112_vm13, %v3968_v4, %v3936_v17 }
0x12ac   :  { %v1021_v7 = vpack.c.bf16 %v1012_v6, %v1012_v6 }
0x12ae   :  { %1023 = vrot.lane.b32.xlu1 %v1021_v7, %s3564_s2 }
0x12c2   :  { %v857_v10 = vpop.f32.mrf.mxu3 }
0x12c3   :  { %v858_v11 = vadd.f32 %v3903_v14, %v857_v10 }
0x12ca   :  { %v859_v42 = vpop.f32.mrf.mxu3 }
0x12cb   :  { %v860_v44 = vadd.f32 %v3903_v14, %v859_v42 }
0x1320   :  { %v1024_v8 = vpop.permute.xlu1 %1023 }
0x1321   :  { %3073 = vmatmul.msk.bf16.vlgmr.msra.gmra.mxu1 %vm258_vm8, %v1024_v8 }
0x1322   :  { %1374 = vmatpush.bf16.msra.mxu1 %v3879_v63 }
0x1326   :  { %1375 = vmatpush.bf16.msra.mxu1 %v3885_v5 }
0x139e   :  { %v1037_v34 = vpop.f32.mrf.mxu1 }
0x139f   :  { %v1041_v12 = vadd.f32 %v1037_v34, %v858_v11  ;;  %v587_v34 = vsel %vm115_vm0, %v3827_v19, 0.0 }
0x13a1   :  { %v3074_v13 = vmul.f32 -1.442695, %v1041_v12 }
0x13a3   :  { %3289 = vpow2.f32 %v3074_v13 }
0x13a6   :  { %v1039_v15 = vpop.f32.mrf.mxu1 }
0x13a9   :  { %v3290_v18 = vpop.eup %3289 }
0x13aa   :  { %v1046_v20 = vadd.f32 1.0, %v3290_v18  ;;  %v655_v18 = vsel %vm116_vm9, %v3865_v60, 0.0 }
0x13ac   :  { %3291 = vrcp.f32 %v1046_v20  ;;  %v1058_v2 = vand.u32 2147483648, %v1046_v20  ;;  %v1056_v63 = vand.u32 2147483647, %v1046_v20  ;;  %vm1052_vm5 = vweird.f32 %v1046_v20 }
0x13ad   :  { %3293 = vtanh.f32 %v1041_v12 }
0x13ae   :  { %v1059_v25 = vor.u32 1.1754944e-38, %v1058_v2  ;;  %vm1057_vm12 = vcmp.eq.f32.partialorder %v1056_v63, 8.507059e+37 }
0x13b2   :  { %v3292_v61 = vpop.eup %3291 }
0x13b3   :  { %v1048_v22 = vmul.f32 %v3292_v61, %v1046_v20  ;;  %vm1053_vm4 = vweird.f32 %v3292_v61  ;;  %v3294_v27 = vpop.eup %3293 }
0x13b4   :  { %vm1054_vm6 = vmor %vm1052_vm5, %vm1053_vm4 }
0x13b5   :  { %v1049_v16 = vsub.f32 1.0, %v1048_v22 }
0x13b7   :  { %v1050_v24 = vmul.f32 %v3292_v61, %v1049_v16 }
0x13b9   :  { %v1051_v5 = vadd.f32 %v3292_v61, %v1050_v24 }
0x13bb   :  { %v1055_v26 = vsel %vm1054_vm6, %v3292_v61, %v1051_v5 }
0x13bc   :  { %v1060_v28 = vsel %vm1057_vm12, %v1059_v25, %v1055_v26 }
0x13bd   :  { %v1062_v62 = vsel %vm3713_vm3, %v3294_v27, %v1060_v28 }
0x13be   :  { %1065 = vrot.lane.b32.xlu2 %v1062_v62, %s3560_s18  ;;  %v1063_v33 = vmul.f32 %v1062_v62, %v1013_v32 }
0x1418   :  { %v1066_v29 = vpop.permute.xlu2 %1065 }
0x1419   :  { %v1068_v30 = vmul.f32 %v1066_v29, %v1062_v62 }
0x141b   :  { %1070 = vrot.lane.b32.xlu0 %v1068_v30, %s3564_s2 }
0x148d   :  { %v1071_v35 = vpop.permute.xlu0 %1070 }
0x148e   :  { %v1073_v36 = vadd.f32 %v1071_v35, %v1063_v33 }
0x1490   :  { %3295 = vtanh.f32 %v1073_v36  ;;  %v4009_v20 = vsel %vm113_vm2, %v1073_v36, %v1013_v32 }
0x1496   :  { %v3296_v37 = vpop.eup %3295 }
0x1497   :  { %1076 = vrot.lane.b32.xlu1 %v3296_v37, %s3560_s18 }
0x1509   :  { %v1077_v38 = vpop.permute.xlu1 %1076 }
0x150a   :  { %v3986_v1 = vmul.f32 %v1077_v38, %v1062_v62 }
0x150c   :  { %v1080_v39 = vsel %vm113_vm2, %v3986_v1, %v1012_v6 }
0x150d   :  { %v1089_v40 = vpack.c.bf16 %v1080_v39, %v1080_v39 }
0x150f   :  { %1091 = vrot.lane.b32.xlu2 %v1089_v40, %s3564_s2 }
0x1569   :  { %v1092_v41 = vpop.permute.xlu2 %1091 }
0x156a   :  { %3075 = vmatmul.msk.bf16.vlgmr.msrb.gmra.mxu2 %vm258_vm8, %v1092_v41 }
0x15ed   :  { %v1105_v45 = vpop.f32.mrf.mxu2 }
0x15ee   :  { %v1109_v46 = vadd.f32 %v1105_v45, %v860_v44 }
0x15f0   :  { %v3076_v47 = vmul.f32 -1.442695, %v1109_v46 }
0x15f2   :  { %3297 = vpow2.f32 %v3076_v47 }
0x15f5   :  { %v1107_v48 = vpop.f32.mrf.mxu2 }
0x15f8   :  { %v3298_v56 = vpop.eup %3297 }
0x15f9   :  { %v1114_v9 = vadd.f32 1.0, %v3298_v56 }
0x15fb   :  { %3299 = vrcp.f32 %v1114_v9  ;;  %v1126_v54 = vand.u32 2147483648, %v1114_v9  ;;  %v1124_v58 = vand.u32 2147483647, %v1114_v9  ;;  %vm1120_vm15 = vweird.f32 %v1114_v9 }
0x15fc   :  { %3301 = vtanh.f32 %v1109_v46 }
0x15fd   :  { %v1127_v6 = vor.u32 1.1754944e-38, %v1126_v54  ;;  %vm1125_vm4 = vcmp.eq.f32.partialorder %v1124_v58, 8.507059e+37 }
0x1601   :  { %v3300_v50 = vpop.eup %3299 }
0x1602   :  { %v1116_v51 = vmul.f32 %v3300_v50, %v1114_v9  ;;  %vm1121_vm14 = vweird.f32 %v3300_v50  ;;  %v3302_v8 = vpop.eup %3301 }
0x1603   :  { %vm1122_vm1 = vmor %vm1120_vm15, %vm1121_vm14 }
0x1604   :  { %v1117_v53 = vsub.f32 1.0, %v1116_v51 }
0x1606   :  { %v1118_v57 = vmul.f32 %v3300_v50, %v1117_v53 }
0x1608   :  { %v1119_v43 = vadd.f32 %v3300_v50, %v1118_v57 }
0x160a   :  { %v1123_v7 = vsel %vm1122_vm1, %v3300_v50, %v1119_v43  ;;  %v3479_v50 = vld [vmem:[%s4768_s4] ss:$0 sm:$0xff] }
0x160b   :  { %v1128_v10 = vsel %vm1125_vm4, %v1127_v6, %v1123_v7  ;;  %v235_v51 = vadd.f32 %v3479_v50, %v3765_v3 }
0x160c   :  { %v1130_v11 = vsel %vm3713_vm3, %v3302_v8, %v1128_v10 }
0x160d   :  { %1133 = vrot.lane.b32.xlu0 %v1130_v11, %s3560_s18  ;;  %v1131_v19 = vmul.f32 %v1130_v11, %v4009_v20  ;;  %v750_v53 = vadd.f32 %v3947_v21, %v235_v51 }
0x160f   :  { %v3049_v54 = vmul.f32 -1.442695, %v750_v53 }
0x1615   :  { %589 = vrot.lane.b32.xlu0 %v587_v34, %s3564_s2 }
0x167f   :  { %v1134_v12 = vpop.permute.xlu0 %1133 }
0x1680   :  { %v1136_v13 = vmul.f32 %v1134_v12, %v1130_v11 }
0x1682   :  { %1138 = vrot.lane.b32.xlu1 %v1136_v13, %s3564_s2 }
0x1687   :  { %v590_v15 = vpop.permute.xlu0 %589 }
0x1688   :  { %592 = vst.msk [vmem:[#allocation3 + $0x20] sm:$0xff] %vm258_vm8, %v590_v15 }
0x168a   :  { %657 = vrot.lane.b32.xlu1 %v655_v18, %s3564_s2 }
0x168f   :  { %v799_v60 = vld [vmem:[#allocation3 + $0x20] sm:$0xff] }
0x16f4   :  { %v1139_v61 = vpop.permute.xlu1 %1138 }
0x16f5   :  { %v4012_v22 = vadd.f32 %v1139_v61, %v1131_v19 }
0x16f7   :  { %3303 = vtanh.f32 %v4012_v22  ;;  %v4046_v61 = vsel %vm114_vm10, %v4012_v22, %v4009_v20 }
0x16fc   :  { %v658_v16 = vpop.permute.xlu1 %657 }
0x16fd   :  { %v3304_v2 = vpop.eup %3303  ;;  %660 = vst.msk [vmem:[#allocation3 + $0x28] sm:$0xff] %vm258_vm8, %v658_v16 }
0x16fe   :  { %1144 = vrot.lane.b32.xlu2 %v3304_v2, %s3560_s18 }
0x1704   :  { %v800_v24 = vld [vmem:[#allocation3 + $0x28] sm:$0xff] }
0x1705   :  { %v814_v63 = vpack.c.bf16 %v800_v24, %v799_v60 }
0x1707   :  { %3060 = vmatmul.msk.bf16.gmra.mxu3 %vm258_vm8, %v814_v63 }
0x1758   :  { %v1145_v5 = vpop.permute.xlu2 %1144 }
0x1759   :  { %v4018_v25 = vmul.f32 %v1145_v5, %v1130_v11 }
0x175b   :  { %v4023_v26 = vsel %vm114_vm10, %v4018_v25, %v1080_v39 }
0x175c   :  { %v1157_v27 = vpack.c.bf16 %v4023_v26, %v4023_v26 }
0x175e   :  { %1159 = vrot.lane.b32.xlu2 %v1157_v27, %s3564_s2 }
0x178a   :  { %v862_v62 = vpop.f32.mrf.mxu3 }
0x178b   :  { %v863_v29 = vadd.f32 %v3903_v14, %v862_v62 }
0x17b8   :  { %v1160_v28 = vpop.permute.xlu2 %1159 }
0x17b9   :  { %3077 = vmatmul.msk.bf16.vlgmr.msrb.gmra.mxu1 %vm258_vm8, %v1160_v28 }
0x1836   :  { %v1173_v30 = vpop.f32.mrf.mxu1 }
0x1837   :  { %v1177_v32 = vadd.f32 %v1173_v30, %v863_v29  ;;  %v864_v29 = vpop.f32.mrf.mxu3 }
0x1838   :  { %v865_v30 = vadd.f32 %v3903_v14, %v864_v29 }
0x1839   :  { %v3078_v33 = vmul.f32 -1.442695, %v1177_v32 }
0x183b   :  { %3305 = vpow2.f32 %v3078_v33 }
0x183e   :  { %v1175_v35 = vpop.f32.mrf.mxu1 }
0x1841   :  { %v3306_v36 = vpop.eup %3305 }
0x1842   :  { %v1182_v37 = vadd.f32 1.0, %v3306_v36 }
0x1844   :  { %3307 = vrcp.f32 %v1182_v37  ;;  %v1194_v41 = vand.u32 2147483648, %v1182_v37  ;;  %v1192_v44 = vand.u32 2147483647, %v1182_v37  ;;  %vm1188_vm6 = vweird.f32 %v1182_v37 }
0x1845   :  { %3309 = vtanh.f32 %v1177_v32 }
0x1846   :  { %v1195_v46 = vor.u32 1.1754944e-38, %v1194_v41  ;;  %vm1193_vm14 = vcmp.eq.f32.partialorder %v1192_v44, 8.507059e+37  ;;  %3311 = vpow2.f32 %v3049_v54 }
0x184a   :  { %v3308_v38 = vpop.eup %3307 }
0x184b   :  { %v1184_v39 = vmul.f32 %v3308_v38, %v1182_v37  ;;  %vm1189_vm5 = vweird.f32 %v3308_v38  ;;  %v3310_v48 = vpop.eup %3309 }
0x184c   :  { %vm1190_vm12 = vmor %vm1188_vm6, %vm1189_vm5  ;;  %v3312_v57 = vpop.eup %3311 }
0x184d   :  { %v1185_v40 = vsub.f32 1.0, %v1184_v39  ;;  %v755_v58 = vadd.f32 1.0, %v3312_v57 }
0x184f   :  { %v1186_v42 = vmul.f32 %v3308_v38, %v1185_v40  ;;  %3313 = vrcp.f32 %v755_v58  ;;  %v767_v12 = vand.u32 2147483648, %v755_v58  ;;  %vm761_vm1 = vweird.f32 %v755_v58 }
0x1850   :  { %v765_v13 = vand.u32 2147483647, %v755_v58  ;;  %3315 = vtanh.f32 %v750_v53 }
0x1851   :  { %v1187_v45 = vadd.f32 %v3308_v38, %v1186_v42  ;;  %v768_v21 = vor.u32 1.1754944e-38, %v767_v12 }
0x1852   :  { %vm766_vm5 = vcmp.eq.f32.partialorder %v765_v13, 8.507059e+37 }
0x1853   :  { %v1191_v47 = vsel %vm1190_vm12, %v3308_v38, %v1187_v45  ;;  %v722_v45 = vsel %vm117_vm11, %v3921_v59, %v3918_v55 }
0x1854   :  { %v1196_v56 = vsel %vm1193_vm14, %v1195_v46, %v1191_v47 }
0x1855   :  { %v1198_v9 = vsel %vm3713_vm3, %v3310_v48, %v1196_v56  ;;  %v3314_v43 = vpop.eup %3313 }
0x1856   :  { %1201 = vrot.lane.b32.xlu0 %v1198_v9, %s3560_s18  ;;  %v757_v6 = vmul.f32 %v3314_v43, %v755_v58  ;;  %vm762_vm15 = vweird.f32 %v3314_v43  ;;  %v3316_v18 = vpop.eup %3315  ;;  %v1199_v16 = vmul.f32 %v1198_v9, %v4046_v61 }
0x1857   :  { %vm763_vm4 = vmor %vm761_vm1, %vm762_vm15  ;;  %vm118_vm1 = vcmp.gt.f32.partialorder %v3740_v52, 7.0 }
0x1858   :  { %v758_v7 = vsub.f32 1.0, %v757_v6  ;;  %v723_v6 = vsel %vm117_vm11, %v3926_v49, 0.0 }
0x185a   :  { %v759_v8 = vmul.f32 %v3314_v43, %v758_v7 }
0x185c   :  { %v760_v11 = vadd.f32 %v3314_v43, %v759_v8 }
0x185e   :  { %v764_v3 = vsel %vm763_vm4, %v3314_v43, %v760_v11 }
0x185f   :  { %v769_v15 = vsel %vm766_vm5, %v768_v21, %v764_v3 }
0x1860   :  { %v771_v19 = vsel %vm3713_vm3, %v3316_v18, %v769_v15 }
0x1861   :  { %v772_v47 = vmul.f32 %v771_v19, %v722_v45 }
0x18c8   :  { %v1202_v10 = vpop.permute.xlu0 %1201 }
0x18c9   :  { %v1204_v34 = vmul.f32 %v1202_v10, %v1198_v9 }
0x18cb   :  { %1206 = vrot.lane.b32.xlu1 %v1204_v34, %s3564_s2 }
0x18d3   :  { %774 = vrot.lane.b32.xlu1 %v771_v19, %s3560_s18 }
0x193d   :  { %v1207_v2 = vpop.permute.xlu1 %1206 }
0x193e   :  { %v1209_v60 = vadd.f32 %v1207_v2, %v1199_v16 }
0x1940   :  { %3317 = vtanh.f32 %v1209_v60  ;;  %v1217_v10 = vsel %vm115_vm0, %v1209_v60, %v4046_v61 }
0x1945   :  { %v775_v22 = vpop.permute.xlu1 %774 }
0x1946   :  { %v3318_v24 = vpop.eup %3317  ;;  %v777_v28 = vmul.f32 %v775_v22, %v771_v19 }
0x1947   :  { %1212 = vrot.lane.b32.xlu2 %v3318_v24, %s3560_s18 }
0x19a1   :  { %v1213_v63 = vpop.permute.xlu2 %1212 }
0x19a2   :  { %v4050_v5 = vmul.f32 %v1213_v63, %v1198_v9 }
0x19a4   :  { %v4056_v27 = vsel %vm115_vm0, %v4050_v5, %v4023_v26 }
0x19a5   :  { %v1225_v20 = vpack.c.bf16 %v4056_v27, %v4056_v27 }
0x19a7   :  { %1227 = vrot.lane.b32.xlu0 %v1225_v20, %s3564_s2 }
0x19af   :  { %779 = vrot.lane.b32.xlu0 %v777_v28, %s3564_s2 }
0x1a19   :  { %v1228_v62 = vpop.permute.xlu0 %1227 }
0x1a1a   :  { %3079 = vmatmul.msk.bf16.vlgmr.msra.gmra.mxu2 %vm258_vm8, %v1228_v62 }
0x1a21   :  { %v780_v46 = vpop.permute.xlu0 %779 }
0x1a22   :  { %v782_v9 = vadd.f32 %v780_v46, %v772_v47 }
0x1a9d   :  { %v1241_v32 = vpop.f32.mrf.mxu2 }
0x1a9e   :  { %v1245_v33 = vadd.f32 %v1241_v32, %v865_v30 }
0x1aa0   :  { %v3080_v35 = vmul.f32 -1.442695, %v1245_v33 }
0x1aa2   :  { %3319 = vpow2.f32 %v3080_v35 }
0x1aa5   :  { %v1243_v26 = vpop.f32.mrf.mxu2 }
0x1aa8   :  { %v3320_v36 = vpop.eup %3319 }
0x1aa9   :  { %v1250_v37 = vadd.f32 1.0, %v3320_v36 }
0x1aab   :  { %3321 = vrcp.f32 %v1250_v37  ;;  %v1262_v41 = vand.u32 2147483648, %v1250_v37  ;;  %v1260_v44 = vand.u32 2147483647, %v1250_v37  ;;  %vm1256_vm12 = vweird.f32 %v1250_v37 }
0x1aac   :  { %3323 = vtanh.f32 %v1245_v33 }
0x1aad   :  { %v1263_v56 = vor.u32 1.1754944e-38, %v1262_v41  ;;  %vm1261_vm15 = vcmp.eq.f32.partialorder %v1260_v44, 8.507059e+37  ;;  %3325 = vtanh.f32 %v782_v9 }
0x1ab1   :  { %v3322_v38 = vpop.eup %3321 }
0x1ab2   :  { %v1252_v39 = vmul.f32 %v3322_v38, %v1250_v37  ;;  %vm1257_vm6 = vweird.f32 %v3322_v38  ;;  %v3324_v51 = vpop.eup %3323 }
0x1ab3   :  { %vm1258_vm14 = vmor %vm1256_vm12, %vm1257_vm6  ;;  %v3326_v57 = vpop.eup %3325 }
0x1ab4   :  { %v1253_v40 = vsub.f32 1.0, %v1252_v39 }
0x1ab6   :  { %v1254_v42 = vmul.f32 %v3322_v38, %v1253_v40 }
0x1ab8   :  { %v1255_v48 = vadd.f32 %v3322_v38, %v1254_v42 }
0x1aba   :  { %v1259_v50 = vsel %vm1258_vm14, %v3322_v38, %v1255_v48 }
0x1abb   :  { %v1264_v53 = vsel %vm1261_vm15, %v1263_v56, %v1259_v50 }
0x1abc   :  { %v1266_v54 = vsel %vm3713_vm3, %v3324_v51, %v1264_v53 }
0x1abd   :  { %1269 = vrot.lane.b32.xlu2 %v1266_v54, %s3560_s18  ;;  %v1267_v11 = vmul.f32 %v1266_v54, %v1217_v10 }
0x1ac5   :  { %785 = vrot.lane.b32.xlu2 %v3326_v57, %s3560_s18 }
0x1b17   :  { %v1270_v55 = vpop.permute.xlu2 %1269 }
0x1b18   :  { %v1272_v59 = vmul.f32 %v1270_v55, %v1266_v54 }
0x1b1a   :  { %1274 = vrot.lane.b32.xlu1 %v1272_v59, %s3564_s2 }
0x1b1f   :  { %v786_v58 = vpop.permute.xlu2 %785 }
0x1b20   :  { %v788_v43 = vmul.f32 %v786_v58, %v771_v19 }
0x1b22   :  { %725 = vrot.lane.b32.xlu1 %v723_v6, %s3564_s2  ;;  %v789_v7 = vsel %vm118_vm1, %v788_v43, 0.0 }
0x1b23   :  { %791 = vrot.lane.b32.xlu2 %v789_v7, %s3564_s2 }
0x1b7d   :  { %v792_v8 = vpop.permute.xlu2 %791 }
0x1b7e   :  { %794 = vst.msk [vmem:[#allocation3 + $0x38] sm:$0xff] %vm258_vm8, %v792_v8 }
0x1b85   :  { %v802_v21 = vld [vmem:[#allocation3 + $0x38] sm:$0xff] }
0x1b8c   :  { %v1275_v34 = vpop.permute.xlu1 %1274 }
0x1b8d   :  { %v1277_v12 = vadd.f32 %v1275_v34, %v1267_v11 }
0x1b8f   :  { %3327 = vtanh.f32 %v1277_v12  ;;  %v1285_v45 = vsel %vm116_vm9, %v1277_v12, %v1217_v10 }
0x1b94   :  { %v726_v49 = vpop.permute.xlu1 %725 }
0x1b95   :  { %v3328_v13 = vpop.eup %3327  ;;  %728 = vst.msk [vmem:[#allocation3 + $0x30] sm:$0xff] %vm258_vm8, %v726_v49 }
0x1b96   :  { %1280 = vrot.lane.b32.xlu0 %v3328_v13, %s3560_s18 }
0x1b9c   :  { %v801_v3 = vld [vmem:[#allocation3 + $0x30] sm:$0xff] }
0x1b9d   :  { %v815_v15 = vpack.c.bf16 %v802_v21, %v801_v3 }
0x1b9f   :  { %3061 = vmatmul.msk.bf16.gmra.mxu3 %vm258_vm8, %v815_v15 }
0x1c08   :  { %v1281_v18 = vpop.permute.xlu0 %1280 }
0x1c09   :  { %v4088_v19 = vmul.f32 %v1281_v18, %v1266_v54 }
0x1c0b   :  { %v1284_v61 = vsel %vm116_vm9, %v4088_v19, %v4056_v27 }
0x1c0c   :  { %v1293_v16 = vpack.c.bf16 %v1284_v61, %v1284_v61 }
0x1c0e   :  { %1295 = vrot.lane.b32.xlu0 %v1293_v16, %s3564_s2  ;;  %v1218_v16 = vsel %vm115_vm0, %v4050_v5, 0.0 }
0x1c22   :  { %v867_v60 = vpop.f32.mrf.mxu3 }
0x1c23   :  { %v868_v24 = vadd.f32 %v3903_v14, %v867_v60 }
0x1c2a   :  { %v869_v57 = vpop.f32.mrf.mxu3 }
0x1c2b   :  { %v870_v55 = vadd.f32 %v3903_v14, %v869_v57 }
0x1c80   :  { %v1296_v2 = vpop.permute.xlu0 %1295 }
0x1c81   :  { %3081 = vmatmul.msk.bf16.vlgmr.msra.gmra.mxu0 %vm258_vm8, %v1296_v2 }
0x1cfe   :  { %v1309_v63 = vpop.f32.mrf.mxu0 }
0x1cff   :  { %v1313_v20 = vadd.f32 %v1309_v63, %v868_v24  ;;  %v1286_v63 = vsel %vm116_vm9, %v4088_v19, 0.0 }
0x1d01   :  { %v3082_v22 = vmul.f32 -1.442695, %v1313_v20 }
0x1d03   :  { %3329 = vpow2.f32 %v3082_v22 }
0x1d06   :  { %v1311_v28 = vpop.f32.mrf.mxu0 }
0x1d09   :  { %v3330_v62 = vpop.eup %3329 }
0x1d0a   :  { %v1318_v29 = vadd.f32 1.0, %v3330_v62 }
0x1d0c   :  { %3331 = vrcp.f32 %v1318_v29  ;;  %v1330_v33 = vand.u32 2147483648, %v1318_v29  ;;  %v1328_v26 = vand.u32 2147483647, %v1318_v29  ;;  %vm1324_vm5 = vweird.f32 %v1318_v29 }
0x1d0d   :  { %3333 = vtanh.f32 %v1313_v20 }
0x1d0e   :  { %v1331_v37 = vor.u32 1.1754944e-38, %v1330_v33  ;;  %vm1329_vm12 = vcmp.eq.f32.partialorder %v1328_v26, 8.507059e+37 }
0x1d12   :  { %v3332_v30 = vpop.eup %3331 }
0x1d13   :  { %v1320_v32 = vmul.f32 %v3332_v30, %v1318_v29  ;;  %vm1325_vm4 = vweird.f32 %v3332_v30  ;;  %v3334_v39 = vpop.eup %3333 }
0x1d14   :  { %vm1326_vm6 = vmor %vm1324_vm5, %vm1325_vm4 }
0x1d15   :  { %v1321_v27 = vsub.f32 1.0, %v1320_v32 }
0x1d17   :  { %v1322_v35 = vmul.f32 %v3332_v30, %v1321_v27 }
0x1d19   :  { %v1323_v36 = vadd.f32 %v3332_v30, %v1322_v35 }
0x1d1b   :  { %v1327_v38 = vsel %vm1326_vm6, %v3332_v30, %v1323_v36 }
0x1d1c   :  { %v1332_v40 = vsel %vm1329_vm12, %v1331_v37, %v1327_v38 }
0x1d1d   :  { %v1334_v41 = vsel %vm3713_vm3, %v3334_v39, %v1332_v40  ;;  %v1014_v40 = vsel %vm112_vm13, %v3968_v4, 0.0 }
0x1d1e   :  { %1337 = vrot.lane.b32.xlu1 %v1334_v41, %s3560_s18  ;;  %v1335_v46 = vmul.f32 %v1334_v41, %v1285_v45 }
0x1d90   :  { %v1338_v42 = vpop.permute.xlu1 %1337 }
0x1d91   :  { %v1340_v44 = vmul.f32 %v1338_v42, %v1334_v41  ;;  %v3181_v42 = vld [vmem:[%s4772_s8] sm:$0xff] }
0x1d93   :  { %1342 = vrot.lane.b32.xlu2 %v1340_v44, %s3564_s2 }
0x1ded   :  { %v1343_v47 = vpop.permute.xlu2 %1342 }
0x1dee   :  { %v1345_v48 = vadd.f32 %v1343_v47, %v1335_v46  ;;  %v4184_v47 = vld [vmem:[%s4773_s9 + $0x8] sm:$0xff] }
0x1def   :  { %1708 = vmatpush.bf16.msrb.mxu0 %v4184_v47  ;;  %1776 = vmatpush.bf16.msrb.mxu1 %v4184_v47 }
0x1df0   :  { %3335 = vtanh.f32 %v1345_v48  ;;  %v1353_v5 = vsel %vm117_vm11, %v1345_v48, %v1285_v45 }
0x1df6   :  { %v3336_v56 = vpop.eup %3335 }
0x1df7   :  { %1348 = vrot.lane.b32.xlu0 %v3336_v56, %s3560_s18 }
0x1e69   :  { %v1349_v9 = vpop.permute.xlu0 %1348 }
0x1e6a   :  { %v1351_v50 = vmul.f32 %v1349_v9, %v1334_v41  ;;  %v4195_v9 = vld [vmem:[%s4773_s9] sm:$0xff] }
0x1e6b   :  { %1709 = vmatpush.bf16.msrb.mxu0 %v4195_v9  ;;  %1777 = vmatpush.bf16.msrb.mxu1 %v4195_v9 }
0x1e6c   :  { %v4106_v51 = vsel %vm117_vm11, %v1351_v50, %v1284_v61  ;;  %v1354_v20 = vsel %vm117_vm11, %v1351_v50, 0.0 }
0x1e6d   :  { %v1361_v53 = vpack.c.bf16 %v4106_v51, %v4106_v51 }
0x1e6f   :  { %1363 = vrot.lane.b32.xlu1 %v1361_v53, %s3564_s2  ;;  %1912 = vmatpush.bf16.msra.mxu0 %v4184_v47 }
0x1e73   :  { %1913 = vmatpush.bf16.msra.mxu0 %v4195_v9 }
0x1ee1   :  { %v1364_v54 = vpop.permute.xlu1 %1363 }
0x1ee2   :  { %3083 = vmatmul.msk.bf16.vlgmr.msra.gmra.mxu1 %vm258_vm8, %v1364_v54 }
0x1ee3   :  { %1980 = vmatpush.bf16.msra.mxu1 %v4184_v47 }
0x1ee7   :  { %1981 = vmatpush.bf16.msra.mxu1 %v4195_v9 }
0x1f5f   :  { %v1377_v59 = vpop.f32.mrf.mxu1 }
0x1f60   :  { %v1381_v58 = vadd.f32 %v1377_v59, %v870_v55 }
0x1f62   :  { %v3084_v43 = vmul.f32 -1.442695, %v1381_v58 }
0x1f64   :  { %3337 = vpow2.f32 %v3084_v43 }
0x1f67   :  { %v1379_v6 = vpop.f32.mrf.mxu1 }
0x1f6a   :  { %v3338_v7 = vpop.eup %3337 }
0x1f6b   :  { %v1386_v8 = vadd.f32 1.0, %v3338_v7 }
0x1f6d   :  { %3339 = vrcp.f32 %v1386_v8  ;;  %v1398_v12 = vand.u32 2147483648, %v1386_v8  ;;  %v1396_v13 = vand.u32 2147483647, %v1386_v8  ;;  %vm1392_vm15 = vweird.f32 %v1386_v8 }
0x1f6e   :  { %3341 = vtanh.f32 %v1381_v58 }
0x1f6f   :  { %v1399_v14 = vor.u32 1.1754944e-38, %v1398_v12  ;;  %vm1397_vm5 = vcmp.eq.f32.partialorder %v1396_v13, 8.507059e+37 }
0x1f73   :  { %v3340_v10 = vpop.eup %3339 }
0x1f74   :  { %v1388_v11 = vmul.f32 %v3340_v10, %v1386_v8  ;;  %vm1393_vm14 = vweird.f32 %v3340_v10  ;;  %v3342_v15 = vpop.eup %3341 }
0x1f75   :  { %vm1394_vm4 = vmor %vm1392_vm15, %vm1393_vm14 }
0x1f76   :  { %v1389_v34 = vsub.f32 1.0, %v1388_v11 }
0x1f78   :  { %v1390_v49 = vmul.f32 %v3340_v10, %v1389_v34 }
0x1f7a   :  { %v1391_v3 = vadd.f32 %v3340_v10, %v1390_v49 }
0x1f7c   :  { %v1395_v21 = vsel %vm1394_vm4, %v3340_v10, %v1391_v3 }
0x1f7d   :  { %v1400_v18 = vsel %vm1397_vm5, %v1399_v14, %v1395_v21 }
0x1f7e   :  { %v1402_v61 = vsel %vm3713_vm3, %v3342_v15, %v1400_v18  ;;  %v4234_v15 = vld [vmem:[%s4774_s10] ss:$0 sm:$0xff] }
0x1f7f   :  { %1405 = vrot.lane.b32.xlu2 %v1402_v61, %s3560_s18  ;;  %v1403_v22 = vmul.f32 %v1402_v61, %v1353_v5 }
0x1f87   :  { %1220 = vrot.lane.b32.xlu2 %v1218_v16, %s3564_s2 }
0x1fd9   :  { %v1406_v2 = vpop.permute.xlu2 %1405 }
0x1fda   :  { %v1408_v60 = vmul.f32 %v1406_v2, %v1402_v61 }
0x1fdc   :  { %1410 = vrot.lane.b32.xlu0 %v1408_v60, %s3564_s2 }
0x1fe1   :  { %v1221_v24 = vpop.permute.xlu2 %1220 }
0x1fe2   :  { %1223 = vst.msk [vmem:[#allocation3 + $0x20] sm:$0xff] %vm258_vm8, %v1221_v24 }
0x1fe4   :  { %1288 = vrot.lane.b32.xlu0 %v1286_v63, %s3564_s2 }
0x1fe9   :  { %v4202_v50 = vld [vmem:[#allocation3 + $0x20] sm:$0xff] }
0x1fec   :  { %1356 = vrot.lane.b32.xlu0 %v1354_v20, %s3564_s2 }
0x1ff4   :  { %948 = vrot.lane.b32.xlu0 %v3936_v17, %s3564_s2  ;;  %v3182_v17 = vld [vmem:[%s4772_s8 + $0x8] sm:$0xff] }
0x1ff5   :  { %3191 = vmatpush.bf16.msrb.mxu3 %v3182_v17  ;;  %1591 = vmatpush.bf16.msrb.mxu2 %v3182_v17 }
0x1ff9   :  { %3192 = vmatpush.bf16.msrb.mxu3 %v3181_v42  ;;  %1592 = vmatpush.bf16.msrb.mxu2 %v3181_v42 }
0x1ffd   :  { %1641 = vmatpush.bf16.msra.mxu3 %v4184_v47 }
0x2001   :  { %1642 = vmatpush.bf16.msra.mxu3 %v4195_v9 }
0x204e   :  { %v1411_v28 = vpop.permute.xlu0 %1410 }
0x204f   :  { %v1413_v62 = vadd.f32 %v1411_v28, %v1403_v22 }
0x2051   :  { %3343 = vtanh.f32 %v1413_v62 }
0x2056   :  { %v1289_v29 = vpop.permute.xlu0 %1288 }
0x2057   :  { %v3344_v30 = vpop.eup %3343  ;;  %1291 = vst.msk [vmem:[#allocation3 + $0x28] sm:$0xff] %vm258_vm8, %v1289_v29 }
0x2058   :  { %1416 = vrot.lane.b32.xlu1 %v3344_v30, %s3560_s18 }
0x205e   :  { %v1357_v19 = vpop.permute.xlu0 %1356  ;;  %v4175_v44 = vld [vmem:[#allocation3 + $0x28] sm:$0xff] }
0x205f   :  { %1359 = vst.msk [vmem:[#allocation3 + $0x30] sm:$0xff] %vm258_vm8, %v1357_v19 }
0x2066   :  { %v949_v32 = vpop.permute.xlu0 %948  ;;  %v4178_v4 = vld [vmem:[#allocation3 + $0x30] sm:$0xff] }
0x2067   :  { %951 = vst.msk [vmem:[#allocation3] sm:$0xff] %vm258_vm8, %v949_v32 }
0x206e   :  { %v4189_v48 = vld [vmem:[#allocation3] sm:$0xff] }
0x20ca   :  { %v1417_v27 = vpop.permute.xlu1 %1416 }
0x20cb   :  { %v1419_v33 = vmul.f32 %v1417_v27, %v1402_v61 }
0x20cd   :  { %v4143_v35 = vsel %vm118_vm1, %v1419_v33, %v4106_v51  ;;  %v1421_v39 = vsel %vm118_vm1, %v1419_v33, 0.0 }
0x20ce   :  { %v1524_v26 = vsel %vm116_vm9, %v4143_v35, 0.0  ;;  %v1518_v36 = vsel %vm115_vm0, %v4143_v35, 0.0  ;;  %v1500_v37 = vsel %vm112_vm13, %v4143_v35, 0.0  ;;  %v1530_v38 = vsel %vm117_vm11, %v4143_v35, 0.0 }
0x20cf   :  { %1526 = vrot.lane.b32.xlu2 %v1524_v26, %s3564_s2  ;;  %1520 = vrot.lane.b32.xlu1 %v1518_v36, %s3564_s2  ;;  %v1494_v41 = vsel %vm111_vm7, %v4143_v35, 0.0 }
0x20d0   :  { %1502 = vrot.lane.b32.xlu0 %v1500_v37, %s3564_s2 }
0x20d7   :  { %1532 = vrot.lane.b32.xlu2 %v1530_v38, %s3564_s2  ;;  %1423 = vrot.lane.b32.xlu1 %v1421_v39, %s3564_s2 }
0x20df   :  { %1016 = vrot.lane.b32.xlu1 %v1014_v40, %s3564_s2  ;;  %1496 = vrot.lane.b32.xlu2 %v1494_v41, %s3564_s2 }
0x2129   :  { %v1527_v45 = vpop.permute.xlu2 %1526 }
0x212a   :  { %1529 = vst.msk [vmem:[#allocation3 + $0x28] sm:$0xff] %vm258_vm8, %v1527_v45 }
0x2131   :  { %v1533_v46 = vpop.permute.xlu2 %1532  ;;  %v1542_v57 = vld [vmem:[#allocation3 + $0x28] sm:$0xff] }
0x2132   :  { %1535 = vst.msk [vmem:[#allocation3 + $0x30] sm:$0xff] %vm258_vm8, %v1533_v46 }
0x2139   :  { %v1497_v56 = vpop.permute.xlu2 %1496  ;;  %v1543_v43 = vld [vmem:[#allocation3 + $0x30] sm:$0xff] }
0x213a   :  { %1499 = vst.msk [vmem:[#allocation3] sm:$0xff] %vm258_vm8, %v1497_v56 }
0x2141   :  { %v1521_v51 = vpop.permute.xlu1 %1520  ;;  %v1537_v11 = vld [vmem:[#allocation3] sm:$0xff] }
0x2142   :  { %1523 = vst.msk [vmem:[#allocation3 + $0x20] sm:$0xff] %vm258_vm8, %v1521_v51  ;;  %v1503_v7 = vpop.permute.xlu0 %1502 }
0x2149   :  { %v1424_v53 = vpop.permute.xlu1 %1423  ;;  %v1541_v54 = vld [vmem:[#allocation3 + $0x20] sm:$0xff] }
0x214a   :  { %1426 = vst.msk [vmem:[#allocation3 + $0x38] sm:$0xff] %vm258_vm8, %v1424_v53  ;;  %v1556_v55 = vpack.c.bf16 %v1542_v57, %v1541_v54 }
0x214c   :  { %3095 = vmatmul.msk.bf16.vlgmr.msrb.gmra.mxu3 %vm258_vm8, %v1556_v55 }
0x214d   :  { %1844 = vmatpush.bf16.msrb.mxu3 %v4184_v47 }
0x2151   :  { %v4210_v59 = vld [vmem:[#allocation3 + $0x38] sm:$0xff]  ;;  %v1017_v58 = vpop.permute.xlu1 %1016  ;;  %1845 = vmatpush.bf16.msrb.mxu3 %v4195_v9 }
0x2152   :  { %1536 = vst.msk [vmem:[#allocation3 + $0x38] sm:$0xff] %vm258_vm8, %v1424_v53 }
0x2153   :  { %1019 = vst.msk [vmem:[#allocation3 + $0x8] sm:$0xff] %vm258_vm8, %v1017_v58 }
0x2159   :  { %v1544_v6 = vld [vmem:[#allocation3 + $0x38] sm:$0xff] }
0x215a   :  { %v4215_v8 = vld [vmem:[#allocation3 + $0x8] sm:$0xff]  ;;  %v1557_v10 = vpack.c.bf16 %v1544_v6, %v1543_v43 }
0x215b   :  { %1505 = vst.msk [vmem:[#allocation3 + $0x8] sm:$0xff] %vm258_vm8, %v1503_v7 }
0x215c   :  { %3096 = vmatmul.msk.bf16.gmra.mxu3 %vm258_vm8, %v1557_v10 }
0x2162   :  { %v1538_v34 = vld [vmem:[#allocation3 + $0x8] sm:$0xff] }
0x2163   :  { %v1554_v12 = vpack.c.bf16 %v1538_v34, %v1537_v11 }
0x2165   :  { %3093 = vmatmul.msk.bf16.vlgmr.msrb.gmra.mxu2 %vm258_vm8, %v1554_v12 }
0x216c   :  { %1643 = vmatmul.bf16.vlgmr.msra.gmra.mxu3 %v3563_v0 }
0x216d   :  { %2048 = vmatpush.bf16.msra.mxu3 %v4184_v47 }
0x2171   :  { %2049 = vmatpush.bf16.msra.mxu3 %v4195_v9 }
0x21cf   :  { %v4223_v49 = vpop.f32.mrf.mxu3 }
0x21d7   :  { %v4225_v13 = vpop.f32.mrf.mxu3 }
0x21df   :  { %v4227_v3 = vpop.f32.mrf.mxu3 }
0x21e7   :  { %v4229_v14 = vpop.f32.mrf.mxu3 }
0x21e8   :  { %v1594_v21 = vpop.f32.mrf.mxu2 }
0x21e9   :  { %v1595_v18 = vadd.f32 %v4234_v15, %v1594_v21 }
0x21ef   :  { %v1644_v61 = vpop.f32.mrf.mxu3 }
0x21f0   :  { %v1648_v16 = vadd.f32 %v1644_v61, %v1595_v18  ;;  %v1596_v51 = vpop.f32.mrf.mxu2 }
0x21f1   :  { %v1597_v53 = vadd.f32 %v4234_v15, %v1596_v51  ;;  %v1441_v51 = vand.u32 2147483647, %v4178_v4 }
0x21f2   :  { %v3105_v2 = vmul.f32 -1.442695, %v1648_v16 }
0x21f4   :  { %3345 = vpow2.f32 %v3105_v2 }
0x21f7   :  { %v1646_v60 = vpop.f32.mrf.mxu3 }
0x21f8   :  { %v1082_v60 = vsel %vm113_vm2, %v3986_v1, 0.0 }
0x21fa   :  { %v3346_v24 = vpop.eup %3345 }
0x21fb   :  { %v1653_v63 = vadd.f32 1.0, %v3346_v24  ;;  %v1512_v24 = vsel %vm114_vm10, %v4143_v35, 0.0 }
0x21fd   :  { %3347 = vrcp.f32 %v1653_v63  ;;  %v1665_v28 = vand.u32 2147483648, %v1653_v63  ;;  %v1663_v29 = vand.u32 2147483647, %v1653_v63  ;;  %vm1659_vm12 = vweird.f32 %v1653_v63 }
0x21fe   :  { %3349 = vtanh.f32 %v1648_v16 }
0x21ff   :  { %v1666_v19 = vor.u32 1.1754944e-38, %v1665_v28  ;;  %vm1664_vm15 = vcmp.eq.f32.partialorder %v1663_v29, 8.507059e+37 }
0x2203   :  { %v3348_v20 = vpop.eup %3347 }
0x2204   :  { %v1655_v5 = vmul.f32 %v3348_v20, %v1653_v63  ;;  %vm1660_vm6 = vweird.f32 %v3348_v20  ;;  %v3350_v17 = vpop.eup %3349 }
0x2205   :  { %vm1661_vm14 = vmor %vm1659_vm12, %vm1660_vm6 }
0x2206   :  { %v1656_v22 = vsub.f32 1.0, %v1655_v5 }
0x2208   :  { %v1657_v62 = vmul.f32 %v3348_v20, %v1656_v22  ;;  %v1150_v22 = vsel %vm114_vm10, %v4018_v25, 0.0  ;;  %v1436_v25 = vand.u32 2147483647, %v4215_v8  ;;  %v1506_v8 = vsel %vm113_vm2, %v4143_v35, 0.0 }
0x220a   :  { %v1658_v30 = vadd.f32 %v3348_v20, %v1657_v62 }
0x220c   :  { %v1662_v32 = vsel %vm1661_vm14, %v3348_v20, %v1658_v30 }
0x220d   :  { %v1667_v27 = vsel %vm1664_vm15, %v1666_v19, %v1662_v32 }
0x220e   :  { %v1669_v33 = vsel %vm3713_vm3, %v3350_v17, %v1667_v27  ;;  %v1435_v17 = vand.u32 2147483647, %v4189_v48 }
0x220f   :  { %1672 = vrot.lane.b32.xlu1 %v1669_v33, %s3560_s18  ;;  %v1670_v37 = vmul.f32 0.0, %v1669_v33 }
0x2281   :  { %v1673_v26 = vpop.permute.xlu1 %1672 }
0x2282   :  { %v1675_v36 = vmul.f32 %v1673_v26, %v1669_v33  ;;  %v1443_v26 = vsel %vm258_vm8, %v1435_v17, 0.0 }
0x2284   :  { %1677 = vrot.lane.b32.xlu2 %v1675_v36, %s3564_s2 }
0x22de   :  { %v1678_v38 = vpop.permute.xlu2 %1677 }
0x22df   :  { %v1680_v39 = vadd.f32 %v1678_v38, %v1670_v37 }
0x22e1   :  { %3351 = vtanh.f32 %v1680_v39  ;;  %v4272_v1 = vsel %vm111_vm7, %v1680_v39, 0.0 }
0x22e7   :  { %v3352_v40 = vpop.eup %3351 }
0x22e8   :  { %1683 = vrot.lane.b32.xlu0 %v3352_v40, %s3560_s18 }
0x235a   :  { %v1684_v41 = vpop.permute.xlu0 %1683 }
0x235b   :  { %v1686_v42 = vmul.f32 %v1684_v41, %v1669_v33  ;;  %v1444_v33 = vsel %vm258_vm8, %v1436_v25, 0.0  ;;  %v1439_v41 = vand.u32 2147483647, %v4202_v50  ;;  %v1454_v50 = vsel %vm258_vm8, %v1441_v51, 0.0 }
0x235c   :  { %v1445_v39 = vadd.f32 %v1444_v33, %v1443_v26 }
0x235d   :  { %v4244_v45 = vsel %vm111_vm7, %v1686_v42, 0.0  ;;  %v1440_v42 = vand.u32 2147483647, %v4175_v44 }
0x235e   :  { %v1695_v46 = vpack.c.bf16 %v4244_v45, %v4244_v45 }
0x235f   :  { %v1452_v35 = vsel %vm258_vm8, %v1440_v42, 0.0 }
0x2360   :  { %1697 = vrot.lane.b32.xlu1 %v1695_v46, %s3564_s2 }
0x23d2   :  { %v1698_v56 = vpop.permute.xlu1 %1697 }
0x23d3   :  { %3106 = vmatmul.msk.bf16.vlgmr.msrb.gmra.mxu0 %vm258_vm8, %v1698_v56 }
0x23d4   :  { %2116 = vmatpush.bf16.msrb.mxu0 %v4184_v47 }
0x23d8   :  { %2117 = vmatpush.bf16.msrb.mxu0 %v4195_v9 }
0x2450   :  { %v1711_v54 = vpop.f32.mrf.mxu0 }
0x2451   :  { %v1715_v57 = vadd.f32 %v1711_v54, %v1597_v53  ;;  %v1450_v53 = vsel %vm258_vm8, %v1439_v41, 0.0 }
0x2453   :  { %v3107_v55 = vmul.f32 -1.442695, %v1715_v57 }
0x2455   :  { %3353 = vpow2.f32 %v3107_v55 }
0x2458   :  { %v1713_v58 = vpop.f32.mrf.mxu0 }
0x245b   :  { %v3354_v43 = vpop.eup %3353 }
0x245c   :  { %v1720_v6 = vadd.f32 1.0, %v3354_v43 }
0x245e   :  { %3355 = vrcp.f32 %v1720_v6  ;;  %v1732_v34 = vand.u32 2147483648, %v1720_v6  ;;  %v1730_v47 = vand.u32 2147483647, %v1720_v6  ;;  %vm1726_vm5 = vweird.f32 %v1720_v6 }
0x245f   :  { %3357 = vtanh.f32 %v1715_v57  ;;  %v1442_v57 = vand.u32 2147483647, %v4210_v59 }
0x2460   :  { %v1733_v21 = vor.u32 1.1754944e-38, %v1732_v34  ;;  %vm1731_vm12 = vcmp.eq.f32.partialorder %v1730_v47, 8.507059e+37 }
0x2461   :  { %v1456_v43 = vsel %vm258_vm8, %v1442_v57, 0.0 }
0x2464   :  { %v3356_v7 = vpop.eup %3355 }
0x2465   :  { %v1722_v10 = vmul.f32 %v3356_v7, %v1720_v6  ;;  %vm1727_vm4 = vweird.f32 %v3356_v7  ;;  %v3358_v61 = vpop.eup %3357 }
0x2466   :  { %vm1728_vm6 = vmor %vm1726_vm5, %vm1727_vm4 }
0x2467   :  { %v1723_v11 = vsub.f32 1.0, %v1722_v10 }
0x2469   :  { %v1724_v12 = vmul.f32 %v3356_v7, %v1723_v11 }
0x246b   :  { %v1725_v9 = vadd.f32 %v3356_v7, %v1724_v12 }
0x246d   :  { %v1729_v18 = vsel %vm1728_vm6, %v3356_v7, %v1725_v9 }
0x246e   :  { %v1734_v16 = vsel %vm1731_vm12, %v1733_v21, %v1729_v18 }
0x246f   :  { %v1736_v2 = vsel %vm3713_vm3, %v3358_v61, %v1734_v16 }
0x2470   :  { %1739 = vrot.lane.b32.xlu2 %v1736_v2, %s3560_s18  ;;  %v1737_v28 = vmul.f32 %v1736_v2, %v4272_v1 }
0x2478   :  { %1084 = vrot.lane.b32.xlu2 %v1082_v60, %s3564_s2 }
0x2480   :  { %1514 = vrot.lane.b32.xlu2 %v1512_v24, %s3564_s2 }
0x24ca   :  { %v1740_v63 = vpop.permute.xlu2 %1739 }
0x24cb   :  { %v1742_v20 = vmul.f32 %v1740_v63, %v1736_v2 }
0x24cd   :  { %1744 = vrot.lane.b32.xlu0 %v1742_v20, %s3564_s2 }
0x24d2   :  { %v1085_v5 = vpop.permute.xlu2 %1084 }
0x24d3   :  { %1087 = vst.msk [vmem:[#allocation3 + $0x10] sm:$0xff] %vm258_vm8, %v1085_v5 }
0x24d5   :  { %1152 = vrot.lane.b32.xlu0 %v1150_v22, %s3564_s2 }
0x24da   :  { %v1429_v19 = vld [vmem:[#allocation3 + $0x10] sm:$0xff]  ;;  %v1515_v37 = vpop.permute.xlu2 %1514 }
0x24db   :  { %v1437_v27 = vand.u32 2147483647, %v1429_v19 }
0x24dd   :  { %v1446_v36 = vsel %vm258_vm8, %v1437_v27, 0.0 }
0x24de   :  { %v1447_v48 = vadd.f32 %v1446_v36, %v1445_v39 }
0x253f   :  { %v1745_v62 = vpop.permute.xlu0 %1744 }
0x2540   :  { %v4275_v29 = vadd.f32 %v1745_v62, %v1737_v28 }
0x2542   :  { %3359 = vtanh.f32 %v4275_v29  ;;  %v1755_v36 = vsel %vm112_vm13, %v4275_v29, %v4272_v1 }
0x2547   :  { %v1153_v30 = vpop.permute.xlu0 %1152 }
0x2548   :  { %v3360_v32 = vpop.eup %3359  ;;  %1155 = vst.msk [vmem:[#allocation3 + $0x18] sm:$0xff] %vm258_vm8, %v1153_v30 }
0x2549   :  { %1750 = vrot.lane.b32.xlu1 %v3360_v32, %s3560_s18 }
0x254f   :  { %v1430_v38 = vld [vmem:[#allocation3 + $0x18] sm:$0xff] }
0x2550   :  { %1517 = vst.msk [vmem:[#allocation3 + $0x18] sm:$0xff] %vm258_vm8, %v1515_v37  ;;  %v1438_v40 = vand.u32 2147483647, %v1430_v38 }
0x2551   :  { %1508 = vrot.lane.b32.xlu1 %v1506_v8, %s3564_s2 }
0x2552   :  { %v1448_v46 = vsel %vm258_vm8, %v1438_v40, 0.0 }
0x2553   :  { %v1449_v56 = vadd.f32 %v1448_v46, %v1447_v48 }
0x2555   :  { %v1451_v54 = vadd.f32 %v1450_v53, %v1449_v56 }
0x2557   :  { %v1453_v55 = vadd.f32 %v1452_v35, %v1451_v54  ;;  %v1540_v34 = vld [vmem:[#allocation3 + $0x18] sm:$0xff] }
0x2559   :  { %v1455_v58 = vadd.f32 %v1454_v50, %v1453_v55 }
0x255b   :  { %v4299_v6 = vadd.f32 %v1456_v43, %v1455_v58 }
0x25bb   :  { %v1751_v44 = vpop.permute.xlu1 %1750 }
0x25bc   :  { %v4301_v7 = vmul.f32 %v1751_v44, %v1736_v2 }
0x25be   :  { %v1754_v4 = vsel %vm112_vm13, %v4301_v7, %v4244_v45 }
0x25bf   :  { %v1763_v10 = vpack.c.bf16 %v1754_v4, %v1754_v4 }
0x25c1   :  { %1765 = vrot.lane.b32.xlu0 %v1763_v10, %s3564_s2 }
0x25c3   :  { %v1509_v59 = vpop.permute.xlu1 %1508 }
0x25c4   :  { %1511 = vst.msk [vmem:[#allocation3 + $0x10] sm:$0xff] %vm258_vm8, %v1509_v59 }
0x25cb   :  { %v1539_v11 = vld [vmem:[#allocation3 + $0x10] sm:$0xff] }
0x25cc   :  { %v1555_v12 = vpack.c.bf16 %v1540_v34, %v1539_v11 }
0x25ce   :  { %3094 = vmatmul.msk.bf16.gmra.mxu2 %vm258_vm8, %v1555_v12 }
0x2633   :  { %v1766_v47 = vpop.permute.xlu0 %1765 }
0x2634   :  { %3108 = vmatmul.msk.bf16.vlgmr.msrb.gmra.mxu1 %vm258_vm8, %v1766_v47 }
0x2651   :  { %v1599_v9 = vpop.f32.mrf.mxu2 }
0x2652   :  { %v1600_v21 = vadd.f32 %v4234_v15, %v1599_v9 }
0x2659   :  { %v1601_v1 = vpop.f32.mrf.mxu2 }
0x265a   :  { %v1602_v29 = vadd.f32 %v4234_v15, %v1601_v1 }
0x26b1   :  { %v1779_v18 = vpop.f32.mrf.mxu1 }
0x26b2   :  { %v1783_v61 = vadd.f32 %v1779_v18, %v1600_v21 }
0x26b4   :  { %v3109_v16 = vmul.f32 -1.442695, %v1783_v61 }
0x26b6   :  { %3361 = vpow2.f32 %v3109_v16 }
0x26b9   :  { %v1781_v2 = vpop.f32.mrf.mxu1 }
0x26bc   :  { %v3362_v60 = vpop.eup %3361 }
0x26bd   :  { %v1788_v24 = vadd.f32 1.0, %v3362_v60 }
0x26bf   :  { %3363 = vrcp.f32 %v1788_v24  ;;  %v1800_v22 = vand.u32 2147483648, %v1788_v24  ;;  %v1798_v62 = vand.u32 2147483647, %v1788_v24  ;;  %vm1794_vm15 = vweird.f32 %v1788_v24 }
0x26c0   :  { %3365 = vtanh.f32 %v1783_v61 }
0x26c1   :  { %v1801_v19 = vor.u32 1.1754944e-38, %v1800_v22  ;;  %vm1799_vm5 = vcmp.eq.f32.partialorder %v1798_v62, 8.507059e+37 }
0x26c5   :  { %v3364_v63 = vpop.eup %3363 }
0x26c6   :  { %v1790_v20 = vmul.f32 %v3364_v63, %v1788_v24  ;;  %vm1795_vm14 = vweird.f32 %v3364_v63  ;;  %v3366_v25 = vpop.eup %3365 }
0x26c7   :  { %vm1796_vm4 = vmor %vm1794_vm15, %vm1795_vm14 }
0x26c8   :  { %v1791_v5 = vsub.f32 1.0, %v1790_v20 }
0x26ca   :  { %v1792_v28 = vmul.f32 %v3364_v63, %v1791_v5 }
0x26cc   :  { %v1793_v30 = vadd.f32 %v3364_v63, %v1792_v28  ;;  %v1605_v28 = vadd.f32 %v4234_v15, %v4223_v49 }
0x26ce   :  { %v1797_v32 = vsel %vm1796_vm4, %v3364_v63, %v1793_v30 }
0x26cf   :  { %v1802_v17 = vsel %vm1799_vm5, %v1801_v19, %v1797_v32 }
0x26d0   :  { %v1804_v27 = vsel %vm3713_vm3, %v3366_v25, %v1802_v17 }
0x26d1   :  { %1807 = vrot.lane.b32.xlu1 %v1804_v27, %s3560_s18  ;;  %v1805_v37 = vmul.f32 %v1804_v27, %v1755_v36 }
0x2743   :  { %v1808_v33 = vpop.permute.xlu1 %1807 }
0x2744   :  { %v1810_v26 = vmul.f32 %v1808_v33, %v1804_v27 }
0x2746   :  { %1812 = vrot.lane.b32.xlu2 %v1810_v26, %s3564_s2 }
0x27a0   :  { %v1813_v38 = vpop.permute.xlu2 %1812 }
0x27a1   :  { %v1815_v39 = vadd.f32 %v1813_v38, %v1805_v37 }
0x27a3   :  { %3367 = vtanh.f32 %v1815_v39  ;;  %v1823_v18 = vsel %vm113_vm2, %v1815_v39, %v1755_v36 }
0x27a9   :  { %v3368_v8 = vpop.eup %3367 }
0x27aa   :  { %1818 = vrot.lane.b32.xlu0 %v3368_v8, %s3560_s18 }
0x281c   :  { %v1819_v40 = vpop.permute.xlu0 %1818 }
0x281d   :  { %v4321_v41 = vmul.f32 %v1819_v40, %v1804_v27 }
0x281f   :  { %v1822_v48 = vsel %vm113_vm2, %v4321_v41, %v1754_v4 }
0x2820   :  { %v1831_v42 = vpack.c.bf16 %v1822_v48, %v1822_v48 }
0x2822   :  { %1833 = vrot.lane.b32.xlu1 %v1831_v42, %s3564_s2 }
0x2894   :  { %v1834_v46 = vpop.permute.xlu1 %1833 }
0x2895   :  { %3110 = vmatmul.msk.bf16.vlgmr.msrb.gmra.mxu3 %vm258_vm8, %v1834_v46 }
0x2918   :  { %v1847_v56 = vpop.f32.mrf.mxu3 }
0x2919   :  { %v1851_v51 = vadd.f32 %v1847_v56, %v1602_v29 }
0x291b   :  { %v3111_v53 = vmul.f32 -1.442695, %v1851_v51 }
0x291d   :  { %3369 = vpow2.f32 %v3111_v53 }
0x2920   :  { %v1849_v54 = vpop.f32.mrf.mxu3 }
0x2923   :  { %v3370_v57 = vpop.eup %3369 }
0x2924   :  { %v1856_v35 = vadd.f32 1.0, %v3370_v57 }
0x2926   :  { %3371 = vrcp.f32 %v1856_v35  ;;  %v1868_v43 = vand.u32 2147483648, %v1856_v35  ;;  %v1866_v4 = vand.u32 2147483647, %v1856_v35  ;;  %vm1862_vm12 = vweird.f32 %v1856_v35 }
0x2927   :  { %3373 = vtanh.f32 %v1851_v51 }
0x2928   :  { %v1869_v59 = vor.u32 1.1754944e-38, %v1868_v43  ;;  %vm1867_vm15 = vcmp.eq.f32.partialorder %v1866_v4, 8.507059e+37  ;;  %v1607_v43 = vadd.f32 %v4234_v15, %v4225_v13 }
0x292c   :  { %v3372_v55 = vpop.eup %3371 }
0x292d   :  { %v1858_v50 = vmul.f32 %v3372_v55, %v1856_v35  ;;  %vm1863_vm6 = vweird.f32 %v3372_v55  ;;  %v3374_v34 = vpop.eup %3373 }
0x292e   :  { %vm1864_vm14 = vmor %vm1862_vm12, %vm1863_vm6 }
0x292f   :  { %v1859_v58 = vsub.f32 1.0, %v1858_v50 }
0x2931   :  { %v1860_v44 = vmul.f32 %v3372_v55, %v1859_v58 }
0x2933   :  { %v1861_v10 = vadd.f32 %v3372_v55, %v1860_v44 }
0x2935   :  { %v1865_v11 = vsel %vm1864_vm14, %v3372_v55, %v1861_v10 }
0x2936   :  { %v1870_v12 = vsel %vm1867_vm15, %v1869_v59, %v1865_v11 }
0x2937   :  { %v1872_v47 = vsel %vm3713_vm3, %v3374_v34, %v1870_v12 }
0x2938   :  { %1875 = vrot.lane.b32.xlu2 %v1872_v47, %s3560_s18  ;;  %v1873_v61 = vmul.f32 %v1872_v47, %v1823_v18 }
0x2992   :  { %v1876_v9 = vpop.permute.xlu2 %1875 }
0x2993   :  { %v1878_v21 = vmul.f32 %v1876_v9, %v1872_v47 }
0x2995   :  { %1880 = vrot.lane.b32.xlu0 %v1878_v21, %s3564_s2 }
0x2a07   :  { %v1881_v16 = vpop.permute.xlu0 %1880 }
0x2a08   :  { %v1883_v2 = vadd.f32 %v1881_v16, %v1873_v61 }
0x2a0a   :  { %3375 = vtanh.f32 %v1883_v2  ;;  %v1891_v29 = vsel %vm114_vm10, %v1883_v2, %v1823_v18 }
0x2a10   :  { %v3376_v60 = vpop.eup %3375 }
0x2a11   :  { %1886 = vrot.lane.b32.xlu1 %v3376_v60, %s3560_s18 }
0x2a83   :  { %v1887_v24 = vpop.permute.xlu1 %1886 }
0x2a84   :  { %v4336_v63 = vmul.f32 %v1887_v24, %v1872_v47 }
0x2a86   :  { %v1890_v20 = vsel %vm114_vm10, %v4336_v63, %v1822_v48 }
0x2a87   :  { %v1899_v5 = vpack.c.bf16 %v1890_v20, %v1890_v20 }
0x2a89   :  { %1901 = vrot.lane.b32.xlu2 %v1899_v5, %s3564_s2 }
0x2ae3   :  { %v1902_v22 = vpop.permute.xlu2 %1901 }
0x2ae4   :  { %3112 = vmatmul.msk.bf16.vlgmr.msra.gmra.mxu0 %vm258_vm8, %v1902_v22 }
0x2b61   :  { %v1915_v62 = vpop.f32.mrf.mxu0 }
0x2b62   :  { %v1919_v30 = vadd.f32 %v1915_v62, %v1605_v28 }
0x2b64   :  { %v3113_v19 = vmul.f32 -1.442695, %v1919_v30 }
0x2b66   :  { %3377 = vpow2.f32 %v3113_v19 }
0x2b69   :  { %v1917_v32 = vpop.f32.mrf.mxu0 }
0x2b6c   :  { %v3378_v25 = vpop.eup %3377 }
0x2b6d   :  { %v1924_v17 = vadd.f32 1.0, %v3378_v25 }
0x2b6f   :  { %3379 = vrcp.f32 %v1924_v17  ;;  %v1936_v36 = vand.u32 2147483648, %v1924_v17  ;;  %v1934_v38 = vand.u32 2147483647, %v1924_v17  ;;  %vm1930_vm5 = vweird.f32 %v1924_v17 }
0x2b70   :  { %3381 = vtanh.f32 %v1919_v30 }
0x2b71   :  { %v1937_v49 = vor.u32 1.1754944e-38, %v1936_v36  ;;  %vm1935_vm12 = vcmp.eq.f32.partialorder %v1934_v38, 8.507059e+37 }
0x2b75   :  { %v3380_v27 = vpop.eup %3379 }
0x2b76   :  { %v1926_v33 = vmul.f32 %v3380_v27, %v1924_v17  ;;  %vm1931_vm4 = vweird.f32 %v3380_v27  ;;  %v3382_v40 = vpop.eup %3381  ;;  %v3186_v17 = vld [vmem:[%s4775_s11 + $0x8] sm:$0xff] }
0x2b77   :  { %vm1932_vm6 = vmor %vm1930_vm5, %vm1931_vm4  ;;  %2222 = vmatpush.bf16.msrb.mxu1 %v3186_v17 }
0x2b78   :  { %v1927_v26 = vsub.f32 1.0, %v1926_v33 }
0x2b7a   :  { %v1928_v37 = vmul.f32 %v3380_v27, %v1927_v26 }
0x2b7c   :  { %v1929_v39 = vadd.f32 %v3380_v27, %v1928_v37 }
0x2b7e   :  { %v1933_v8 = vsel %vm1932_vm6, %v3380_v27, %v1929_v39  ;;  %v3185_v27 = vld [vmem:[%s4775_s11] sm:$0xff] }
0x2b7f   :  { %v1938_v48 = vsel %vm1935_vm12, %v1937_v49, %v1933_v8  ;;  %2223 = vmatpush.bf16.msrb.mxu1 %v3185_v27  ;;  %v4399_v8 = vld [vmem:[#allocation4 + $0x8] sm:$0xff] }
0x2b80   :  { %v1940_v42 = vsel %vm3713_vm3, %v3382_v40, %v1938_v48  ;;  %2272 = vmatpush.bf16.msrb.mxu3 %v4399_v8  ;;  %v4402_v40 = vld [vmem:[#allocation4] sm:$0xff]  ;;  %2339 = vmatpush.bf16.msra.mxu0 %v4399_v8 }
0x2b81   :  { %1943 = vrot.lane.b32.xlu0 %v1940_v42, %s3560_s18  ;;  %v1941_v56 = vmul.f32 %v1940_v42, %v1891_v29  ;;  %2407 = vmatpush.bf16.msra.mxu2 %v4399_v8 }
0x2b84   :  { %2273 = vmatpush.bf16.msrb.mxu3 %v4402_v40  ;;  %2340 = vmatpush.bf16.msra.mxu0 %v4402_v40 }
0x2b85   :  { %2408 = vmatpush.bf16.msra.mxu2 %v4402_v40 }
0x2b89   :  { %2611 = vmatpush.bf16.msrb.mxu2 %v4399_v8 }
0x2b8d   :  { %2612 = vmatpush.bf16.msrb.mxu2 %v4402_v40 }
0x2bf3   :  { %v1944_v46 = vpop.permute.xlu0 %1943 }
0x2bf4   :  { %v1946_v1 = vmul.f32 %v1944_v46, %v1940_v42 }
0x2bf6   :  { %1948 = vrot.lane.b32.xlu1 %v1946_v1, %s3564_s2 }
0x2c68   :  { %v1949_v51 = vpop.permute.xlu1 %1948 }
0x2c69   :  { %v1951_v53 = vadd.f32 %v1949_v51, %v1941_v56 }
0x2c6b   :  { %3383 = vtanh.f32 %v1951_v53  ;;  %v4369_v28 = vsel %vm115_vm0, %v1951_v53, %v1891_v29  ;;  %v4422_v53 = vld [vmem:[%s4777_s13] ss:$0 sm:$0xff] }
0x2c71   :  { %v3384_v54 = vpop.eup %3383 }
0x2c72   :  { %1954 = vrot.lane.b32.xlu2 %v3384_v54, %s3560_s18 }
0x2ccc   :  { %v1955_v57 = vpop.permute.xlu2 %1954 }
0x2ccd   :  { %v4352_v35 = vmul.f32 %v1955_v57, %v1940_v42  ;;  %v1610_v42 = vadd.f32 %v4234_v15, %v4227_v3 }
0x2ccf   :  { %v1958_v55 = vsel %vm115_vm0, %v4352_v35, %v1890_v20 }
0x2cd0   :  { %v1967_v50 = vpack.c.bf16 %v1958_v55, %v1958_v55 }
0x2cd2   :  { %1969 = vrot.lane.b32.xlu0 %v1967_v50, %s3564_s2 }
0x2d44   :  { %v1970_v58 = vpop.permute.xlu0 %1969 }
0x2d45   :  { %3114 = vmatmul.msk.bf16.vlgmr.msra.gmra.mxu1 %vm258_vm8, %v1970_v58 }
0x2dc2   :  { %v1983_v44 = vpop.f32.mrf.mxu1 }
0x2dc3   :  { %v1987_v4 = vadd.f32 %v1983_v44, %v1607_v43 }
0x2dc5   :  { %v3115_v10 = vmul.f32 -1.442695, %v1987_v4 }
0x2dc7   :  { %3385 = vpow2.f32 %v3115_v10 }
0x2dca   :  { %v1985_v59 = vpop.f32.mrf.mxu1 }
0x2dcd   :  { %v3386_v11 = vpop.eup %3385 }
0x2dce   :  { %v1992_v34 = vadd.f32 1.0, %v3386_v11 }
0x2dd0   :  { %3387 = vrcp.f32 %v1992_v34  ;;  %v2004_v21 = vand.u32 2147483648, %v1992_v34  ;;  %v2002_v61 = vand.u32 2147483647, %v1992_v34  ;;  %vm1998_vm15 = vweird.f32 %v1992_v34 }
0x2dd1   :  { %3389 = vtanh.f32 %v1987_v4 }
0x2dd2   :  { %v2005_v13 = vor.u32 1.1754944e-38, %v2004_v21  ;;  %vm2003_vm5 = vcmp.eq.f32.partialorder %v2002_v61, 8.507059e+37 }
0x2dd6   :  { %v3388_v12 = vpop.eup %3387 }
0x2dd7   :  { %v1994_v47 = vmul.f32 %v3388_v12, %v1992_v34  ;;  %vm1999_vm14 = vweird.f32 %v3388_v12  ;;  %v3390_v60 = vpop.eup %3389 }
0x2dd8   :  { %vm2000_vm4 = vmor %vm1998_vm15, %vm1999_vm14 }
0x2dd9   :  { %v1995_v9 = vsub.f32 1.0, %v1994_v47 }
0x2ddb   :  { %v1996_v18 = vmul.f32 %v3388_v12, %v1995_v9 }
0x2ddd   :  { %v1997_v16 = vadd.f32 %v3388_v12, %v1996_v18 }
0x2ddf   :  { %v2001_v2 = vsel %vm2000_vm4, %v3388_v12, %v1997_v16 }
0x2de0   :  { %v2006_v24 = vsel %vm2003_vm5, %v2005_v13, %v2001_v2 }
0x2de1   :  { %v2008_v20 = vsel %vm3713_vm3, %v3390_v60, %v2006_v24 }
0x2de2   :  { %2011 = vrot.lane.b32.xlu1 %v2008_v20, %s3560_s18  ;;  %v2009_v62 = vmul.f32 %v2008_v20, %v4369_v28 }
0x2e54   :  { %v2012_v5 = vpop.permute.xlu1 %2011 }
0x2e55   :  { %v2014_v22 = vmul.f32 %v2012_v5, %v2008_v20 }
0x2e57   :  { %2016 = vrot.lane.b32.xlu2 %v2014_v22, %s3564_s2 }
0x2e5f   :  { %1690 = vrot.lane.b32.xlu2 %v4244_v45, %s3564_s2  ;;  %v1756_v45 = vsel %vm112_vm13, %v4301_v7, 0.0 }
0x2eb1   :  { %v2017_v30 = vpop.permute.xlu2 %2016 }
0x2eb2   :  { %v4372_v19 = vadd.f32 %v2017_v30, %v2009_v62 }
0x2eb4   :  { %3391 = vtanh.f32 %v4372_v19 }
0x2eb9   :  { %v1691_v32 = vpop.permute.xlu2 %1690 }
0x2eba   :  { %v3392_v25 = vpop.eup %3391  ;;  %1693 = vst.msk [vmem:[#allocation3] sm:$0xff] %vm258_vm8, %v1691_v32 }
0x2ebb   :  { %2022 = vrot.lane.b32.xlu0 %v3392_v25, %s3560_s18 }
0x2ec1   :  { %v2168_v38 = vld [vmem:[#allocation3] sm:$0xff] }
0x2ec3   :  { %1758 = vrot.lane.b32.xlu0 %v1756_v45, %s3564_s2 }
0x2f2d   :  { %v2023_v33 = vpop.permute.xlu0 %2022 }
0x2f2e   :  { %v4387_v26 = vmul.f32 %v2023_v33, %v2008_v20 }
0x2f30   :  { %v4392_v36 = vsel %vm116_vm9, %v4387_v26, %v1958_v55 }
0x2f31   :  { %v2035_v7 = vpack.c.bf16 %v4392_v36, %v4392_v36 }
0x2f33   :  { %2037 = vrot.lane.b32.xlu1 %v2035_v7, %s3564_s2 }
0x2f35   :  { %v1759_v37 = vpop.permute.xlu0 %1758 }
0x2f36   :  { %1761 = vst.msk [vmem:[#allocation3 + $0x8] sm:$0xff] %vm258_vm8, %v1759_v37 }
0x2f3d   :  { %v2169_v39 = vld [vmem:[#allocation3 + $0x8] sm:$0xff] }
0x2f3e   :  { %v2185_v49 = vpack.c.bf16 %v2169_v39, %v2168_v38 }
0x2f40   :  { %3128 = vmatmul.msk.bf16.vlgmr.msrb.gmra.mxu1 %vm258_vm8, %v2185_v49  ;;  %v4440_v49 = vsel %vm116_vm9, %v4372_v19, %v4369_v28 }
0x2fa5   :  { %v2038_v48 = vpop.permute.xlu1 %2037 }
0x2fa6   :  { %3116 = vmatmul.msk.bf16.vlgmr.msra.gmra.mxu3 %vm258_vm8, %v2038_v48 }
0x2fa7   :  { %2475 = vmatpush.bf16.msra.mxu3 %v4399_v8 }
0x2fab   :  { %2476 = vmatpush.bf16.msra.mxu3 %v4402_v40 }
0x2fb6   :  { %2274 = vmatmul.bf16.vlgmr.msrb.gmra.mxu3 %v3563_v0 }
0x2fb7   :  { %2679 = vmatpush.bf16.msrb.mxu3 %v4399_v8 }
0x2fbb   :  { %2680 = vmatpush.bf16.msrb.mxu3 %v4402_v40 }
0x2fbd   :  { %v2225_v54 = vpop.f32.mrf.mxu1 }
0x2fbe   :  { %v2226_v57 = vadd.f32 %v4422_v53, %v2225_v54 }
0x3029   :  { %v2051_v46 = vpop.f32.mrf.mxu3 }
0x302a   :  { %v2055_v1 = vadd.f32 %v2051_v46, %v1610_v42 }
0x302c   :  { %v3117_v29 = vmul.f32 -1.442695, %v2055_v1 }
0x302e   :  { %3393 = vpow2.f32 %v3117_v29 }
0x3031   :  { %v2053_v56 = vpop.f32.mrf.mxu3 }
0x3034   :  { %v3394_v51 = vpop.eup %3393 }
0x3035   :  { %v2060_v0 = vadd.f32 1.0, %v3394_v51 }
0x3037   :  { %3395 = vrcp.f32 %v2060_v0  ;;  %v2072_v4 = vand.u32 2147483648, %v2060_v0  ;;  %v2070_v11 = vand.u32 2147483647, %v2060_v0  ;;  %vm2066_vm12 = vweird.f32 %v2060_v0 }
0x3039   :  { %v2275_v55 = vpop.f32.mrf.mxu3  ;;  %v2073_v9 = vor.u32 1.1754944e-38, %v2072_v4  ;;  %vm2071_vm15 = vcmp.eq.f32.partialorder %v2070_v11, 8.507059e+37  ;;  %v2227_v4 = vpop.f32.mrf.mxu1 }
0x303a   :  { %v2279_v50 = vadd.f32 %v2275_v55, %v2226_v57 }
0x303c   :  { %v3140_v58 = vmul.f32 -1.442695, %v2279_v50 }
0x303d   :  { %v3396_v3 = vpop.eup %3395 }
0x303e   :  { %3397 = vpow2.f32 %v3140_v58  ;;  %v2062_v43 = vmul.f32 %v3396_v3, %v2060_v0  ;;  %vm2067_vm6 = vweird.f32 %v3396_v3  ;;  %v1612_v58 = vadd.f32 %v4234_v15, %v4229_v14 }
0x303f   :  { %3399 = vtanh.f32 %v2055_v1  ;;  %vm2068_vm14 = vmor %vm2066_vm12, %vm2067_vm6 }
0x3040   :  { %v2063_v44 = vsub.f32 1.0, %v2062_v43 }
0x3041   :  { %v2277_v10 = vpop.f32.mrf.mxu3 }
0x3042   :  { %v2064_v59 = vmul.f32 %v3396_v3, %v2063_v44  ;;  %v2228_v10 = vadd.f32 %v4422_v53, %v2227_v4 }
0x3044   :  { %v3398_v34 = vpop.eup %3397  ;;  %v2065_v12 = vadd.f32 %v3396_v3, %v2064_v59 }
0x3045   :  { %v2284_v47 = vadd.f32 1.0, %v3398_v34  ;;  %v3400_v18 = vpop.eup %3399 }
0x3046   :  { %v2069_v21 = vsel %vm2068_vm14, %v3396_v3, %v2065_v12 }
0x3047   :  { %3401 = vrcp.f32 %v2284_v47  ;;  %v2074_v61 = vsel %vm2071_vm15, %v2073_v9, %v2069_v21  ;;  %v2296_v24 = vand.u32 2147483648, %v2284_v47  ;;  %v2294_v5 = vand.u32 2147483647, %v2284_v47 }
0x3048   :  { %v2076_v16 = vsel %vm3713_vm3, %v3400_v18, %v2074_v61  ;;  %3403 = vtanh.f32 %v2279_v50  ;;  %vm2290_vm5 = vweird.f32 %v2284_v47 }
0x3049   :  { %2079 = vrot.lane.b32.xlu1 %v2076_v16, %s3560_s18  ;;  %v2297_v62 = vor.u32 1.1754944e-38, %v2296_v24  ;;  %vm2295_vm12 = vcmp.eq.f32.partialorder %v2294_v5, 8.507059e+37  ;;  %v2077_v48 = vmul.f32 %v2076_v16, %v4440_v49 }
0x304d   :  { %v3402_v13 = vpop.eup %3401 }
0x304e   :  { %v2286_v2 = vmul.f32 %v3402_v13, %v2284_v47  ;;  %vm2291_vm4 = vweird.f32 %v3402_v13  ;;  %v3404_v32 = vpop.eup %3403 }
0x304f   :  { %vm2292_vm6 = vmor %vm2290_vm5, %vm2291_vm4 }
0x3050   :  { %v2287_v60 = vsub.f32 1.0, %v2286_v2 }
0x3052   :  { %v2288_v20 = vmul.f32 %v3402_v13, %v2287_v60 }
0x3054   :  { %v2289_v22 = vadd.f32 %v3402_v13, %v2288_v20  ;;  %v1824_v20 = vsel %vm113_vm2, %v4321_v41, 0.0 }
0x3056   :  { %v2293_v30 = vsel %vm2292_vm6, %v3402_v13, %v2289_v22 }
0x3057   :  { %v2298_v25 = vsel %vm2295_vm12, %v2297_v62, %v2293_v30  ;;  %v1892_v30 = vsel %vm114_vm10, %v4336_v63, 0.0 }
0x3058   :  { %v2300_v45 = vsel %vm3713_vm3, %v3404_v32, %v2298_v25 }
0x3059   :  { %2303 = vrot.lane.b32.xlu2 %v2300_v45, %s3560_s18  ;;  %v2301_v37 = vmul.f32 0.0, %v2300_v45 }
0x30b3   :  { %v2304_v17 = vpop.permute.xlu2 %2303 }
0x30b4   :  { %v2306_v27 = vmul.f32 %v2304_v17, %v2300_v45 }
0x30b6   :  { %2308 = vrot.lane.b32.xlu1 %v2306_v27, %s3564_s2 }
0x30bb   :  { %v2080_v33 = vpop.permute.xlu1 %2079 }
0x30bc   :  { %v2082_v7 = vmul.f32 %v2080_v33, %v2076_v16 }
0x30be   :  { %2084 = vrot.lane.b32.xlu0 %v2082_v7, %s3564_s2 }
0x3128   :  { %v2309_v38 = vpop.permute.xlu1 %2308 }
0x3129   :  { %v4433_v39 = vadd.f32 %v2309_v38, %v2301_v37 }
0x312b   :  { %3405 = vtanh.f32 %v4433_v39  ;;  %v2319_v32 = vsel %vm111_vm7, %v4433_v39, 0.0 }
0x3130   :  { %v2085_v42 = vpop.permute.xlu0 %2084 }
0x3131   :  { %v3406_v46 = vpop.eup %3405  ;;  %v4443_v1 = vadd.f32 %v2085_v42, %v2077_v48 }
0x3132   :  { %2314 = vrot.lane.b32.xlu0 %v3406_v46, %s3560_s18 }
0x3133   :  { %3407 = vtanh.f32 %v4443_v1 }
0x3139   :  { %v3408_v29 = vpop.eup %3407 }
0x313a   :  { %2090 = vrot.lane.b32.xlu2 %v3408_v29, %s3560_s18 }
0x3194   :  { %v2091_v56 = vpop.permute.xlu2 %2090 }
0x3195   :  { %v4448_v51 = vmul.f32 %v2091_v56, %v2076_v16 }
0x3197   :  { %v2094_v28 = vsel %vm117_vm11, %v4448_v51, %v4392_v36 }
0x3198   :  { %v2103_v19 = vpack.c.bf16 %v2094_v28, %v2094_v28 }
0x319a   :  { %2105 = vrot.lane.b32.xlu1 %v2103_v19, %s3564_s2 }
0x31a4   :  { %v2315_v54 = vpop.permute.xlu0 %2314 }
0x31a5   :  { %v2317_v0 = vmul.f32 %v2315_v54, %v2300_v45 }
0x31a7   :  { %v4457_v57 = vsel %vm111_vm7, %v2317_v0, 0.0 }
0x31a8   :  { %v2326_v55 = vpack.c.bf16 %v4457_v57, %v4457_v57 }
0x31aa   :  { %2328 = vrot.lane.b32.xlu2 %v2326_v55, %s3564_s2 }
0x3204   :  { %v2329_v36 = vpop.permute.xlu2 %2328 }
0x320c   :  { %v2106_v50 = vpop.permute.xlu1 %2105 }
0x320d   :  { %3118 = vmatmul.msk.bf16.vlgmr.msrb.gmra.mxu0 %vm258_vm8, %v2106_v50 }
0x320e   :  { %2543 = vmatpush.bf16.msrb.mxu0 %v4399_v8 }
0x3212   :  { %2544 = vmatpush.bf16.msrb.mxu0 %v4402_v40 }
0x321d   :  { %3141 = vmatmul.msk.bf16.vlgmr.msra.gmra.mxu0 %vm258_vm8, %v2329_v36 }
0x321e   :  { %2747 = vmatpush.bf16.msra.mxu0 %v4399_v8 }
0x3222   :  { %2748 = vmatpush.bf16.msra.mxu0 %v4402_v40 }
0x328a   :  { %v2119_v3 = vpop.f32.mrf.mxu0 }
0x328b   :  { %v4470_v43 = vadd.f32 %v2119_v3, %v1612_v58 }
0x3292   :  { %v2121_v44 = vpop.f32.mrf.mxu0 }
0x329a   :  { %v2342_v59 = vpop.f32.mrf.mxu0 }
0x329b   :  { %v2346_v11 = vadd.f32 %v2342_v59, %v2228_v10 }
0x329d   :  { %v3142_v34 = vmul.f32 -1.442695, %v2346_v11 }
0x329f   :  { %3409 = vpow2.f32 %v3142_v34 }
0x32a2   :  { %v2344_v12 = vpop.f32.mrf.mxu0 }
0x32a5   :  { %v3410_v47 = vpop.eup %3409 }
0x32a6   :  { %v2351_v9 = vadd.f32 1.0, %v3410_v47 }
0x32a8   :  { %3411 = vrcp.f32 %v2351_v9  ;;  %v2363_v14 = vand.u32 2147483648, %v2351_v9  ;;  %v2361_v18 = vand.u32 2147483647, %v2351_v9  ;;  %vm2357_vm15 = vweird.f32 %v2351_v9 }
0x32a9   :  { %3413 = vtanh.f32 %v2346_v11 }
0x32aa   :  { %v2364_v16 = vor.u32 1.1754944e-38, %v2363_v14  ;;  %vm2362_vm5 = vcmp.eq.f32.partialorder %v2361_v18, 8.507059e+37 }
0x32ae   :  { %v3412_v8 = vpop.eup %3411 }
0x32af   :  { %v2353_v40 = vmul.f32 %v3412_v8, %v2351_v9  ;;  %vm2358_vm14 = vweird.f32 %v3412_v8  ;;  %v3414_v2 = vpop.eup %3413 }
0x32b0   :  { %vm2359_vm4 = vmor %vm2357_vm15, %vm2358_vm14 }
0x32b1   :  { %v2354_v21 = vsub.f32 1.0, %v2353_v40 }
0x32b3   :  { %v2355_v15 = vmul.f32 %v3412_v8, %v2354_v21 }
0x32b5   :  { %v2356_v61 = vadd.f32 %v3412_v8, %v2355_v15 }
0x32b7   :  { %v2360_v13 = vsel %vm2359_vm4, %v3412_v8, %v2356_v61 }
0x32b8   :  { %v2365_v60 = vsel %vm2362_vm5, %v2364_v16, %v2360_v13 }
0x32b9   :  { %v2367_v24 = vsel %vm3713_vm3, %v3414_v2, %v2365_v60 }
0x32ba   :  { %2370 = vrot.lane.b32.xlu0 %v2367_v24, %s3560_s18  ;;  %v2368_v41 = vmul.f32 %v2367_v24, %v2319_v32 }
0x32c2   :  { %1826 = vrot.lane.b32.xlu0 %v1824_v20, %s3564_s2 }
0x332c   :  { %v2371_v5 = vpop.permute.xlu0 %2370 }
0x332d   :  { %v2373_v22 = vmul.f32 %v2371_v5, %v2367_v24 }
0x332f   :  { %2375 = vrot.lane.b32.xlu1 %v2373_v22, %s3564_s2 }
0x3334   :  { %v1827_v62 = vpop.permute.xlu0 %1826 }
0x3335   :  { %1829 = vst.msk [vmem:[#allocation3 + $0x10] sm:$0xff] %vm258_vm8, %v1827_v62 }
0x3337   :  { %1894 = vrot.lane.b32.xlu1 %v1892_v30, %s3564_s2 }
0x333c   :  { %v2170_v33 = vld [vmem:[#allocation3 + $0x10] sm:$0xff] }
0x33a1   :  { %v2376_v25 = vpop.permute.xlu1 %2375 }
0x33a2   :  { %v2378_v45 = vadd.f32 %v2376_v25, %v2368_v41 }
0x33a4   :  { %3415 = vtanh.f32 %v2378_v45  ;;  %v2386_v40 = vsel %vm112_vm13, %v2378_v45, %v2319_v32 }
0x33a9   :  { %v1895_v17 = vpop.permute.xlu1 %1894 }
0x33aa   :  { %v3416_v27 = vpop.eup %3415  ;;  %1897 = vst.msk [vmem:[#allocation3 + $0x18] sm:$0xff] %vm258_vm8, %v1895_v17 }
0x33ab   :  { %2381 = vrot.lane.b32.xlu2 %v3416_v27, %s3560_s18 }
0x33b1   :  { %v2171_v7 = vld [vmem:[#allocation3 + $0x18] sm:$0xff] }
0x33b2   :  { %v2186_v37 = vpack.c.bf16 %v2171_v7, %v2170_v33 }
0x33b4   :  { %3129 = vmatmul.msk.bf16.gmra.mxu1 %vm258_vm8, %v2186_v37 }
0x3405   :  { %v2382_v63 = vpop.permute.xlu2 %2381 }
0x3406   :  { %v4492_v38 = vmul.f32 %v2382_v63, %v2367_v24 }
0x3408   :  { %v2385_v39 = vsel %vm112_vm13, %v4492_v38, %v4457_v57 }
0x3409   :  { %v2394_v48 = vpack.c.bf16 %v2385_v39, %v2385_v39 }
0x340b   :  { %2396 = vrot.lane.b32.xlu2 %v2394_v48, %s3564_s2 }
0x3431   :  { %v2230_v46 = vpop.f32.mrf.mxu1 }
0x3432   :  { %v2231_v29 = vadd.f32 %v4422_v53, %v2230_v46 }
0x3439   :  { %v2232_v24 = vpop.f32.mrf.mxu1 }
0x343a   :  { %v2233_v20 = vadd.f32 %v4422_v53, %v2232_v24 }
0x3465   :  { %v2397_v42 = vpop.permute.xlu2 %2396 }
0x3466   :  { %3143 = vmatmul.msk.bf16.vlgmr.msra.gmra.mxu2 %vm258_vm8, %v2397_v42 }
0x34e9   :  { %v2410_v56 = vpop.f32.mrf.mxu2 }
0x34ea   :  { %v2414_v28 = vadd.f32 %v2410_v56, %v2231_v29  ;;  %v1960_v29 = vsel %vm115_vm0, %v4352_v35, 0.0 }
0x34ec   :  { %v3144_v19 = vmul.f32 -1.442695, %v2414_v28 }
0x34ee   :  { %3417 = vpow2.f32 %v3144_v19 }
0x34f1   :  { %v2412_v54 = vpop.f32.mrf.mxu2 }
0x34f2   :  { %v2028_v54 = vsel %vm116_vm9, %v4387_v26, 0.0 }
0x34f4   :  { %v3418_v0 = vpop.eup %3417 }
0x34f5   :  { %v2419_v55 = vadd.f32 1.0, %v3418_v0 }
0x34f7   :  { %3419 = vrcp.f32 %v2419_v55  ;;  %v2431_v3 = vand.u32 2147483648, %v2419_v55  ;;  %v2429_v4 = vand.u32 2147483647, %v2419_v55  ;;  %vm2425_vm6 = vweird.f32 %v2419_v55 }
0x34f8   :  { %3421 = vtanh.f32 %v2414_v28 }
0x34f9   :  { %v2432_v59 = vor.u32 1.1754944e-38, %v2431_v3  ;;  %vm2430_vm14 = vcmp.eq.f32.partialorder %v2429_v4, 8.507059e+37 }
0x34fd   :  { %v3420_v50 = vpop.eup %3419 }
0x34fe   :  { %v2421_v36 = vmul.f32 %v3420_v50, %v2419_v55  ;;  %vm2426_vm7 = vweird.f32 %v3420_v50  ;;  %v3422_v34 = vpop.eup %3421 }
0x34ff   :  { %vm2427_vm12 = vmor %vm2425_vm6, %vm2426_vm7 }
0x3500   :  { %v2422_v58 = vsub.f32 1.0, %v2421_v36 }
0x3502   :  { %v2423_v44 = vmul.f32 %v3420_v50, %v2422_v58 }
0x3504   :  { %v2424_v10 = vadd.f32 %v3420_v50, %v2423_v44 }
0x3506   :  { %v2428_v11 = vsel %vm2427_vm12, %v3420_v50, %v2424_v10 }
0x3507   :  { %v2433_v12 = vsel %vm2430_vm14, %v2432_v59, %v2428_v11 }
0x3508   :  { %v2435_v47 = vsel %vm3713_vm3, %v3422_v34, %v2433_v12 }
0x3509   :  { %2438 = vrot.lane.b32.xlu0 %v2435_v47, %s3560_s18  ;;  %v2436_v21 = vmul.f32 %v2435_v47, %v2386_v40 }
0x357b   :  { %v2439_v9 = vpop.permute.xlu0 %2438 }
0x357c   :  { %v2441_v8 = vmul.f32 %v2439_v9, %v2435_v47 }
0x357e   :  { %2443 = vrot.lane.b32.xlu1 %v2441_v8, %s3564_s2 }
0x35f0   :  { %v2444_v14 = vpop.permute.xlu1 %2443 }
0x35f1   :  { %v2446_v15 = vadd.f32 %v2444_v14, %v2436_v21 }
0x35f3   :  { %3423 = vtanh.f32 %v2446_v15  ;;  %v4531_v0 = vsel %vm113_vm2, %v2446_v15, %v2386_v40 }
0x35f9   :  { %v3424_v18 = vpop.eup %3423 }
0x35fa   :  { %2449 = vrot.lane.b32.xlu2 %v3424_v18, %s3560_s18 }
0x3654   :  { %v2450_v61 = vpop.permute.xlu2 %2449 }
0x3655   :  { %v4508_v16 = vmul.f32 %v2450_v61, %v2435_v47 }
0x3657   :  { %v2453_v13 = vsel %vm113_vm2, %v4508_v16, %v2385_v39 }
0x3658   :  { %v2462_v2 = vpack.c.bf16 %v2453_v13, %v2453_v13 }
0x365a   :  { %2464 = vrot.lane.b32.xlu0 %v2462_v2, %s3564_s2 }
0x36cc   :  { %v2465_v60 = vpop.permute.xlu0 %2464 }
0x36cd   :  { %3145 = vmatmul.msk.bf16.vlgmr.msra.gmra.mxu3 %vm258_vm8, %v2465_v60 }
0x3750   :  { %v2478_v5 = vpop.f32.mrf.mxu3 }
0x3751   :  { %v2482_v22 = vadd.f32 %v2478_v5, %v2233_v20 }
0x3753   :  { %v3146_v62 = vmul.f32 -1.442695, %v2482_v22 }
0x3755   :  { %3425 = vpow2.f32 %v3146_v62 }
0x3758   :  { %v2480_v30 = vpop.f32.mrf.mxu3 }
0x375b   :  { %v3426_v32 = vpop.eup %3425 }
0x375c   :  { %v2487_v41 = vadd.f32 1.0, %v3426_v32 }
0x375e   :  { %3427 = vrcp.f32 %v2487_v41  ;;  %v2499_v27 = vand.u32 2147483648, %v2487_v41  ;;  %v2497_v7 = vand.u32 2147483647, %v2487_v41  ;;  %vm2493_vm4 = vweird.f32 %v2487_v41 }
0x375f   :  { %3429 = vtanh.f32 %v2482_v22 }
0x3760   :  { %v2500_v63 = vor.u32 1.1754944e-38, %v2499_v27  ;;  %vm2498_vm7 = vcmp.eq.f32.partialorder %v2497_v7, 8.507059e+37 }
0x3764   :  { %v3428_v25 = vpop.eup %3427 }
0x3765   :  { %v2489_v45 = vmul.f32 %v3428_v25, %v2487_v41  ;;  %vm2494_vm15 = vweird.f32 %v3428_v25  ;;  %v3430_v48 = vpop.eup %3429  ;;  %v3119_v41 = vmul.f32 -1.442695, %v4470_v43 }
0x3766   :  { %vm2495_vm5 = vmor %vm2493_vm4, %vm2494_vm15 }
0x3767   :  { %v2490_v17 = vsub.f32 1.0, %v2489_v45 }
0x3769   :  { %v2491_v33 = vmul.f32 %v3428_v25, %v2490_v17 }
0x376b   :  { %v2492_v37 = vadd.f32 %v3428_v25, %v2491_v33 }
0x376d   :  { %v2496_v39 = vsel %vm2495_vm5, %v3428_v25, %v2492_v37 }
0x376e   :  { %v2501_v42 = vsel %vm2498_vm7, %v2500_v63, %v2496_v39 }
0x376f   :  { %v2503_v46 = vsel %vm3713_vm3, %v3430_v48, %v2501_v42 }
0x3770   :  { %2506 = vrot.lane.b32.xlu1 %v2503_v46, %s3560_s18  ;;  %v2504_v35 = vmul.f32 %v2503_v46, %v4531_v0 }
0x3778   :  { %1962 = vrot.lane.b32.xlu1 %v1960_v29, %s3564_s2 }
0x37e2   :  { %v2507_v56 = vpop.permute.xlu1 %2506 }
0x37e3   :  { %v2509_v28 = vmul.f32 %v2507_v56, %v2503_v46 }
0x37e5   :  { %2511 = vrot.lane.b32.xlu2 %v2509_v28, %s3564_s2 }
0x37ea   :  { %v1963_v19 = vpop.permute.xlu1 %1962 }
0x37eb   :  { %1965 = vst.msk [vmem:[#allocation3 + $0x20] sm:$0xff] %vm258_vm8, %v1963_v19 }
0x37ed   :  { %2030 = vrot.lane.b32.xlu2 %v2028_v54, %s3564_s2 }
0x37f2   :  { %v2172_v26 = vld [vmem:[#allocation3 + $0x20] sm:$0xff] }
0x383f   :  { %v2512_v55 = vpop.permute.xlu2 %2511 }
0x3840   :  { %v4534_v50 = vadd.f32 %v2512_v55, %v2504_v35 }
0x3842   :  { %3431 = vtanh.f32 %v4534_v50  ;;  %v2522_v54 = vsel %vm114_vm10, %v4534_v50, %v4531_v0 }
0x3847   :  { %v2031_v36 = vpop.permute.xlu2 %2030 }
0x3848   :  { %v3432_v58 = vpop.eup %3431  ;;  %2033 = vst.msk [vmem:[#allocation3 + $0x28] sm:$0xff] %vm258_vm8, %v2031_v36 }
0x3849   :  { %2517 = vrot.lane.b32.xlu0 %v3432_v58, %s3560_s18 }
0x384f   :  { %v2173_v3 = vld [vmem:[#allocation3 + $0x28] sm:$0xff] }
0x3850   :  { %v2187_v44 = vpack.c.bf16 %v2173_v3, %v2172_v26 }
0x3852   :  { %3130 = vmatmul.msk.bf16.gmra.mxu1 %vm258_vm8, %v2187_v44 }
0x38bb   :  { %v2518_v4 = vpop.permute.xlu0 %2517 }
0x38bc   :  { %v4540_v10 = vmul.f32 %v2518_v4, %v2503_v46 }
0x38be   :  { %v4545_v59 = vsel %vm114_vm10, %v4540_v10, %v2453_v13 }
0x38bf   :  { %v2530_v11 = vpack.c.bf16 %v4545_v59, %v4545_v59 }
0x38c1   :  { %2532 = vrot.lane.b32.xlu0 %v2530_v11, %s3564_s2 }
0x38cf   :  { %v2235_v12 = vpop.f32.mrf.mxu1 }
0x38d0   :  { %v2236_v47 = vadd.f32 %v4422_v53, %v2235_v12 }
0x38d7   :  { %v2237_v11 = vpop.f32.mrf.mxu1 }
0x3933   :  { %v2533_v34 = vpop.permute.xlu0 %2532 }
0x3934   :  { %3147 = vmatmul.msk.bf16.vlgmr.msrb.gmra.mxu0 %vm258_vm8, %v2533_v34  ;;  %v2238_v34 = vadd.f32 %v4422_v53, %v2237_v11 }
0x39b1   :  { %v2546_v9 = vpop.f32.mrf.mxu0 }
0x39b2   :  { %v2550_v8 = vadd.f32 %v2546_v9, %v2236_v47 }
0x39b4   :  { %v3148_v40 = vmul.f32 -1.442695, %v2550_v8 }
0x39b6   :  { %3433 = vpow2.f32 %v3148_v40 }
0x39b9   :  { %v2548_v21 = vpop.f32.mrf.mxu0 }
0x39bc   :  { %v3434_v14 = vpop.eup %3433 }
0x39bd   :  { %v2555_v15 = vadd.f32 1.0, %v3434_v14 }
0x39bf   :  { %3435 = vrcp.f32 %v2555_v15  ;;  %v2567_v2 = vand.u32 2147483648, %v2555_v15  ;;  %v2565_v24 = vand.u32 2147483647, %v2555_v15  ;;  %vm2561_vm12 = vweird.f32 %v2555_v15 }
0x39c0   :  { %3437 = vtanh.f32 %v2550_v8 }
0x39c1   :  { %v2568_v5 = vor.u32 1.1754944e-38, %v2567_v2  ;;  %vm2566_vm15 = vcmp.eq.f32.partialorder %v2565_v24, 8.507059e+37  ;;  %3439 = vpow2.f32 %v3119_v41  ;;  %v2095_v2 = vsel %vm117_vm11, %v4443_v1, %v4440_v49 }
0x39c5   :  { %v3436_v18 = vpop.eup %3435 }
0x39c6   :  { %v2557_v61 = vmul.f32 %v3436_v18, %v2555_v15  ;;  %vm2562_vm6 = vweird.f32 %v3436_v18  ;;  %v3438_v62 = vpop.eup %3437 }
0x39c7   :  { %vm2563_vm14 = vmor %vm2561_vm12, %vm2562_vm6  ;;  %v3440_v25 = vpop.eup %3439 }
0x39c8   :  { %v2558_v13 = vsub.f32 1.0, %v2557_v61  ;;  %v2128_v45 = vadd.f32 1.0, %v3440_v25 }
0x39ca   :  { %v2559_v60 = vmul.f32 %v3436_v18, %v2558_v13  ;;  %3441 = vrcp.f32 %v2128_v45  ;;  %v2140_v48 = vand.u32 2147483648, %v2128_v45  ;;  %vm2134_vm5 = vweird.f32 %v2128_v45 }
0x39cb   :  { %v2138_v42 = vand.u32 2147483647, %v2128_v45  ;;  %3443 = vtanh.f32 %v4470_v43 }
0x39cc   :  { %v2560_v20 = vadd.f32 %v3436_v18, %v2559_v60  ;;  %v2141_v29 = vor.u32 1.1754944e-38, %v2140_v48 }
0x39cd   :  { %vm2139_vm6 = vcmp.eq.f32.partialorder %v2138_v42, 8.507059e+37 }
0x39ce   :  { %v2564_v22 = vsel %vm2563_vm14, %v3436_v18, %v2560_v20 }
0x39cf   :  { %v2569_v30 = vsel %vm2566_vm15, %v2568_v5, %v2564_v22 }
0x39d0   :  { %v2571_v32 = vsel %vm3713_vm3, %v3438_v62, %v2569_v30  ;;  %v3442_v17 = vpop.eup %3441 }
0x39d1   :  { %2574 = vrot.lane.b32.xlu1 %v2571_v32, %s3560_s18  ;;  %v2130_v27 = vmul.f32 %v3442_v17, %v2128_v45  ;;  %vm2135_vm4 = vweird.f32 %v3442_v17  ;;  %v3444_v28 = vpop.eup %3443  ;;  %v2572_v35 = vmul.f32 %v2571_v32, %v2522_v54 }
0x39d2   :  { %vm2136_vm7 = vmor %vm2134_vm5, %vm2135_vm4 }
0x39d3   :  { %v2131_v33 = vsub.f32 1.0, %v2130_v27  ;;  %v2096_v27 = vsel %vm117_vm11, %v4448_v51, 0.0 }
0x39d5   :  { %v2132_v7 = vmul.f32 %v3442_v17, %v2131_v33 }
0x39d7   :  { %v2133_v63 = vadd.f32 %v3442_v17, %v2132_v7 }
0x39d9   :  { %v2137_v46 = vsel %vm2136_vm7, %v3442_v17, %v2133_v63 }
0x39da   :  { %v2142_v56 = vsel %vm2139_vm6, %v2141_v29, %v2137_v46 }
0x39db   :  { %v2144_v19 = vsel %vm3713_vm3, %v3444_v28, %v2142_v56 }
0x39dc   :  { %v2145_v24 = vmul.f32 %v2144_v19, %v2095_v2 }
0x3a43   :  { %v2575_v37 = vpop.permute.xlu1 %2574 }
0x3a44   :  { %v2577_v39 = vmul.f32 %v2575_v37, %v2571_v32 }
0x3a46   :  { %2579 = vrot.lane.b32.xlu2 %v2577_v39, %s3564_s2 }
0x3a4e   :  { %2147 = vrot.lane.b32.xlu2 %v2144_v19, %s3560_s18 }
0x3aa0   :  { %v2580_v43 = vpop.permute.xlu2 %2579 }
0x3aa1   :  { %v2582_v55 = vadd.f32 %v2580_v43, %v2572_v35 }
0x3aa3   :  { %3445 = vtanh.f32 %v2582_v55  ;;  %v2590_v7 = vsel %vm115_vm0, %v2582_v55, %v2522_v54 }
0x3aa8   :  { %v2148_v0 = vpop.permute.xlu2 %2147 }
0x3aa9   :  { %v3446_v36 = vpop.eup %3445  ;;  %v2150_v50 = vmul.f32 %v2148_v0, %v2144_v19 }
0x3aaa   :  { %2585 = vrot.lane.b32.xlu0 %v3446_v36, %s3560_s18 }
0x3b1c   :  { %v2586_v58 = vpop.permute.xlu0 %2585 }
0x3b1d   :  { %v4566_v26 = vmul.f32 %v2586_v58, %v2571_v32 }
0x3b1f   :  { %v4572_v3 = vsel %vm115_vm0, %v4566_v26, %v4545_v59 }
0x3b20   :  { %v2598_v44 = vpack.c.bf16 %v4572_v3, %v4572_v3 }
0x3b22   :  { %2600 = vrot.lane.b32.xlu1 %v2598_v44, %s3564_s2 }
0x3b2a   :  { %2152 = vrot.lane.b32.xlu1 %v2150_v50, %s3564_s2 }
0x3b94   :  { %v2601_v4 = vpop.permute.xlu1 %2600 }
0x3b95   :  { %3149 = vmatmul.msk.bf16.vlgmr.msrb.gmra.mxu2 %vm258_vm8, %v2601_v4 }
0x3b9c   :  { %v2153_v60 = vpop.permute.xlu1 %2152 }
0x3b9d   :  { %v2155_v22 = vadd.f32 %v2153_v60, %v2145_v24 }
0x3c18   :  { %v2614_v12 = vpop.f32.mrf.mxu2 }
0x3c19   :  { %v2618_v47 = vadd.f32 %v2614_v12, %v2238_v34 }
0x3c1b   :  { %v3150_v9 = vmul.f32 -1.442695, %v2618_v47 }
0x3c1d   :  { %3447 = vpow2.f32 %v3150_v9 }
0x3c20   :  { %v2616_v59 = vpop.f32.mrf.mxu2 }
0x3c23   :  { %v3448_v8 = vpop.eup %3447 }
0x3c24   :  { %v2623_v40 = vadd.f32 1.0, %v3448_v8 }
0x3c26   :  { %3449 = vrcp.f32 %v2623_v40  ;;  %v2635_v18 = vand.u32 2147483648, %v2623_v40  ;;  %v2633_v13 = vand.u32 2147483647, %v2623_v40  ;;  %vm2629_vm14 = vweird.f32 %v2623_v40 }
0x3c27   :  { %3451 = vtanh.f32 %v2618_v47 }
0x3c28   :  { %v2636_v5 = vor.u32 1.1754944e-38, %v2635_v18  ;;  %vm2634_vm4 = vcmp.eq.f32.partialorder %v2633_v13, 8.507059e+37  ;;  %3453 = vtanh.f32 %v2155_v22 }
0x3c2c   :  { %v3450_v21 = vpop.eup %3449 }
0x3c2d   :  { %v2625_v14 = vmul.f32 %v3450_v21, %v2623_v40  ;;  %vm2630_vm12 = vweird.f32 %v3450_v21  ;;  %v3452_v30 = vpop.eup %3451 }
0x3c2e   :  { %vm2631_vm15 = vmor %vm2629_vm14, %vm2630_vm12  ;;  %v3454_v25 = vpop.eup %3453 }
0x3c2f   :  { %v2626_v15 = vsub.f32 1.0, %v2625_v14 }
0x3c31   :  { %v2627_v61 = vmul.f32 %v3450_v21, %v2626_v15 }
0x3c33   :  { %v2628_v20 = vadd.f32 %v3450_v21, %v2627_v61 }
0x3c35   :  { %v2632_v62 = vsel %vm2631_vm15, %v3450_v21, %v2628_v20 }
0x3c36   :  { %v2637_v32 = vsel %vm2634_vm4, %v2636_v5, %v2632_v62 }
0x3c37   :  { %v2639_v41 = vsel %vm3713_vm3, %v3452_v30, %v2637_v32 }
0x3c38   :  { %2642 = vrot.lane.b32.xlu0 %v2639_v41, %s3560_s18  ;;  %v2640_v37 = vmul.f32 %v2639_v41, %v2590_v7 }
0x3c40   :  { %2158 = vrot.lane.b32.xlu0 %v3454_v25, %s3560_s18 }
0x3caa   :  { %v2643_v49 = vpop.permute.xlu0 %2642 }
0x3cab   :  { %v2645_v1 = vmul.f32 %v2643_v49, %v2639_v41 }
0x3cad   :  { %2647 = vrot.lane.b32.xlu2 %v2645_v1, %s3564_s2 }
0x3cb2   :  { %v2159_v45 = vpop.permute.xlu0 %2158 }
0x3cb3   :  { %v2161_v17 = vmul.f32 %v2159_v45, %v2144_v19 }
0x3cb5   :  { %v2162_v33 = vsel %vm118_vm1, %v2161_v17, 0.0  ;;  %2098 = vrot.lane.b32.xlu2 %v2096_v27, %s3564_s2 }
0x3cb6   :  { %2164 = vrot.lane.b32.xlu0 %v2162_v33, %s3564_s2 }
0x3d07   :  { %v2648_v63 = vpop.permute.xlu2 %2647 }
0x3d08   :  { %v2650_v39 = vadd.f32 %v2648_v63, %v2640_v37 }
0x3d0a   :  { %3455 = vtanh.f32 %v2650_v39  ;;  %v4614_v2 = vsel %vm116_vm9, %v2650_v39, %v2590_v7 }
0x3d0f   :  { %v2099_v48 = vpop.permute.xlu2 %2098 }
0x3d10   :  { %v3456_v42 = vpop.eup %3455  ;;  %2101 = vst.msk [vmem:[#allocation3 + $0x30] sm:$0xff] %vm258_vm8, %v2099_v48 }
0x3d11   :  { %2653 = vrot.lane.b32.xlu1 %v3456_v42, %s3560_s18 }
0x3d17   :  { %v2174_v46 = vld [vmem:[#allocation3 + $0x30] sm:$0xff] }
0x3d28   :  { %v2165_v51 = vpop.permute.xlu0 %2164 }
0x3d29   :  { %2167 = vst.msk [vmem:[#allocation3 + $0x38] sm:$0xff] %vm258_vm8, %v2165_v51 }
0x3d30   :  { %v2175_v29 = vld [vmem:[#allocation3 + $0x38] sm:$0xff] }
0x3d31   :  { %v2188_v56 = vpack.c.bf16 %v2175_v29, %v2174_v46 }
0x3d33   :  { %3131 = vmatmul.msk.bf16.gmra.mxu1 %vm258_vm8, %v2188_v56 }
0x3d83   :  { %v2654_v28 = vpop.permute.xlu1 %2653 }
0x3d84   :  { %v2656_v19 = vmul.f32 %v2654_v28, %v2639_v41  ;;  %v2455_v41 = vsel %vm113_vm2, %v4508_v16, 0.0 }
0x3d86   :  { %v2657_v54 = vsel %vm116_vm9, %v2656_v19, %v4572_v3  ;;  %v2659_v25 = vsel %vm116_vm9, %v2656_v19, 0.0  ;;  %v3480_v19 = vld [vmem:[%s4789_s3] sm:$0xff] }
0x3d87   :  { %v2666_v35 = vpack.c.bf16 %v2657_v54, %v2657_v54 }
0x3d89   :  { %2668 = vrot.lane.b32.xlu1 %v2666_v35, %s3564_s2 }
0x3db0   :  { %v2240_v55 = vpop.f32.mrf.mxu1 }
0x3db1   :  { %v2241_v36 = vadd.f32 %v4422_v53, %v2240_v55 }
0x3db8   :  { %v2242_v16 = vpop.f32.mrf.mxu1 }
0x3db9   :  { %v2243_v17 = vadd.f32 %v4422_v53, %v2242_v16 }
0x3dfb   :  { %v2669_v43 = vpop.permute.xlu1 %2668 }
0x3dfc   :  { %3151 = vmatmul.msk.bf16.vlgmr.msrb.gmra.mxu3 %vm258_vm8, %v2669_v43 }
0x3e7f   :  { %v2682_v58 = vpop.f32.mrf.mxu3 }
0x3e80   :  { %v2686_v44 = vadd.f32 %v2682_v58, %v2241_v36 }
0x3e82   :  { %v3152_v0 = vmul.f32 -1.442695, %v2686_v44 }
0x3e84   :  { %3457 = vpow2.f32 %v3152_v0 }
0x3e87   :  { %v2684_v50 = vpop.f32.mrf.mxu3 }
0x3e8a   :  { %v3458_v4 = vpop.eup %3457 }
0x3e8b   :  { %v2691_v11 = vadd.f32 1.0, %v3458_v4  ;;  %v2523_v4 = vsel %vm114_vm10, %v4540_v10, 0.0  ;;  %v3190_v10 = vld [vmem:[#allocation7 + $0x8] sm:$0xff]  ;;  %vm3195_vm10 = vcmp.lt.s32.totalorder %v3480_v19, 0 }
0x3e8c   :  { %2849 = vmatpush.bf16.msra.mxu2 %v3190_v10 }
0x3e8d   :  { %3459 = vrcp.f32 %v2691_v11  ;;  %v2703_v47 = vand.u32 2147483648, %v2691_v11  ;;  %v2701_v59 = vand.u32 2147483647, %v2691_v11  ;;  %vm2697_vm7 = vweird.f32 %v2691_v11 }
0x3e8e   :  { %3461 = vtanh.f32 %v2686_v44  ;;  %v2387_v44 = vsel %vm112_vm13, %v4492_v38, 0.0 }
0x3e8f   :  { %v2704_v40 = vor.u32 1.1754944e-38, %v2703_v47  ;;  %vm2702_vm12 = vcmp.eq.f32.partialorder %v2701_v59, 8.507059e+37  ;;  %v3189_v59 = vld [vmem:[#allocation7] sm:$0xff] }
0x3e90   :  { %2850 = vmatpush.bf16.msra.mxu2 %v3189_v59 }
0x3e93   :  { %v3460_v34 = vpop.eup %3459 }
0x3e94   :  { %v2693_v12 = vmul.f32 %v3460_v34, %v2691_v11  ;;  %vm2698_vm5 = vweird.f32 %v3460_v34  ;;  %v3462_v14 = vpop.eup %3461 }
0x3e95   :  { %vm2699_vm6 = vmor %vm2697_vm7, %vm2698_vm5 }
0x3e96   :  { %v2694_v3 = vsub.f32 1.0, %v2693_v12 }
0x3e98   :  { %v2695_v9 = vmul.f32 %v3460_v34, %v2694_v3 }
0x3e9a   :  { %v2696_v8 = vadd.f32 %v3460_v34, %v2695_v9 }
0x3e9c   :  { %v2700_v21 = vsel %vm2699_vm6, %v3460_v34, %v2696_v8 }
0x3e9d   :  { %v2705_v15 = vsel %vm2702_vm12, %v2704_v40, %v2700_v21 }
0x3e9e   :  { %v2707_v18 = vsel %vm3713_vm3, %v3462_v14, %v2705_v15  ;;  %v3196_v14 = vceil.f32 %v3480_v19  ;;  %v3197_v15 = vfloor.f32 %v3480_v19 }
0x3e9f   :  { %2710 = vrot.lane.b32.xlu2 %v2707_v18, %s3560_s18  ;;  %v2708_v60 = vmul.f32 %v2707_v18, %v4614_v2 }
0x3ef9   :  { %v2711_v61 = vpop.permute.xlu2 %2710 }
0x3efa   :  { %v2713_v13 = vmul.f32 %v2711_v61, %v2707_v18 }
0x3efc   :  { %2715 = vrot.lane.b32.xlu0 %v2713_v13, %s3564_s2 }
0x3f6e   :  { %v2716_v24 = vpop.permute.xlu0 %2715 }
0x3f6f   :  { %v4617_v20 = vadd.f32 %v2716_v24, %v2708_v60  ;;  %v3198_v24 = vsel %vm3195_vm10, %v3196_v14, %v3197_v15 }
0x3f71   :  { %3463 = vtanh.f32 %v4617_v20 }
0x3f77   :  { %v3464_v5 = vpop.eup %3463 }
0x3f78   :  { %2721 = vrot.lane.b32.xlu1 %v3464_v5, %s3560_s18  ;;  %v3199_v5 = vcvt.f32.s32 %v3198_v24 }
0x3fea   :  { %v2722_v22 = vpop.permute.xlu1 %2721 }
0x3feb   :  { %v2724_v62 = vmul.f32 %v2722_v22, %v2707_v18 }
0x3fed   :  { %v2725_v30 = vsel %vm117_vm11, %v2724_v62, %v2657_v54  ;;  %v90_v54 = vmax.f32 %v3480_v19, 1.0  ;;  %v2727_v3 = vsel %vm117_vm11, %v2724_v62, 0.0 }
0x3fee   :  { %v2734_v32 = vpack.c.bf16 %v2725_v30, %v2725_v30 }
0x3fef   :  { %v102_v11 = vand.u32 2147483648, %v90_v54  ;;  %v100_v12 = vand.u32 2147483647, %v90_v54 }
0x3ff0   :  { %2736 = vrot.lane.b32.xlu2 %v2734_v32, %s3564_s2 }
0x3ff1   :  { %v103_v38 = vor.u32 1.1754944e-38, %v102_v11  ;;  %vm101_vm5 = vcmp.eq.f32.partialorder %v100_v12, 8.507059e+37  ;;  %v1478_v12 = vshrl.u32 %v119_v23, 7 }
0x3ff3   :  { %vm1481_vm12 = vcmp.lt.s32.totalorder %v1478_v12, 4 }
0x3ff8   :  { %2321 = vrot.lane.b32.xlu2 %v4457_v57, %s3564_s2 }
0x4000   :  { %2457 = vrot.lane.b32.xlu2 %v2455_v41, %s3564_s2  ;;  %v2726_v41 = vsel %vm117_vm11, %v4617_v20, %v4614_v2  ;;  %v4684_v20 = vld [vmem:[%s4779_s15] ss:$0 sm:$0xff]  ;;  %s3565_s15 = smov [#allocation9]  }
0x4001   :  { %s2980_s7 = sshll.u32 %s3565_s15, 4  ;;  %s2981_s7 = int_to_ptr.vmem [resolvable:$true] %s2980_s7 }
0x4008   :  { %2661 = vrot.lane.b32.xlu2 %v2659_v25, %s3564_s2 }
0x4010   :  { %2874 = vperm.xlu2 %3210, %v3199_v5  }
0x404a   :  { %v2737_v49 = vpop.permute.xlu2 %2736 }
0x404b   :  { %3153 = vmatmul.msk.bf16.vlgmr.msra.gmra.mxu0 %vm258_vm8, %v2737_v49 }
0x4052   :  { %v2322_v1 = vpop.permute.xlu2 %2321 }
0x4053   :  { %2324 = vst.msk [vmem:[#allocation3] sm:$0xff] %vm258_vm8, %v2322_v1 }
0x405a   :  { %v2458_v45 = vpop.permute.xlu2 %2457  ;;  %v2799_v61 = vld [vmem:[#allocation3] sm:$0xff] }
0x405b   :  { %2460 = vst.msk [vmem:[#allocation3 + $0x10] sm:$0xff] %vm258_vm8, %v2458_v45 }
0x4062   :  { %v2662_v57 = vpop.permute.xlu2 %2661  ;;  %v2801_v30 = vld [vmem:[#allocation3 + $0x10] sm:$0xff] }
0x4063   :  { %2664 = vst.msk [vmem:[#allocation3 + $0x28] sm:$0xff] %vm258_vm8, %v2662_v57  ;;  %v2591_v57 = vsel %vm115_vm0, %v4566_v26, 0.0  ;;  %v2900_v26 = vld [vmem:[%s4786_s24] sm:$0xff] }
0x406a   :  { %v4679_v2 = vpop.permute.xlu2 %2874 }
0x406b   :  { %vm2876_vm11 = vcmp.gt.s32.totalorder %v4679_v2, 0  ;;  %vm2877_vm0 = vcmp.gt.s32.totalorder %v4679_v2, 1  ;;  %vm2878_vm7 = vcmp.gt.s32.totalorder %v4679_v2, 2  ;;  %vm2879_vm6 = vcmp.gt.s32.totalorder %v4679_v2, 3 }
0x40c8   :  { %v2750_v27 = vpop.f32.mrf.mxu0 }
0x40c9   :  { %v2754_v33 = vadd.f32 %v2750_v27, %v2243_v17 }
0x40cb   :  { %v3154_v7 = vmul.f32 -1.442695, %v2754_v33 }
0x40cd   :  { %3465 = vpow2.f32 %v3154_v7 }
0x40d0   :  { %v2752_v37 = vpop.f32.mrf.mxu0 }
0x40d3   :  { %v3466_v63 = vpop.eup %3465 }
0x40d4   :  { %v2759_v39 = vadd.f32 1.0, %v3466_v63 }
0x40d6   :  { %3467 = vrcp.f32 %v2759_v39  ;;  %v2771_v46 = vand.u32 2147483648, %v2759_v39  ;;  %v2769_v56 = vand.u32 2147483647, %v2759_v39  ;;  %vm2765_vm9 = vweird.f32 %v2759_v39 }
0x40d7   :  { %3469 = vtanh.f32 %v2754_v33 }
0x40d8   :  { %v2772_v53 = vor.u32 1.1754944e-38, %v2771_v46  ;;  %vm2770_vm15 = vcmp.eq.f32.partialorder %v2769_v56, 8.507059e+37  ;;  %3471 = vrcp.f32 %v90_v54 }
0x40dc   :  { %v3468_v48 = vpop.eup %3467 }
0x40dd   :  { %v2761_v42 = vmul.f32 %v3468_v48, %v2759_v39  ;;  %vm2766_vm2 = vweird.f32 %v3468_v48  ;;  %v3470_v43 = vpop.eup %3469 }
0x40de   :  { %vm2767_vm14 = vmor %vm2765_vm9, %vm2766_vm2  ;;  %v3472_v58 = vpop.eup %3471  ;;  %vm2881_vm2 = vcmp.gt.s32.totalorder %v4679_v2, 5  ;;  %vm2883_vm9 = vcmp.gt.s32.totalorder %v4679_v2, 7 }
0x40df   :  { %v2762_v51 = vsub.f32 1.0, %v2761_v42  ;;  %v92_v0 = vmul.f32 %v3472_v58, %v90_v54  ;;  %vm97_vm4 = vweird.f32 %v3472_v58  ;;  %v2901_v42 = vld [vmem:[%s4786_s24 + $0x8] sm:$0xff] }
0x40e0   :  { %v2909_v56 = vsel %vm2877_vm0, %v2901_v42, 0.0 }
0x40e1   :  { %v2763_v29 = vmul.f32 %v3468_v48, %v2762_v51  ;;  %v93_v50 = vsub.f32 1.0, %v92_v0 }
0x40e3   :  { %v2764_v28 = vadd.f32 %v3468_v48, %v2763_v29  ;;  %v94_v31 = vmul.f32 %v3472_v58, %v93_v50 }
0x40e5   :  { %v2768_v35 = vsel %vm2767_vm14, %v3468_v48, %v2764_v28  ;;  %v95_v34 = vadd.f32 %v3472_v58, %v94_v31  ;;  %vm2956_vm14 = vcmask 7168  }
0x40e6   :  { %v2773_v55 = vsel %vm2770_vm15, %v2772_v53, %v2768_v35  ;;  %vm2971_vm15 = vcmask 0  }
0x40e7   :  { %v4643_v36 = vsel %vm3713_vm3, %v3470_v43, %v2773_v55  ;;  %vm96_vm3 = vweird.f32 %v90_v54  ;;  %v2902_v43 = vld [vmem:[%s4786_s24 + $0x10] sm:$0xff] }
0x40e8   :  { %2778 = vrot.lane.b32.xlu0 %v4643_v36, %s3560_s18  ;;  %vm98_vm13 = vmor %vm96_vm3, %vm97_vm4  ;;  %v2776_v25 = vmul.f32 %v4643_v36, %v2726_v41  ;;  %v2910_v50 = vsel %vm2878_vm7, %v2902_v43, 0.0 }
0x40e9   :  { %v99_v47 = vsel %vm98_vm13, %v3472_v58, %v95_v34 }
0x40ea   :  { %v4658_v9 = vsel %vm101_vm5, %v103_v38, %v99_v47  ;;  %v2903_v38 = vld [vmem:[%s4786_s24 + $0x18] sm:$0xff] }
0x40f0   :  { %2389 = vrot.lane.b32.xlu0 %v2387_v44, %s3564_s2 }
0x40f8   :  { %2525 = vrot.lane.b32.xlu0 %v2523_v4, %s3564_s2 }
0x4100   :  { %2729 = vrot.lane.b32.xlu0 %v2727_v3, %s3564_s2 }
0x4108   :  { %1460 = vperm.xlu0 %3211, %v4658_v9  }
0x415a   :  { %v2779_v8 = vpop.permute.xlu0 %2778 }
0x415b   :  { %v2781_v40 = vmul.f32 %v2779_v8, %v4643_v36 }
0x415d   :  { %2783 = vrot.lane.b32.xlu1 %v2781_v40, %s3564_s2  ;;  %v2911_v40 = vsel %vm2879_vm6, %v2903_v38, 0.0 }
0x4162   :  { %v2390_v21 = vpop.permute.xlu0 %2389 }
0x4163   :  { %2392 = vst.msk [vmem:[#allocation3 + $0x8] sm:$0xff] %vm258_vm8, %v2390_v21 }
0x416a   :  { %v2526_v18 = vpop.permute.xlu0 %2525  ;;  %v2800_v13 = vld [vmem:[#allocation3 + $0x8] sm:$0xff] }
0x416b   :  { %2528 = vst.msk [vmem:[#allocation3 + $0x18] sm:$0xff] %vm258_vm8, %v2526_v18  ;;  %v2807_v60 = vpack.c.bf16 %v2800_v13, %v2799_v61 }
0x416d   :  { %3163 = vmatmul.msk.bf16.vlgmr.msra.gmra.mxu2 %vm258_vm8, %v2807_v60 }
0x4172   :  { %v2730_v22 = vpop.permute.xlu0 %2729  ;;  %v2802_v62 = vld [vmem:[#allocation3 + $0x18] sm:$0xff] }
0x4173   :  { %2732 = vst.msk [vmem:[#allocation3 + $0x30] sm:$0xff] %vm258_vm8, %v2730_v22  ;;  %v2808_v32 = vpack.c.bf16 %v2802_v62, %v2801_v30  ;;  %v2804_v22 = vld [vmem:[#allocation3 + $0x28] sm:$0xff] }
0x417a   :  { %v1461_v16 = vpop.permute.xlu0 %1460 }
0x417b   :  { %v1463_v17 = vmul.f32 %v1461_v16, %v4299_v6  ;;  %v2908_v6 = vsel %vm2876_vm11, %v2900_v26, 0.0  ;;  %v2805_v16 = vld [vmem:[#allocation3 + $0x30] sm:$0xff] }
0x417d   :  { %3164 = vmatmul.msk.bf16.gmra.mxu2 %vm258_vm8, %v2808_v32  ;;  %v1464_v27 = vmax.f32 %v1463_v17, 1e-06 }
0x417f   :  { %v1465_v33 = vmin.f32 %v1464_v27, 0.999999 }
0x4181   :  { %v1470_v7 = vsub.f32 1.0, %v1465_v33 }
0x41cf   :  { %v2784_v49 = vpop.permute.xlu1 %2783 }
0x41d0   :  { %v2786_v1 = vadd.f32 %v2784_v49, %v2776_v25 }
0x41d2   :  { %3473 = vtanh.f32 %v2786_v1 }
0x41d3   :  { %3475 = vlog2.f32 %v1470_v7 }
0x41d4   :  { %3477 = vlog2.f32 %v1465_v33  ;;  %v2904_v33 = vld [vmem:[%s4786_s24 + $0x20] sm:$0xff] }
0x41d8   :  { %v3474_v45 = vpop.eup %3473 }
0x41d9   :  { %2789 = vrot.lane.b32.xlu1 %v3474_v45, %s3560_s18  ;;  %v3476_v46 = vpop.eup %3475 }
0x41da   :  { %v3478_v28 = vpop.eup %3477  ;;  %v1472_v19 = vmul.f32 0.6931472, %v3476_v46 }
0x41db   :  { %v1467_v35 = vmul.f32 0.6931472, %v3478_v28 }
0x41dc   :  { %v1473_v58 = vsub.f32 -0.051293295, %v1472_v19  ;;  %v2906_v19 = vld [vmem:[%s4786_s24 + $0x30] sm:$0xff] }
0x41dd   :  { %v1468_v4 = vsub.f32 -2.9957323, %v1467_v35 }
0x41de   :  { %v1474_v34 = vmul.f32 0.95, %v1473_v58 }
0x41df   :  { %v1469_v3 = vmul.f32 0.05, %v1468_v4 }
0x41e1   :  { %2593 = vrot.lane.b32.xlu1 %v2591_v57, %s3564_s2  ;;  %v1475_v59 = vadd.f32 %v1474_v34, %v1469_v3 }
0x41e3   :  { %v1482_v14 = vsel %vm1481_vm12, %v1475_v59, 0.0 }
0x41e4   :  { %v1483_v18 = vsel %vm258_vm8, %v1482_v14, 0.0 }
0x41f0   :  { %v2852_v37 = vpop.f32.mrf.mxu2 }
0x41f1   :  { %v2853_v63 = vadd.f32 %v4684_v20, %v2852_v37 }
0x41f3   :  { %v2884_v39 = vsel %vm2876_vm11, %v2853_v63, 0.0 }
0x41f4   :  { %v2916_v48 = vsub.f32 %v2884_v39, %v2908_v6  ;;  %2892 = vst [vmem:[%s4780_s16] sm:$0xff] %v2884_v39  ;;  %v2905_v39 = vld [vmem:[%s4786_s24 + $0x28] sm:$0xff] }
0x41f5   :  { %v2913_v46 = vsel %vm2881_vm2, %v2905_v39, 0.0 }
0x41f6   :  { %v2924_v30 = vmul.f32 %v2916_v48, %v2916_v48 }
0x41f8   :  { %v2854_v51 = vpop.f32.mrf.mxu2 }
0x41f9   :  { %v2855_v29 = vadd.f32 %v4684_v20, %v2854_v51 }
0x41fb   :  { %v2885_v53 = vsel %vm2877_vm0, %v2855_v29, 0.0 }
0x41fc   :  { %2893 = vst [vmem:[%s4780_s16 + $0x8] sm:$0xff] %v2885_v53  ;;  %v2917_v54 = vsub.f32 %v2885_v53, %v2909_v56 }
0x41fe   :  { %v2925_v55 = vmul.f32 %v2917_v54, %v2917_v54 }
0x4200   :  { %v2857_v44 = vpop.f32.mrf.mxu2  ;;  %2934 = vadd.xlane.f32.xlu2 %v2925_v55 }
0x4201   :  { %v2858_v0 = vadd.f32 %v4684_v20, %v2857_v44 }
0x4203   :  { %v2886_v31 = vsel %vm2878_vm7, %v2858_v0, 0.0  ;;  %v2907_v0 = vld [vmem:[%s4786_s24 + $0x38] sm:$0xff] }
0x4204   :  { %2894 = vst [vmem:[%s4780_s16 + $0x10] sm:$0xff] %v2886_v31  ;;  %v2918_v11 = vsub.f32 %v2886_v31, %v2910_v50  ;;  %v2915_v31 = vsel %vm2883_vm9, %v2907_v0, 0.0 }
0x4206   :  { %v2926_v47 = vmul.f32 %v2918_v11, %v2918_v11 }
0x4208   :  { %v2859_v10 = vpop.f32.mrf.mxu2  ;;  %2936 = vadd.xlane.f32.xlu0 %v2926_v47 }
0x4209   :  { %v2860_v8 = vadd.f32 %v4684_v20, %v2859_v10 }
0x420b   :  { %v2887_v21 = vsel %vm2879_vm6, %v2860_v8, 0.0 }
0x420c   :  { %2895 = vst [vmem:[%s4780_s16 + $0x18] sm:$0xff] %v2887_v21  ;;  %v2919_v23 = vsub.f32 %v2887_v21, %v2911_v40 }
0x420e   :  { %v2927_v15 = vmul.f32 %v2919_v23, %v2919_v23 }
0x4210   :  { %2938 = vadd.xlane.f32.xlu2 %v2927_v15  ;;  %1484 = vadd.xlane.f32.xlu0 %v1483_v18 }
0x424b   :  { %v2790_v61 = vpop.permute.xlu1 %2789 }
0x424c   :  { %v2792_v13 = vmul.f32 %v2790_v61, %v4643_v36 }
0x424e   :  { %v2793_v60 = vsel %vm118_vm1, %v2792_v13, 0.0  ;;  %vm2880_vm1 = vcmp.gt.s32.totalorder %v4679_v2, 4 }
0x424f   :  { %2795 = vrot.lane.b32.xlu1 %v2793_v60, %s3564_s2  ;;  %v2912_v37 = vsel %vm2880_vm1, %v2904_v33, 0.0 }
0x4253   :  { %v2594_v24 = vpop.permute.xlu1 %2593 }
0x4254   :  { %2596 = vst.msk [vmem:[#allocation3 + $0x20] sm:$0xff] %vm258_vm8, %v2594_v24 }
0x425b   :  { %v2803_v5 = vld [vmem:[#allocation3 + $0x20] sm:$0xff] }
0x425c   :  { %v2809_v62 = vpack.c.bf16 %v2804_v22, %v2803_v5 }
0x425e   :  { %3165 = vmatmul.msk.bf16.gmra.mxu2 %vm258_vm8, %v2809_v62 }
0x4273   :  { %v2935_v12 = vpop.xlane.xlu2 %2934 }
0x4279   :  { %2932 = vadd.xlane.f32.xlu1 %v2924_v30 }
0x427b   :  { %v2937_v32 = vpop.xlane.xlu0 %2936 }
0x4283   :  { %v1485_v41 = vpop.xlane.xlu0 %1484  ;;  %v2939_v38 = vpop.xlane.xlu2 %2938 }
0x4284   :  { %v1486_v25 = vrot.slane %v1485_v41, 4 }
0x4286   :  { %v1487_v49 = vadd.f32 %v1486_v25, %v1485_v41 }
0x4288   :  { %v1488_v36 = vrot.slane %v1487_v49, 2 }
0x428a   :  { %v1489_v1 = vadd.f32 %v1488_v36, %v1487_v49 }
0x428c   :  { %v1490_v52 = vrot.slane %v1489_v1, 1 }
0x428e   :  { %v1491_v45 = vadd.f32 %v1490_v52, %v1489_v1 }
0x4290   :  { %3193 = vpush %v1491_v45 }
0x42c1   :  { %v2796_v57 = vpop.permute.xlu1 %2795 }
0x42c2   :  { %2798 = vst.msk [vmem:[#allocation3 + $0x38] sm:$0xff] %vm258_vm8, %v2796_v57 }
0x42c9   :  { %v2806_v17 = vld [vmem:[#allocation3 + $0x38] sm:$0xff] }
0x42ca   :  { %v2810_v27 = vpack.c.bf16 %v2806_v17, %v2805_v16 }
0x42cc   :  { %3166 = vmatmul.msk.bf16.gmra.mxu2 %vm258_vm8, %v2810_v27  ;;  %vm2882_vm8 = vcmp.gt.s32.totalorder %v4679_v2, 6 }
0x42cd   :  { %v2914_v43 = vsel %vm2882_vm8, %v2906_v19, 0.0 }
0x42e1   :  { %v2862_v26 = vpop.f32.mrf.mxu2 }
0x42e2   :  { %v2863_v7 = vadd.f32 %v4684_v20, %v2862_v26 }
0x42e4   :  { %v2888_v63 = vsel %vm2880_vm1, %v2863_v7, 0.0 }
0x42e5   :  { %2896 = vst [vmem:[%s4780_s16 + $0x20] sm:$0xff] %v2888_v63  ;;  %v2920_v6 = vsub.f32 %v2888_v63, %v2912_v37 }
0x42e7   :  { %v2928_v48 = vmul.f32 %v2920_v6, %v2920_v6 }
0x42e9   :  { %v2864_v42 = vpop.f32.mrf.mxu2  ;;  %2940 = vadd.xlane.f32.xlu1 %v2928_v48 }
0x42ea   :  { %v2865_v51 = vadd.f32 %v4684_v20, %v2864_v42 }
0x42ec   :  { %v2889_v29 = vsel %vm2881_vm2, %v2865_v51, 0.0  ;;  %v2933_v3 = vpop.xlane.xlu1 %2932 }
0x42ed   :  { %2897 = vst [vmem:[%s4780_s16 + $0x28] sm:$0xff] %v2889_v29  ;;  %v2921_v56 = vsub.f32 %v2889_v29, %v2913_v46  ;;  %v2948_v2 = vadd.f32 %v2935_v12, %v2933_v3 }
0x42ef   :  { %v2929_v28 = vmul.f32 %v2921_v56, %v2921_v56  ;;  %v2949_v10 = vadd.f32 %v2948_v2, %v2937_v32 }
0x42f1   :  { %2942 = vadd.xlane.f32.xlu2 %v2929_v28  ;;  %v2950_v8 = vadd.f32 %v2949_v10, %v2939_v38 }
0x434f   :  { %v2867_v53 = vpop.f32.mrf.mxu2 }
0x4350   :  { %v2868_v54 = vadd.f32 %v4684_v20, %v2867_v53 }
0x4352   :  { %v2890_v35 = vsel %vm2882_vm8, %v2868_v54, 0.0 }
0x4353   :  { %2898 = vst [vmem:[%s4780_s16 + $0x30] sm:$0xff] %v2890_v35  ;;  %v2922_v55 = vsub.f32 %v2890_v35, %v2914_v43 }
0x4355   :  { %v2930_v58 = vmul.f32 %v2922_v55, %v2922_v55 }
0x4357   :  { %v2869_v44 = vpop.f32.mrf.mxu2  ;;  %2944 = vadd.xlane.f32.xlu1 %v2930_v58 }
0x4358   :  { %v2870_v50 = vadd.f32 %v4684_v20, %v2869_v44 }
0x435a   :  { %v2891_v4 = vsel %vm2883_vm9, %v2870_v50, 0.0 }
0x435b   :  { %2899 = vst [vmem:[%s4780_s16 + $0x38] sm:$0xff] %v2891_v4  ;;  %v2923_v11 = vsub.f32 %v2891_v4, %v2915_v31  ;;  %s3194_s16 = spop %3193 }
0x435c   :  { %v2941_v47 = vpop.xlane.xlu1 %2940  ;;  %v1493_v32 = vstv %s3194_s16 }
0x435d   :  { %v2931_v34 = vmul.f32 %v2923_v11, %v2923_v11  ;;  %v2951_v40 = vadd.f32 %v2950_v8, %v2941_v47 }
0x435f   :  { %2946 = vadd.xlane.f32.xlu2 %v2931_v34 }
0x4364   :  { %v2943_v59 = vpop.xlane.xlu2 %2942 }
0x4365   :  { %v2952_v20 = vadd.f32 %v2951_v40, %v2943_v59 }
0x43ca   :  { %v2945_v21 = vpop.xlane.xlu1 %2944 }
0x43cb   :  { %v2953_v23 = vadd.f32 %v2952_v20, %v2945_v21 }
0x43d2   :  { %v2947_v14 = vpop.xlane.xlu2 %2946 }
0x43d3   :  { %v2954_v15 = vadd.f32 %v2953_v23, %v2947_v14 }
0x43d5   :  { %v2955_v18 = vmul.f32 %v2954_v15, %v4658_v9  ;;  %v2969_v9 = vmul.f32 0.1, %v1493_v32 }
0x43d7   :  { %v2957_v61 = vsel %vm2956_vm14, %v2955_v18, 0.0 }
0x43d8   :  { %2958 = vadd.xlane.f32.xlu1 %v2957_v61 }
0x444b   :  { %v2959_v13 = vpop.xlane.xlu1 %2958 }
0x444c   :  { %v2960_v60 = vrot.slane %v2959_v13, 4 }
0x444e   :  { %v2961_v24 = vadd.f32 %v2960_v60, %v2959_v13 }
0x4450   :  { %v2962_v5 = vrot.slane %v2961_v24, 2 }
0x4452   :  { %v2963_v22 = vadd.f32 %v2962_v5, %v2961_v24 }
0x4454   :  { %v2964_v62 = vrot.slane %v2963_v22, 1 }
0x4456   :  { %v2965_v30 = vadd.f32 %v2964_v62, %v2963_v22 }
0x4458   :  { %3200 = vpush %v2965_v30 }
0x4489   :  { %s3201_s24 = spop %3200 }
0x448a   :  { %v2967_v41 = vstv %s3201_s24 }
0x448b   :  { %v2968_v25 = vmul.f32 0.03125, %v2967_v41 }
0x448d   :  { %v2970_v49 = vadd.f32 %v2969_v9, %v2968_v25 }
0x448f   :  { %2972 = vst.msk [vmem:[#allocation9] sm:$0x1] %vm2971_vm15, %v2970_v49 }
0x4490   :  { %2985 = dma.vmem_to_hbm [thread:$0]  %s2981_s7, 16, %s2983_s21, [#allocation6]  }
0x4491   :  { %3557 = dma.done.wait [#allocation6], 16  }
0x4492   :  { %3558 = vsyncadd [#allocation6], 4294967280 }
0x4493   :  { %2992 = vsyncpa [#allocation5], 1 }
0x4494   :  { %2993 = vsyncpa [#allocation8], 1 }
0x4495   :  { %2994 = vsyncpa [#allocation6], 1 }

</bundles_post_ra>
